<compile_context>
chip_gen: v7x
topology: tpu7x:2x2x1
jax: 0.10.0
libtpu: 0.0.40
codegen_flags: <defaults>
</compile_context>

<pallas_src>
import numpy as np
import jax
import jax.numpy as jnp
from jax.experimental import pallas as pl
from jax.experimental.pallas import tpu as pltpu

# ----------------------------- model dims ----------------------------------
Z_DIM = 16
LABEL_DIM = 8
VOCAB = 32
EMBED = 32
HIDDEN = 32
NUM_LAYERS = 2
SOS, EOS, PAD, UNK = 1, 2, 0, 3
WORD_DROPOUT = 0.5

_VMEM = pl.BlockSpec(memory_space=pltpu.MemorySpace.VMEM)

# ------------------- packed weight slab layout (module-level) ---------------
# All "latent" weights whose fan-out <= 32 are row-stacked into one slab
# (lat_w), biases into another (lat_b); GRU weights into gru_wih / gru_whh /
# gru_b.  Row offsets are multiples of the f32 sublane granule (8) so every
# in-kernel slice is tile-aligned.
_LAT_SPEC = {                       # name -> (rows=fan_in, cols=fan_out)
    "h2mv": (NUM_LAYERS * HIDDEN, 2 * Z_DIM),
    "le1": (LABEL_DIM, HIDDEN),
    "le2": (HIDDEN, HIDDEN),
    "le3": (HIDDEN, 2 * Z_DIM),
    "ld1": (Z_DIM, HIDDEN),
    "ld2": (HIDDEN, HIDDEN),
    "ld3": (HIDDEN, HIDDEN),
    "ld4": (HIDDEN, LABEL_DIM),
    "o2v": (HIDDEN, VOCAB),
}
_LAT_COLS = max(c for _, c in _LAT_SPEC.values())
_LAT_OFF = {}
_off = 0
for _n, (_r, _c) in _LAT_SPEC.items():
    _LAT_OFF[_n] = _off
    _off += _r
_LAT_ROWS_TOTAL = _off
assert all(v % 8 == 0 for v in _LAT_OFF.values())

_B_SPEC = (("z2h", NUM_LAYERS * HIDDEN), ("h2mv", 2 * Z_DIM), ("le1", HIDDEN),
           ("le2", HIDDEN), ("le3", 2 * Z_DIM), ("ld1", HIDDEN),
           ("ld2", HIDDEN), ("ld3", HIDDEN), ("ld4", LABEL_DIM), ("o2v", VOCAB))
_B_IDX = {n: i for i, (n, _) in enumerate(_B_SPEC)}
_B_COLS = dict(_B_SPEC)
_B_WIDTH = max(_B_COLS.values())

# gru_wih rows: [enc_l0 (E), enc_l1 (H), dec_l0 (E), dec_l1 (H)]
# gru_whh rows: [enc_l0, enc_l1, dec_l0, dec_l1] (H each)
# gru_b rows  : [bih_e0, bih_e1, bih_d0, bih_d1, bhh_e0, bhh_e1, bhh_d0, bhh_d1]
assert EMBED % 8 == 0 and HIDDEN % 8 == 0


def _swish(x):
    return x * jax.nn.sigmoid(x)


# ------------------------------ fused kernel --------------------------------

def mvae_kernel(x_enc_ref, x_dec_ref, mask_ref, label_ref, eps_ref,
                gwih_ref, gwhh_ref, gb_ref, latw_ref, latb_ref, z2hw_ref,
                logits_ref, label_out_ref, z_ref, mu_ref, logvar_ref):
    f32 = jnp.float32
    T, B, E = x_enc_ref.shape
    H = HIDDEN
    G = 3 * H

    # ---------- packed-slab accessors (one-time, tile-aligned loads) --------
    def lat_w(name):
        rows, cols = _LAT_SPEC[name]
        off = _LAT_OFF[name]
        return latw_ref[off:off + rows, :cols]

    def lat_b(name):
        i = _B_IDX[name]
        return latb_ref[i:i + 1, :_B_COLS[name]]

    def affine(x, w, b):
        return jnp.dot(x, w, preferred_element_type=f32) + b

    def gru_gates(gx, gh, h):
        # PyTorch nn.GRU gate semantics with split x-side / h-side pre-acts.
        r = jax.nn.sigmoid(gx[:, :H] + gh[:, :H])
        zg = jax.nn.sigmoid(gx[:, H:2 * H] + gh[:, H:2 * H])
        n = jnp.tanh(gx[:, 2 * H:] + r * gh[:, 2 * H:])
        return (1.0 - zg) * n + zg * h

    # Mask loaded once; per-step slices are static (Python time loop below).
    m_all = mask_ref[...]                                     # (T, B, 1)

    def run_gru(x_ref, wih0, bih0, wih1, bih1, whh0, bhh0, whh1, bhh1,
                h0, h1, collect):
        """Masked 2-layer GRU.  pack_padded_sequence semantics: steps
        t >= length[b] do not update either layer's hidden state."""
        # Batched x-side pre-activations for layer 0: one (T*B,E)@(E,3H) push.
        gx0 = (jnp.dot(x_ref[...].reshape(T * B, E), wih0,
                       preferred_element_type=f32) + bih0).reshape(T, B, G)
        outs = []
        # T is small (8): a static Python loop keeps every slice/store static.
        # TODO(synk): for long sequences switch to lax.fori_loop with partial
        # unroll and a VMEM scratch for gx0 / collected hiddens.
        for t in range(T):
            m = m_all[t]                                       # (B, 1)
            gh0 = jnp.dot(h0, whh0, preferred_element_type=f32) + bhh0
            h0 = h0 + m * (gru_gates(gx0[t], gh0, h0) - h0)
            gx1 = jnp.dot(h0, wih1, preferred_element_type=f32) + bih1
            gh1 = jnp.dot(h1, whh1, preferred_element_type=f32) + bhh1
            h1 = h1 + m * (gru_gates(gx1, gh1, h1) - h1)
            if collect:
                # pad_packed_sequence: padded steps -> zero hidden rows.
                outs.append(h1 * m)
        return h0, h1, outs

    # Per-step biases, broadcast hoisted out of the time loops (no CSE in JAX).
    def bias_row(i):
        return jnp.broadcast_to(gb_ref[i:i + 1, :], (B, G))

    # ------------------------- q(z | program): encoder ----------------------
    h_zero = jnp.zeros((B, H), f32)
    h0e, h1e, _ = run_gru(
        x_enc_ref,
        gwih_ref[0:E, :], gb_ref[0:1, :],                      # layer-0 x-side
        gwih_ref[E:E + H, :], bias_row(1),                     # layer-1 x-side
        gwhh_ref[0:H, :], bias_row(4),                         # layer-0 h-side
        gwhh_ref[H:2 * H, :], bias_row(5),                     # layer-1 h-side
        h_zero, h_zero, collect=False)

    # hidden.permute(1,0,2).view(B, num_layers*H) == concat([h_l0, h_l1], -1)
    hflat = jnp.concatenate([h0e, h1e], axis=-1)               # (B, 2H)
    mv = affine(hflat, lat_w("h2mv"), lat_b("h2mv"))           # fused h2mu/h2logvar
    prog_mu, prog_logvar = mv[:, :Z_DIM], mv[:, Z_DIM:]

    # ------------------------- q(z | label): LabelEncoder -------------------
    h = _swish(affine(label_ref[...], lat_w("le1"), lat_b("le1")))
    h = _swish(affine(h, lat_w("le2"), lat_b("le2")))
    lmv = affine(h, lat_w("le3"), lat_b("le3"))
    lab_mu, lab_logvar = lmv[:, :Z_DIM], lmv[:, Z_DIM:]

    # -------- product of experts (program, label, unit-Gaussian prior) ------
    eps_c = 1e-8
    t_prog = 1.0 / (jnp.exp(prog_logvar) + eps_c)   # exact: tiny tensors,
    t_lab = 1.0 / (jnp.exp(lab_logvar) + eps_c)     # keep reference fidelity
    t_prior = 1.0 / (1.0 + eps_c)                   # exp(0) + eps
    sum_t = t_prog + t_lab + t_prior
    pd_mu = (prog_mu * t_prog + lab_mu * t_lab) / sum_t
    pd_logvar = -jnp.log(sum_t)                     # log(1/sum_t), EUP slot

    mu_ref[...] = pd_mu
    logvar_ref[...] = pd_logvar

    # ---------------------------- reparameterize ----------------------------
    z = eps_ref[...] * jnp.exp(0.5 * pd_logvar) + pd_mu
    z_ref[...] = z

    # ------------------------- p(label | z): LabelDecoder -------------------
    h = _swish(affine(z, lat_w("ld1"), lat_b("ld1")))
    h = _swish(affine(h, lat_w("ld2"), lat_b("ld2")))
    h = _swish(affine(h, lat_w("ld3"), lat_b("ld3")))
    label_out_ref[...] = jax.nn.sigmoid(affine(h, lat_w("ld4"), lat_b("ld4")))

    # ------------------------- p(program | z): decoder ----------------------
    # z2h initial hidden (num_layers-major split, matches view/permute).
    hinit = affine(z, z2hw_ref[...], lat_b("z2h"))             # (B, 2H)
    h0d, h1d = hinit[:, :H], hinit[:, H:]
    _, _, outs = run_gru(
        x_dec_ref,
        gwih_ref[E + H:2 * E + H, :], gb_ref[2:3, :],
        gwih_ref[2 * E + H:2 * E + 2 * H, :], bias_row(3),
        gwhh_ref[2 * H:3 * H, :], bias_row(6),
        gwhh_ref[3 * H:4 * H, :], bias_row(7),
        h0d, h1d, collect=True)

    # Batched outputs2vocab: one (T*B, H) @ (H, V) matmul + contiguous store.
    hs = jnp.concatenate(outs, axis=0)                         # (T*B, H)
    logits = affine(hs, lat_w("o2v"), lat_b("o2v"))            # (T*B, V)
    logits_ref[...] = logits.reshape(T, B, VOCAB)


# ----------------------------- kernel wrapper --------------------------------

def run_mvae(x_enc, x_dec, mask, label, eps, p):
    T, B, _ = x_enc.shape
    f32 = jnp.float32
    out_shape = (jax.ShapeDtypeStruct((T, B, VOCAB), f32),
                 jax.ShapeDtypeStruct((B, LABEL_DIM), f32),
                 jax.ShapeDtypeStruct((B, Z_DIM), f32),
                 jax.ShapeDtypeStruct((B, Z_DIM), f32),
                 jax.ShapeDtypeStruct((B, Z_DIM), f32))
    return pl.pallas_call(
        mvae_kernel,
        out_shape=out_shape,
        in_specs=[_VMEM] * 11,
        out_specs=(_VMEM,) * 5,
    )(x_enc, x_dec, mask, label, eps,
      p["gru_wih"], p["gru_whh"], p["gru_b"],
      p["lat_w"], p["lat_b"], p["z2h_w"])


# ----------------------------- parameter init --------------------------------

def _dense(key, fan_in, fan_out):
    kw, kb = jax.random.split(key)
    bound = 1.0 / np.sqrt(fan_in)
    w = jax.random.uniform(kw, (fan_in, fan_out), jnp.float32, -bound, bound)
    b = jax.random.uniform(kb, (1, fan_out), jnp.float32, -bound, bound)
    return w, b


def _gru_layer(key, in_dim, H):
    """PyTorch nn.GRU layer init (stored transposed: (in, 3H) / (H, 3H))."""
    k1, k2, k3, k4 = jax.random.split(key, 4)
    bound = 1.0 / np.sqrt(H)
    w_ih = jax.random.uniform(k1, (in_dim, 3 * H), jnp.float32, -bound, bound)
    w_hh = jax.random.uniform(k2, (H, 3 * H), jnp.float32, -bound, bound)
    b_ih = jax.random.uniform(k3, (1, 3 * H), jnp.float32, -bound, bound)
    b_hh = jax.random.uniform(k4, (1, 3 * H), jnp.float32, -bound, bound)
    return w_ih, w_hh, b_ih, b_hh


def init_params(key):
    keys = jax.random.split(key, 16)
    params = {}
    params["embedding"] = jax.random.normal(keys[0], (VOCAB, EMBED), jnp.float32)

    # GRU layers (encoder l0/l1, decoder l0/l1) packed into three slabs.
    enc0 = _gru_layer(keys[1], EMBED, HIDDEN)
    enc1 = _gru_layer(keys[2], HIDDEN, HIDDEN)
    dec0 = _gru_layer(keys[5], EMBED, HIDDEN)
    dec1 = _gru_layer(keys[6], HIDDEN, HIDDEN)
    params["gru_wih"] = jnp.concatenate(
        [enc0[0], enc1[0], dec0[0], dec1[0]], axis=0)          # (2E+2H, 3H)
    params["gru_whh"] = jnp.concatenate(
        [enc0[1], enc1[1], dec0[1], dec1[1]], axis=0)          # (4H, 3H)
    params["gru_b"] = jnp.concatenate(
        [enc0[2], enc1[2], dec0[2], dec1[2],
         enc0[3], enc1[3], dec0[3], dec1[3]], axis=0)          # (8, 3H)

    # Latent heads / MLPs.
    h2mu_w, h2mu_b = _dense(keys[3], HIDDEN * NUM_LAYERS, Z_DIM)
    h2lv_w, h2lv_b = _dense(keys[4], HIDDEN * NUM_LAYERS, Z_DIM)
    h2mv_w = jnp.concatenate([h2mu_w, h2lv_w], axis=1)
    h2mv_b = jnp.concatenate([h2mu_b, h2lv_b], axis=1)
    z2h_w, z2h_b = _dense(keys[7], Z_DIM, HIDDEN * NUM_LAYERS)
    o2v_w, o2v_b = _dense(keys[8], HIDDEN, VOCAB)
    le1_w, le1_b = _dense(keys[9], LABEL_DIM, HIDDEN)
    le2_w, le2_b = _dense(keys[10], HIDDEN, HIDDEN)
    le3_w, le3_b = _dense(keys[11], HIDDEN, 2 * Z_DIM)
    ld1_w, ld1_b = _dense(keys[12], Z_DIM, HIDDEN)
    ld2_w, ld2_b = _dense(keys[13], HIDDEN, HIDDEN)
    ld3_w, ld3_b = _dense(keys[14], HIDDEN, HIDDEN)
    ld4_w, ld4_b = _dense(keys[15], HIDDEN, LABEL_DIM)

    w_blocks = {"h2mv": h2mv_w, "le1": le1_w, "le2": le2_w, "le3": le3_w,
                "ld1": ld1_w, "ld2": ld2_w, "ld3": ld3_w, "ld4": ld4_w,
                "o2v": o2v_w}
    b_blocks = {"z2h": z2h_b, "h2mv": h2mv_b, "le1": le1_b, "le2": le2_b,
                "le3": le3_b, "ld1": ld1_b, "ld2": ld2_b, "ld3": ld3_b,
                "ld4": ld4_b, "o2v": o2v_b}

    lat_w_rows = [jnp.pad(w_blocks[n], ((0, 0), (0, _LAT_COLS - w_blocks[n].shape[1])))
                  for n in _LAT_SPEC]
    params["lat_w"] = jnp.concatenate(lat_w_rows, axis=0)      # (280, 32)
    lat_b_rows = [jnp.pad(b_blocks[n], ((0, 0), (0, _B_WIDTH - b_blocks[n].shape[1])))
                  for n, _ in _B_SPEC]
    params["lat_b"] = jnp.concatenate(lat_b_rows, axis=0)      # (10, 64)
    params["z2h_w"] = z2h_w                                    # (Z, 2H)
    return params


# ----------------------------- forward ---------------------------------------

def program_mvae_forward(params, seq, length, label, rng):
    """Equivalent of ProgramMVAE.forward(seq, length, label, hide_seq=False)."""
    B, T = seq.shape
    emb = params["embedding"]

    # Pad batch to the f32 sublane granule (8); padded rows have length 0
    # (fully masked) and are sliced off at the end.
    B_pad = max(8, -(-B // 8) * 8)
    pad = B_pad - B
    seq_p = jnp.pad(seq, ((0, pad), (0, 0)), constant_values=PAD)
    length_p = jnp.pad(length, (0, pad))
    label_p = jnp.pad(label, ((0, pad), (0, 0)))

    # Time-major valid-step mask (replaces pack_padded_sequence; the reference's
    # explicit length-sorting / de-sorting is a no-op under masking).
    mask = (jnp.arange(T)[:, None] < length_p[None, :]).astype(jnp.float32)[:, :, None]

    # Embedding lookups + word dropout are cheap XLA glue (gathers/RNG).
    x_enc = jnp.transpose(jnp.take(emb, seq_p, axis=0), (1, 0, 2))   # (T, Bp, E)

    k_eps, k_drop = jax.random.split(rng)
    eps = jax.random.normal(k_eps, (B_pad, Z_DIM), jnp.float32)

    # TODO(synk): the reference line `prob[seq - sos_idx & seq - pad_idx == 0] = 1`
    # has a precedence / advanced-indexing quirk; the documented intent
    # (never drop SOS or PAD tokens) is implemented here.
    prob = jax.random.uniform(k_drop, seq_p.shape)
    protect = (seq_p == SOS) | (seq_p == PAD)
    prob = jnp.where(protect, 1.0, prob)
    seq_dec = jnp.where(prob < WORD_DROPOUT, UNK, seq_p)
    x_dec = jnp.transpose(jnp.take(emb, seq_dec, axis=0), (1, 0, 2))  # (T, Bp, E)

    # Single fused kernel: encoder GRU + latent (PoE/reparam/label nets) +
    # decoder GRU + vocab projection.
    logits_tbv, label_out, z, z_mu, z_logvar = run_mvae(
        x_enc, x_dec, mask, label_p, eps, params)

    # NOTE: with max(length) == T this matches pad_packed_sequence's T_max.
    # The reference's post-pad_packed transpose/index is a shape bug for this
    # argument order; the intended (B, T, vocab) semantics are implemented.
    seq_logits = jnp.transpose(logits_tbv, (1, 0, 2))[:B]

    return (seq_logits, label_out[:B], z[:B], z_mu[:B], z_logvar[:B])


# ----------------------------- main -------------------------------------------

if __name__ == "__main__":
    root = jax.random.PRNGKey(0)
    k_params, k_data, k_fwd = jax.random.split(root, 3)
    params = init_params(k_params)

    B, T = 2, 8
    ks, kl = jax.random.split(k_data)
    body = jax.random.randint(ks, (B, T - 1), 4, VOCAB, dtype=jnp.int32)
    seq = jnp.concatenate(
        [jnp.full((B, 1), SOS, jnp.int32), body], axis=1)          # (B, T)
    length = jnp.array([T, 6], jnp.int32)                          # max == T
    valid = jnp.arange(T)[None, :] < length[:, None]
    seq = jnp.where(valid, seq, PAD)
    label = (jax.random.uniform(kl, (B, LABEL_DIM)) > 0.5).astype(jnp.float32)

    fwd = jax.jit(program_mvae_forward)
    outs = fwd(params, seq, length, label, k_fwd)
    jax.block_until_ready(outs)

    seq_logits, label_out, z, z_mu, z_logvar = outs
    assert seq_logits.shape == (B, T, VOCAB)
    assert label_out.shape == (B, LABEL_DIM)
    assert z.shape == (B, Z_DIM) and z_mu.shape == (B, Z_DIM) and z_logvar.shape == (B, Z_DIM)
    assert bool(jnp.all(jnp.isfinite(seq_logits)))
    print("KERNEL_OK")
</pallas_src>

<mosaic_0001>
module attributes {stable_mosaic.version = 11 : i64} {
  func.func @mvae_kernel(%arg0: memref<8x8x32xf32, #tpu.memory_space<vmem>>, %arg1: memref<8x8x32xf32, #tpu.memory_space<vmem>>, %arg2: memref<8x8x1xf32, #tpu.memory_space<vmem>>, %arg3: memref<8x8xf32, #tpu.memory_space<vmem>>, %arg4: memref<8x16xf32, #tpu.memory_space<vmem>>, %arg5: memref<128x96xf32, #tpu.memory_space<vmem>>, %arg6: memref<128x96xf32, #tpu.memory_space<vmem>>, %arg7: memref<8x96xf32, #tpu.memory_space<vmem>>, %arg8: memref<280x32xf32, #tpu.memory_space<vmem>>, %arg9: memref<10x64xf32, #tpu.memory_space<vmem>>, %arg10: memref<16x64xf32, #tpu.memory_space<vmem>>, %arg11: memref<8x8x32xf32, #tpu.memory_space<vmem>>, %arg12: memref<8x8xf32, #tpu.memory_space<vmem>>, %arg13: memref<8x16xf32, #tpu.memory_space<vmem>>, %arg14: memref<8x16xf32, #tpu.memory_space<vmem>>, %arg15: memref<8x16xf32, #tpu.memory_space<vmem>>) attributes {dimension_semantics = [], scalar_prefetch = 0 : i64, scratch_operands = 0 : i64, tpu.core_type = #tpu.core_type<tc>} {
    %c0 = arith.constant 0 : index
    %c0_0 = arith.constant 0 : index
    %c0_1 = arith.constant 0 : index
    %0 = vector.load %arg2[%c0, %c0_0, %c0_1] : memref<8x8x1xf32, #tpu.memory_space<vmem>>, vector<8x8x1xf32>
    %cst = arith.constant 0.000000e+00 : f32
    %1 = vector.broadcast %cst : f32 to vector<8x32xf32>
    %c0_2 = arith.constant 0 : index
    %c0_3 = arith.constant 0 : index
    %2 = vector.load %arg5[%c0_2, %c0_3] : memref<128x96xf32, #tpu.memory_space<vmem>>, vector<32x96xf32>
    %c0_4 = arith.constant 0 : index
    %c0_5 = arith.constant 0 : index
    %3 = vector.load %arg7[%c0_4, %c0_5] : memref<8x96xf32, #tpu.memory_space<vmem>>, vector<1x96xf32>
    %c32 = arith.constant 32 : index
    %c0_6 = arith.constant 0 : index
    %4 = vector.load %arg5[%c32, %c0_6] : memref<128x96xf32, #tpu.memory_space<vmem>>, vector<32x96xf32>
    %c1 = arith.constant 1 : index
    %c0_7 = arith.constant 0 : index
    %5 = vector.load %arg7[%c1, %c0_7] : memref<8x96xf32, #tpu.memory_space<vmem>>, vector<1x96xf32>
    %6 = vector.shape_cast %5 : vector<1x96xf32> to vector<1x96xf32>
    %7 = vector.broadcast %6 : vector<1x96xf32> to vector<8x96xf32>
    %c0_8 = arith.constant 0 : index
    %c0_9 = arith.constant 0 : index
    %8 = vector.load %arg6[%c0_8, %c0_9] : memref<128x96xf32, #tpu.memory_space<vmem>>, vector<32x96xf32>
    %c4 = arith.constant 4 : index
    %c0_10 = arith.constant 0 : index
    %9 = vector.load %arg7[%c4, %c0_10] : memref<8x96xf32, #tpu.memory_space<vmem>>, vector<1x96xf32>
    %10 = vector.shape_cast %9 : vector<1x96xf32> to vector<1x96xf32>
    %11 = vector.broadcast %10 : vector<1x96xf32> to vector<8x96xf32>
    %c32_11 = arith.constant 32 : index
    %c0_12 = arith.constant 0 : index
    %12 = vector.load %arg6[%c32_11, %c0_12] : memref<128x96xf32, #tpu.memory_space<vmem>>, vector<32x96xf32>
    %c5 = arith.constant 5 : index
    %c0_13 = arith.constant 0 : index
    %13 = vector.load %arg7[%c5, %c0_13] : memref<8x96xf32, #tpu.memory_space<vmem>>, vector<1x96xf32>
    %14 = vector.shape_cast %13 : vector<1x96xf32> to vector<1x96xf32>
    %15 = vector.broadcast %14 : vector<1x96xf32> to vector<8x96xf32>
    %c0_14 = arith.constant 0 : index
    %c0_15 = arith.constant 0 : index
    %c0_16 = arith.constant 0 : index
    %16 = vector.load %arg0[%c0_14, %c0_15, %c0_16] : memref<8x8x32xf32, #tpu.memory_space<vmem>>, vector<8x8x32xf32>
    %17 = vector.shape_cast %16 : vector<8x8x32xf32> to vector<64x32xf32>
    %cst_17 = arith.constant dense<0.000000e+00> : vector<64x96xf32>
    %18 = tpu.matmul %17, %2, %cst_17 {dimension_numbers = #tpu.dot_dimension_numbers<[1], [0], [0], [1], [0, 0, 1, 1], [], []>} : vector<64x32xf32>, vector<32x96xf32>, vector<64x96xf32> -> vector<64x96xf32>
    %19 = vector.broadcast %3 : vector<1x96xf32> to vector<64x96xf32>
    %20 = arith.addf %18, %19 : vector<64x96xf32>
    %21 = vector.shape_cast %20 : vector<64x96xf32> to vector<8x8x96xf32>
    %22 = vector.extract_strided_slice %0 {offsets = [0, 0, 0], sizes = [1, 8, 1], strides = [1, 1, 1]} : vector<8x8x1xf32> to vector<1x8x1xf32>
    %23 = vector.shape_cast %22 : vector<1x8x1xf32> to vector<8x1xf32>
    %cst_18 = arith.constant dense<0.000000e+00> : vector<8x96xf32>
    %24 = tpu.matmul %1, %8, %cst_18 {dimension_numbers = #tpu.dot_dimension_numbers<[1], [0], [0], [1], [0, 0, 1, 1], [], []>} : vector<8x32xf32>, vector<32x96xf32>, vector<8x96xf32> -> vector<8x96xf32>
    %25 = arith.addf %24, %11 : vector<8x96xf32>
    %26 = vector.extract_strided_slice %21 {offsets = [0, 0, 0], sizes = [1, 8, 96], strides = [1, 1, 1]} : vector<8x8x96xf32> to vector<1x8x96xf32>
    %27 = vector.shape_cast %26 : vector<1x8x96xf32> to vector<8x96xf32>
    %28 = vector.extract_strided_slice %27 {offsets = [0, 0], sizes = [8, 32], strides = [1, 1]} : vector<8x96xf32> to vector<8x32xf32>
    %29 = vector.extract_strided_slice %25 {offsets = [0, 0], sizes = [8, 32], strides = [1, 1]} : vector<8x96xf32> to vector<8x32xf32>
    %30 = arith.addf %28, %29 : vector<8x32xf32>
    %31 = arith.negf %30 : vector<8x32xf32>
    %32 = math.exp %31 : vector<8x32xf32>
    %cst_19 = arith.constant 1.000000e+00 : f32
    %33 = vector.broadcast %cst_19 : f32 to vector<8x32xf32>
    %34 = arith.addf %33, %32 : vector<8x32xf32>
    %35 = arith.divf %33, %34 : vector<8x32xf32>
    %36 = vector.extract_strided_slice %27 {offsets = [0, 32], sizes = [8, 32], strides = [1, 1]} : vector<8x96xf32> to vector<8x32xf32>
    %37 = vector.extract_strided_slice %25 {offsets = [0, 32], sizes = [8, 32], strides = [1, 1]} : vector<8x96xf32> to vector<8x32xf32>
    %38 = arith.addf %36, %37 : vector<8x32xf32>
    %39 = arith.negf %38 : vector<8x32xf32>
    %40 = math.exp %39 : vector<8x32xf32>
    %cst_20 = arith.constant 1.000000e+00 : f32
    %41 = vector.broadcast %cst_20 : f32 to vector<8x32xf32>
    %42 = arith.addf %41, %40 : vector<8x32xf32>
    %43 = arith.divf %41, %42 : vector<8x32xf32>
    %44 = vector.extract_strided_slice %27 {offsets = [0, 64], sizes = [8, 32], strides = [1, 1]} : vector<8x96xf32> to vector<8x32xf32>
    %45 = vector.extract_strided_slice %25 {offsets = [0, 64], sizes = [8, 32], strides = [1, 1]} : vector<8x96xf32> to vector<8x32xf32>
    %46 = arith.mulf %35, %45 : vector<8x32xf32>
    %47 = arith.addf %44, %46 : vector<8x32xf32>
    %48 = math.tanh %47 : vector<8x32xf32>
    %cst_21 = arith.constant 1.000000e+00 : f32
    %49 = vector.broadcast %cst_21 : f32 to vector<8x32xf32>
    %50 = arith.subf %49, %43 : vector<8x32xf32>
    %51 = arith.mulf %50, %48 : vector<8x32xf32>
    %52 = arith.mulf %43, %1 : vector<8x32xf32>
    %53 = arith.addf %51, %52 : vector<8x32xf32>
    %54 = arith.subf %53, %1 : vector<8x32xf32>
    %55 = vector.broadcast %23 : vector<8x1xf32> to vector<8x32xf32>
    %56 = arith.mulf %55, %54 : vector<8x32xf32>
    %57 = arith.addf %1, %56 : vector<8x32xf32>
    %cst_22 = arith.constant dense<0.000000e+00> : vector<8x96xf32>
    %58 = tpu.matmul %57, %4, %cst_22 {dimension_numbers = #tpu.dot_dimension_numbers<[1], [0], [0], [1], [0, 0, 1, 1], [], []>} : vector<8x32xf32>, vector<32x96xf32>, vector<8x96xf32> -> vector<8x96xf32>
    %59 = arith.addf %58, %7 : vector<8x96xf32>
    %cst_23 = arith.constant dense<0.000000e+00> : vector<8x96xf32>
    %60 = tpu.matmul %1, %12, %cst_23 {dimension_numbers = #tpu.dot_dimension_numbers<[1], [0], [0], [1], [0, 0, 1, 1], [], []>} : vector<8x32xf32>, vector<32x96xf32>, vector<8x96xf32> -> vector<8x96xf32>
    %61 = arith.addf %60, %15 : vector<8x96xf32>
    %62 = vector.extract_strided_slice %59 {offsets = [0, 0], sizes = [8, 32], strides = [1, 1]} : vector<8x96xf32> to vector<8x32xf32>
    %63 = vector.extract_strided_slice %61 {offsets = [0, 0], sizes = [8, 32], strides = [1, 1]} : vector<8x96xf32> to vector<8x32xf32>
    %64 = arith.addf %62, %63 : vector<8x32xf32>
    %65 = arith.negf %64 : vector<8x32xf32>
    %66 = math.exp %65 : vector<8x32xf32>
    %cst_24 = arith.constant 1.000000e+00 : f32
    %67 = vector.broadcast %cst_24 : f32 to vector<8x32xf32>
    %68 = arith.addf %67, %66 : vector<8x32xf32>
    %69 = arith.divf %67, %68 : vector<8x32xf32>
    %70 = vector.extract_strided_slice %59 {offsets = [0, 32], sizes = [8, 32], strides = [1, 1]} : vector<8x96xf32> to vector<8x32xf32>
    %71 = vector.extract_strided_slice %61 {offsets = [0, 32], sizes = [8, 32], strides = [1, 1]} : vector<8x96xf32> to vector<8x32xf32>
    %72 = arith.addf %70, %71 : vector<8x32xf32>
    %73 = arith.negf %72 : vector<8x32xf32>
    %74 = math.exp %73 : vector<8x32xf32>
    %cst_25 = arith.constant 1.000000e+00 : f32
    %75 = vector.broadcast %cst_25 : f32 to vector<8x32xf32>
    %76 = arith.addf %75, %74 : vector<8x32xf32>
    %77 = arith.divf %75, %76 : vector<8x32xf32>
    %78 = vector.extract_strided_slice %59 {offsets = [0, 64], sizes = [8, 32], strides = [1, 1]} : vector<8x96xf32> to vector<8x32xf32>
    %79 = vector.extract_strided_slice %61 {offsets = [0, 64], sizes = [8, 32], strides = [1, 1]} : vector<8x96xf32> to vector<8x32xf32>
    %80 = arith.mulf %69, %79 : vector<8x32xf32>
    %81 = arith.addf %78, %80 : vector<8x32xf32>
    %82 = math.tanh %81 : vector<8x32xf32>
    %cst_26 = arith.constant 1.000000e+00 : f32
    %83 = vector.broadcast %cst_26 : f32 to vector<8x32xf32>
    %84 = arith.subf %83, %77 : vector<8x32xf32>
    %85 = arith.mulf %84, %82 : vector<8x32xf32>
    %86 = arith.mulf %77, %1 : vector<8x32xf32>
    %87 = arith.addf %85, %86 : vector<8x32xf32>
    %88 = arith.subf %87, %1 : vector<8x32xf32>
    %89 = vector.broadcast %23 : vector<8x1xf32> to vector<8x32xf32>
    %90 = arith.mulf %89, %88 : vector<8x32xf32>
    %91 = arith.addf %1, %90 : vector<8x32xf32>
    %92 = vector.extract_strided_slice %0 {offsets = [1, 0, 0], sizes = [1, 8, 1], strides = [1, 1, 1]} : vector<8x8x1xf32> to vector<1x8x1xf32>
    %93 = vector.shape_cast %92 : vector<1x8x1xf32> to vector<8x1xf32>
    %cst_27 = arith.constant dense<0.000000e+00> : vector<8x96xf32>
    %94 = tpu.matmul %57, %8, %cst_27 {dimension_numbers = #tpu.dot_dimension_numbers<[1], [0], [0], [1], [0, 0, 1, 1], [], []>} : vector<8x32xf32>, vector<32x96xf32>, vector<8x96xf32> -> vector<8x96xf32>
    %95 = arith.addf %94, %11 : vector<8x96xf32>
    %96 = vector.extract_strided_slice %21 {offsets = [1, 0, 0], sizes = [1, 8, 96], strides = [1, 1, 1]} : vector<8x8x96xf32> to vector<1x8x96xf32>
    %97 = vector.shape_cast %96 : vector<1x8x96xf32> to vector<8x96xf32>
    %98 = vector.extract_strided_slice %97 {offsets = [0, 0], sizes = [8, 32], strides = [1, 1]} : vector<8x96xf32> to vector<8x32xf32>
    %99 = vector.extract_strided_slice %95 {offsets = [0, 0], sizes = [8, 32], strides = [1, 1]} : vector<8x96xf32> to vector<8x32xf32>
    %100 = arith.addf %98, %99 : vector<8x32xf32>
    %101 = arith.negf %100 : vector<8x32xf32>
    %102 = math.exp %101 : vector<8x32xf32>
    %cst_28 = arith.constant 1.000000e+00 : f32
    %103 = vector.broadcast %cst_28 : f32 to vector<8x32xf32>
    %104 = arith.addf %103, %102 : vector<8x32xf32>
    %105 = arith.divf %103, %104 : vector<8x32xf32>
    %106 = vector.extract_strided_slice %97 {offsets = [0, 32], sizes = [8, 32], strides = [1, 1]} : vector<8x96xf32> to vector<8x32xf32>
    %107 = vector.extract_strided_slice %95 {offsets = [0, 32], sizes = [8, 32], strides = [1, 1]} : vector<8x96xf32> to vector<8x32xf32>
    %108 = arith.addf %106, %107 : vector<8x32xf32>
    %109 = arith.negf %108 : vector<8x32xf32>
    %110 = math.exp %109 : vector<8x32xf32>
    %cst_29 = arith.constant 1.000000e+00 : f32
    %111 = vector.broadcast %cst_29 : f32 to vector<8x32xf32>
    %112 = arith.addf %111, %110 : vector<8x32xf32>
    %113 = arith.divf %111, %112 : vector<8x32xf32>
    %114 = vector.extract_strided_slice %97 {offsets = [0, 64], sizes = [8, 32], strides = [1, 1]} : vector<8x96xf32> to vector<8x32xf32>
    %115 = vector.extract_strided_slice %95 {offsets = [0, 64], sizes = [8, 32], strides = [1, 1]} : vector<8x96xf32> to vector<8x32xf32>
    %116 = arith.mulf %105, %115 : vector<8x32xf32>
    %117 = arith.addf %114, %116 : vector<8x32xf32>
    %118 = math.tanh %117 : vector<8x32xf32>
    %cst_30 = arith.constant 1.000000e+00 : f32
    %119 = vector.broadcast %cst_30 : f32 to vector<8x32xf32>
    %120 = arith.subf %119, %113 : vector<8x32xf32>
    %121 = arith.mulf %120, %118 : vector<8x32xf32>
    %122 = arith.mulf %113, %57 : vector<8x32xf32>
    %123 = arith.addf %121, %122 : vector<8x32xf32>
    %124 = arith.subf %123, %57 : vector<8x32xf32>
    %125 = vector.broadcast %93 : vector<8x1xf32> to vector<8x32xf32>
    %126 = arith.mulf %125, %124 : vector<8x32xf32>
    %127 = arith.addf %57, %126 : vector<8x32xf32>
    %cst_31 = arith.constant dense<0.000000e+00> : vector<8x96xf32>
    %128 = tpu.matmul %127, %4, %cst_31 {dimension_numbers = #tpu.dot_dimension_numbers<[1], [0], [0], [1], [0, 0, 1, 1], [], []>} : vector<8x32xf32>, vector<32x96xf32>, vector<8x96xf32> -> vector<8x96xf32>
    %129 = arith.addf %128, %7 : vector<8x96xf32>
    %cst_32 = arith.constant dense<0.000000e+00> : vector<8x96xf32>
    %130 = tpu.matmul %91, %12, %cst_32 {dimension_numbers = #tpu.dot_dimension_numbers<[1], [0], [0], [1], [0, 0, 1, 1], [], []>} : vector<8x32xf32>, vector<32x96xf32>, vector<8x96xf32> -> vector<8x96xf32>
    %131 = arith.addf %130, %15 : vector<8x96xf32>
    %132 = vector.extract_strided_slice %129 {offsets = [0, 0], sizes = [8, 32], strides = [1, 1]} : vector<8x96xf32> to vector<8x32xf32>
    %133 = vector.extract_strided_slice %131 {offsets = [0, 0], sizes = [8, 32], strides = [1, 1]} : vector<8x96xf32> to vector<8x32xf32>
    %134 = arith.addf %132, %133 : vector<8x32xf32>
    %135 = arith.negf %134 : vector<8x32xf32>
    %136 = math.exp %135 : vector<8x32xf32>
    %cst_33 = arith.constant 1.000000e+00 : f32
    %137 = vector.broadcast %cst_33 : f32 to vector<8x32xf32>
    %138 = arith.addf %137, %136 : vector<8x32xf32>
    %139 = arith.divf %137, %138 : vector<8x32xf32>
    %140 = vector.extract_strided_slice %129 {offsets = [0, 32], sizes = [8, 32], strides = [1, 1]} : vector<8x96xf32> to vector<8x32xf32>
    %141 = vector.extract_strided_slice %131 {offsets = [0, 32], sizes = [8, 32], strides = [1, 1]} : vector<8x96xf32> to vector<8x32xf32>
    %142 = arith.addf %140, %141 : vector<8x32xf32>
    %143 = arith.negf %142 : vector<8x32xf32>
    %144 = math.exp %143 : vector<8x32xf32>
    %cst_34 = arith.constant 1.000000e+00 : f32
    %145 = vector.broadcast %cst_34 : f32 to vector<8x32xf32>
    %146 = arith.addf %145, %144 : vector<8x32xf32>
    %147 = arith.divf %145, %146 : vector<8x32xf32>
    %148 = vector.extract_strided_slice %129 {offsets = [0, 64], sizes = [8, 32], strides = [1, 1]} : vector<8x96xf32> to vector<8x32xf32>
    %149 = vector.extract_strided_slice %131 {offsets = [0, 64], sizes = [8, 32], strides = [1, 1]} : vector<8x96xf32> to vector<8x32xf32>
    %150 = arith.mulf %139, %149 : vector<8x32xf32>
    %151 = arith.addf %148, %150 : vector<8x32xf32>
    %152 = math.tanh %151 : vector<8x32xf32>
    %cst_35 = arith.constant 1.000000e+00 : f32
    %153 = vector.broadcast %cst_35 : f32 to vector<8x32xf32>
    %154 = arith.subf %153, %147 : vector<8x32xf32>
    %155 = arith.mulf %154, %152 : vector<8x32xf32>
    %156 = arith.mulf %147, %91 : vector<8x32xf32>
    %157 = arith.addf %155, %156 : vector<8x32xf32>
    %158 = arith.subf %157, %91 : vector<8x32xf32>
    %159 = vector.broadcast %93 : vector<8x1xf32> to vector<8x32xf32>
    %160 = arith.mulf %159, %158 : vector<8x32xf32>
    %161 = arith.addf %91, %160 : vector<8x32xf32>
    %162 = vector.extract_strided_slice %0 {offsets = [2, 0, 0], sizes = [1, 8, 1], strides = [1, 1, 1]} : vector<8x8x1xf32> to vector<1x8x1xf32>
    %163 = vector.shape_cast %162 : vector<1x8x1xf32> to vector<8x1xf32>
    %cst_36 = arith.constant dense<0.000000e+00> : vector<8x96xf32>
    %164 = tpu.matmul %127, %8, %cst_36 {dimension_numbers = #tpu.dot_dimension_numbers<[1], [0], [0], [1], [0, 0, 1, 1], [], []>} : vector<8x32xf32>, vector<32x96xf32>, vector<8x96xf32> -> vector<8x96xf32>
    %165 = arith.addf %164, %11 : vector<8x96xf32>
    %166 = vector.extract_strided_slice %21 {offsets = [2, 0, 0], sizes = [1, 8, 96], strides = [1, 1, 1]} : vector<8x8x96xf32> to vector<1x8x96xf32>
    %167 = vector.shape_cast %166 : vector<1x8x96xf32> to vector<8x96xf32>
    %168 = vector.extract_strided_slice %167 {offsets = [0, 0], sizes = [8, 32], strides = [1, 1]} : vector<8x96xf32> to vector<8x32xf32>
    %169 = vector.extract_strided_slice %165 {offsets = [0, 0], sizes = [8, 32], strides = [1, 1]} : vector<8x96xf32> to vector<8x32xf32>
    %170 = arith.addf %168, %169 : vector<8x32xf32>
    %171 = arith.negf %170 : vector<8x32xf32>
    %172 = math.exp %171 : vector<8x32xf32>
    %cst_37 = arith.constant 1.000000e+00 : f32
    %173 = vector.broadcast %cst_37 : f32 to vector<8x32xf32>
    %174 = arith.addf %173, %172 : vector<8x32xf32>
    %175 = arith.divf %173, %174 : vector<8x32xf32>
    %176 = vector.extract_strided_slice %167 {offsets = [0, 32], sizes = [8, 32], strides = [1, 1]} : vector<8x96xf32> to vector<8x32xf32>
    %177 = vector.extract_strided_slice %165 {offsets = [0, 32], sizes = [8, 32], strides = [1, 1]} : vector<8x96xf32> to vector<8x32xf32>
    %178 = arith.addf %176, %177 : vector<8x32xf32>
    %179 = arith.negf %178 : vector<8x32xf32>
    %180 = math.exp %179 : vector<8x32xf32>
    %cst_38 = arith.constant 1.000000e+00 : f32
    %181 = vector.broadcast %cst_38 : f32 to vector<8x32xf32>
    %182 = arith.addf %181, %180 : vector<8x32xf32>
    %183 = arith.divf %181, %182 : vector<8x32xf32>
    %184 = vector.extract_strided_slice %167 {offsets = [0, 64], sizes = [8, 32], strides = [1, 1]} : vector<8x96xf32> to vector<8x32xf32>
    %185 = vector.extract_strided_slice %165 {offsets = [0, 64], sizes = [8, 32], strides = [1, 1]} : vector<8x96xf32> to vector<8x32xf32>
    %186 = arith.mulf %175, %185 : vector<8x32xf32>
    %187 = arith.addf %184, %186 : vector<8x32xf32>
    %188 = math.tanh %187 : vector<8x32xf32>
    %cst_39 = arith.constant 1.000000e+00 : f32
    %189 = vector.broadcast %cst_39 : f32 to vector<8x32xf32>
    %190 = arith.subf %189, %183 : vector<8x32xf32>
    %191 = arith.mulf %190, %188 : vector<8x32xf32>
    %192 = arith.mulf %183, %127 : vector<8x32xf32>
    %193 = arith.addf %191, %192 : vector<8x32xf32>
    %194 = arith.subf %193, %127 : vector<8x32xf32>
    %195 = vector.broadcast %163 : vector<8x1xf32> to vector<8x32xf32>
    %196 = arith.mulf %195, %194 : vector<8x32xf32>
    %197 = arith.addf %127, %196 : vector<8x32xf32>
    %cst_40 = arith.constant dense<0.000000e+00> : vector<8x96xf32>
    %198 = tpu.matmul %197, %4, %cst_40 {dimension_numbers = #tpu.dot_dimension_numbers<[1], [0], [0], [1], [0, 0, 1, 1], [], []>} : vector<8x32xf32>, vector<32x96xf32>, vector<8x96xf32> -> vector<8x96xf32>
    %199 = arith.addf %198, %7 : vector<8x96xf32>
    %cst_41 = arith.constant dense<0.000000e+00> : vector<8x96xf32>
    %200 = tpu.matmul %161, %12, %cst_41 {dimension_numbers = #tpu.dot_dimension_numbers<[1], [0], [0], [1], [0, 0, 1, 1], [], []>} : vector<8x32xf32>, vector<32x96xf32>, vector<8x96xf32> -> vector<8x96xf32>
    %201 = arith.addf %200, %15 : vector<8x96xf32>
    %202 = vector.extract_strided_slice %199 {offsets = [0, 0], sizes = [8, 32], strides = [1, 1]} : vector<8x96xf32> to vector<8x32xf32>
    %203 = vector.extract_strided_slice %201 {offsets = [0, 0], sizes = [8, 32], strides = [1, 1]} : vector<8x96xf32> to vector<8x32xf32>
    %204 = arith.addf %202, %203 : vector<8x32xf32>
    %205 = arith.negf %204 : vector<8x32xf32>
    %206 = math.exp %205 : vector<8x32xf32>
    %cst_42 = arith.constant 1.000000e+00 : f32
    %207 = vector.broadcast %cst_42 : f32 to vector<8x32xf32>
    %208 = arith.addf %207, %206 : vector<8x32xf32>
    %209 = arith.divf %207, %208 : vector<8x32xf32>
    %210 = vector.extract_strided_slice %199 {offsets = [0, 32], sizes = [8, 32], strides = [1, 1]} : vector<8x96xf32> to vector<8x32xf32>
    %211 = vector.extract_strided_slice %201 {offsets = [0, 32], sizes = [8, 32], strides = [1, 1]} : vector<8x96xf32> to vector<8x32xf32>
    %212 = arith.addf %210, %211 : vector<8x32xf32>
    %213 = arith.negf %212 : vector<8x32xf32>
    %214 = math.exp %213 : vector<8x32xf32>
    %cst_43 = arith.constant 1.000000e+00 : f32
    %215 = vector.broadcast %cst_43 : f32 to vector<8x32xf32>
    %216 = arith.addf %215, %214 : vector<8x32xf32>
    %217 = arith.divf %215, %216 : vector<8x32xf32>
    %218 = vector.extract_strided_slice %199 {offsets = [0, 64], sizes = [8, 32], strides = [1, 1]} : vector<8x96xf32> to vector<8x32xf32>
    %219 = vector.extract_strided_slice %201 {offsets = [0, 64], sizes = [8, 32], strides = [1, 1]} : vector<8x96xf32> to vector<8x32xf32>
    %220 = arith.mulf %209, %219 : vector<8x32xf32>
    %221 = arith.addf %218, %220 : vector<8x32xf32>
    %222 = math.tanh %221 : vector<8x32xf32>
    %cst_44 = arith.constant 1.000000e+00 : f32
    %223 = vector.broadcast %cst_44 : f32 to vector<8x32xf32>
    %224 = arith.subf %223, %217 : vector<8x32xf32>
    %225 = arith.mulf %224, %222 : vector<8x32xf32>
    %226 = arith.mulf %217, %161 : vector<8x32xf32>
    %227 = arith.addf %225, %226 : vector<8x32xf32>
    %228 = arith.subf %227, %161 : vector<8x32xf32>
    %229 = vector.broadcast %163 : vector<8x1xf32> to vector<8x32xf32>
    %230 = arith.mulf %229, %228 : vector<8x32xf32>
    %231 = arith.addf %161, %230 : vector<8x32xf32>
    %232 = vector.extract_strided_slice %0 {offsets = [3, 0, 0], sizes = [1, 8, 1], strides = [1, 1, 1]} : vector<8x8x1xf32> to vector<1x8x1xf32>
    %233 = vector.shape_cast %232 : vector<1x8x1xf32> to vector<8x1xf32>
    %cst_45 = arith.constant dense<0.000000e+00> : vector<8x96xf32>
    %234 = tpu.matmul %197, %8, %cst_45 {dimension_numbers = #tpu.dot_dimension_numbers<[1], [0], [0], [1], [0, 0, 1, 1], [], []>} : vector<8x32xf32>, vector<32x96xf32>, vector<8x96xf32> -> vector<8x96xf32>
    %235 = arith.addf %234, %11 : vector<8x96xf32>
    %236 = vector.extract_strided_slice %21 {offsets = [3, 0, 0], sizes = [1, 8, 96], strides = [1, 1, 1]} : vector<8x8x96xf32> to vector<1x8x96xf32>
    %237 = vector.shape_cast %236 : vector<1x8x96xf32> to vector<8x96xf32>
    %238 = vector.extract_strided_slice %237 {offsets = [0, 0], sizes = [8, 32], strides = [1, 1]} : vector<8x96xf32> to vector<8x32xf32>
    %239 = vector.extract_strided_slice %235 {offsets = [0, 0], sizes = [8, 32], strides = [1, 1]} : vector<8x96xf32> to vector<8x32xf32>
    %240 = arith.addf %238, %239 : vector<8x32xf32>
    %241 = arith.negf %240 : vector<8x32xf32>
    %242 = math.exp %241 : vector<8x32xf32>
    %cst_46 = arith.constant 1.000000e+00 : f32
    %243 = vector.broadcast %cst_46 : f32 to vector<8x32xf32>
    %244 = arith.addf %243, %242 : vector<8x32xf32>
    %245 = arith.divf %243, %244 : vector<8x32xf32>
    %246 = vector.extract_strided_slice %237 {offsets = [0, 32], sizes = [8, 32], strides = [1, 1]} : vector<8x96xf32> to vector<8x32xf32>
    %247 = vector.extract_strided_slice %235 {offsets = [0, 32], sizes = [8, 32], strides = [1, 1]} : vector<8x96xf32> to vector<8x32xf32>
    %248 = arith.addf %246, %247 : vector<8x32xf32>
    %249 = arith.negf %248 : vector<8x32xf32>
    %250 = math.exp %249 : vector<8x32xf32>
    %cst_47 = arith.constant 1.000000e+00 : f32
    %251 = vector.broadcast %cst_47 : f32 to vector<8x32xf32>
    %252 = arith.addf %251, %250 : vector<8x32xf32>
    %253 = arith.divf %251, %252 : vector<8x32xf32>
    %254 = vector.extract_strided_slice %237 {offsets = [0, 64], sizes = [8, 32], strides = [1, 1]} : vector<8x96xf32> to vector<8x32xf32>
    %255 = vector.extract_strided_slice %235 {offsets = [0, 64], sizes = [8, 32], strides = [1, 1]} : vector<8x96xf32> to vector<8x32xf32>
    %256 = arith.mulf %245, %255 : vector<8x32xf32>
    %257 = arith.addf %254, %256 : vector<8x32xf32>
    %258 = math.tanh %257 : vector<8x32xf32>
    %cst_48 = arith.constant 1.000000e+00 : f32
    %259 = vector.broadcast %cst_48 : f32 to vector<8x32xf32>
    %260 = arith.subf %259, %253 : vector<8x32xf32>
    %261 = arith.mulf %260, %258 : vector<8x32xf32>
    %262 = arith.mulf %253, %197 : vector<8x32xf32>
    %263 = arith.addf %261, %262 : vector<8x32xf32>
    %264 = arith.subf %263, %197 : vector<8x32xf32>
    %265 = vector.broadcast %233 : vector<8x1xf32> to vector<8x32xf32>
    %266 = arith.mulf %265, %264 : vector<8x32xf32>
    %267 = arith.addf %197, %266 : vector<8x32xf32>
    %cst_49 = arith.constant dense<0.000000e+00> : vector<8x96xf32>
    %268 = tpu.matmul %267, %4, %cst_49 {dimension_numbers = #tpu.dot_dimension_numbers<[1], [0], [0], [1], [0, 0, 1, 1], [], []>} : vector<8x32xf32>, vector<32x96xf32>, vector<8x96xf32> -> vector<8x96xf32>
    %269 = arith.addf %268, %7 : vector<8x96xf32>
    %cst_50 = arith.constant dense<0.000000e+00> : vector<8x96xf32>
    %270 = tpu.matmul %231, %12, %cst_50 {dimension_numbers = #tpu.dot_dimension_numbers<[1], [0], [0], [1], [0, 0, 1, 1], [], []>} : vector<8x32xf32>, vector<32x96xf32>, vector<8x96xf32> -> vector<8x96xf32>
    %271 = arith.addf %270, %15 : vector<8x96xf32>
    %272 = vector.extract_strided_slice %269 {offsets = [0, 0], sizes = [8, 32], strides = [1, 1]} : vector<8x96xf32> to vector<8x32xf32>
    %273 = vector.extract_strided_slice %271 {offsets = [0, 0], sizes = [8, 32], strides = [1, 1]} : vector<8x96xf32> to vector<8x32xf32>
    %274 = arith.addf %272, %273 : vector<8x32xf32>
    %275 = arith.negf %274 : vector<8x32xf32>
    %276 = math.exp %275 : vector<8x32xf32>
    %cst_51 = arith.constant 1.000000e+00 : f32
    %277 = vector.broadcast %cst_51 : f32 to vector<8x32xf32>
    %278 = arith.addf %277, %276 : vector<8x32xf32>
    %279 = arith.divf %277, %278 : vector<8x32xf32>
    %280 = vector.extract_strided_slice %269 {offsets = [0, 32], sizes = [8, 32], strides = [1, 1]} : vector<8x96xf32> to vector<8x32xf32>
    %281 = vector.extract_strided_slice %271 {offsets = [0, 32], sizes = [8, 32], strides = [1, 1]} : vector<8x96xf32> to vector<8x32xf32>
    %282 = arith.addf %280, %281 : vector<8x32xf32>
    %283 = arith.negf %282 : vector<8x32xf32>
    %284 = math.exp %283 : vector<8x32xf32>
    %cst_52 = arith.constant 1.000000e+00 : f32
    %285 = vector.broadcast %cst_52 : f32 to vector<8x32xf32>
    %286 = arith.addf %285, %284 : vector<8x32xf32>
    %287 = arith.divf %285, %286 : vector<8x32xf32>
    %288 = vector.extract_strided_slice %269 {offsets = [0, 64], sizes = [8, 32], strides = [1, 1]} : vector<8x96xf32> to vector<8x32xf32>
    %289 = vector.extract_strided_slice %271 {offsets = [0, 64], sizes = [8, 32], strides = [1, 1]} : vector<8x96xf32> to vector<8x32xf32>
    %290 = arith.mulf %279, %289 : vector<8x32xf32>
    %291 = arith.addf %288, %290 : vector<8x32xf32>
    %292 = math.tanh %291 : vector<8x32xf32>
    %cst_53 = arith.constant 1.000000e+00 : f32
    %293 = vector.broadcast %cst_53 : f32 to vector<8x32xf32>
    %294 = arith.subf %293, %287 : vector<8x32xf32>
    %295 = arith.mulf %294, %292 : vector<8x32xf32>
    %296 = arith.mulf %287, %231 : vector<8x32xf32>
    %297 = arith.addf %295, %296 : vector<8x32xf32>
    %298 = arith.subf %297, %231 : vector<8x32xf32>
    %299 = vector.broadcast %233 : vector<8x1xf32> to vector<8x32xf32>
    %300 = arith.mulf %299, %298 : vector<8x32xf32>
    %301 = arith.addf %231, %300 : vector<8x32xf32>
    %302 = vector.extract_strided_slice %0 {offsets = [4, 0, 0], sizes = [1, 8, 1], strides = [1, 1, 1]} : vector<8x8x1xf32> to vector<1x8x1xf32>
    %303 = vector.shape_cast %302 : vector<1x8x1xf32> to vector<8x1xf32>
    %cst_54 = arith.constant dense<0.000000e+00> : vector<8x96xf32>
    %304 = tpu.matmul %267, %8, %cst_54 {dimension_numbers = #tpu.dot_dimension_numbers<[1], [0], [0], [1], [0, 0, 1, 1], [], []>} : vector<8x32xf32>, vector<32x96xf32>, vector<8x96xf32> -> vector<8x96xf32>
    %305 = arith.addf %304, %11 : vector<8x96xf32>
    %306 = vector.extract_strided_slice %21 {offsets = [4, 0, 0], sizes = [1, 8, 96], strides = [1, 1, 1]} : vector<8x8x96xf32> to vector<1x8x96xf32>
    %307 = vector.shape_cast %306 : vector<1x8x96xf32> to vector<8x96xf32>
    %308 = vector.extract_strided_slice %307 {offsets = [0, 0], sizes = [8, 32], strides = [1, 1]} : vector<8x96xf32> to vector<8x32xf32>
    %309 = vector.extract_strided_slice %305 {offsets = [0, 0], sizes = [8, 32], strides = [1, 1]} : vector<8x96xf32> to vector<8x32xf32>
    %310 = arith.addf %308, %309 : vector<8x32xf32>
    %311 = arith.negf %310 : vector<8x32xf32>
    %312 = math.exp %311 : vector<8x32xf32>
    %cst_55 = arith.constant 1.000000e+00 : f32
    %313 = vector.broadcast %cst_55 : f32 to vector<8x32xf32>
    %314 = arith.addf %313, %312 : vector<8x32xf32>
    %315 = arith.divf %313, %314 : vector<8x32xf32>
    %316 = vector.extract_strided_slice %307 {offsets = [0, 32], sizes = [8, 32], strides = [1, 1]} : vector<8x96xf32> to vector<8x32xf32>
    %317 = vector.extract_strided_slice %305 {offsets = [0, 32], sizes = [8, 32], strides = [1, 1]} : vector<8x96xf32> to vector<8x32xf32>
    %318 = arith.addf %316, %317 : vector<8x32xf32>
    %319 = arith.negf %318 : vector<8x32xf32>
    %320 = math.exp %319 : vector<8x32xf32>
    %cst_56 = arith.constant 1.000000e+00 : f32
    %321 = vector.broadcast %cst_56 : f32 to vector<8x32xf32>
    %322 = arith.addf %321, %320 : vector<8x32xf32>
    %323 = arith.divf %321, %322 : vector<8x32xf32>
    %324 = vector.extract_strided_slice %307 {offsets = [0, 64], sizes = [8, 32], strides = [1, 1]} : vector<8x96xf32> to vector<8x32xf32>
    %325 = vector.extract_strided_slice %305 {offsets = [0, 64], sizes = [8, 32], strides = [1, 1]} : vector<8x96xf32> to vector<8x32xf32>
    %326 = arith.mulf %315, %325 : vector<8x32xf32>
    %327 = arith.addf %324, %326 : vector<8x32xf32>
    %328 = math.tanh %327 : vector<8x32xf32>
    %cst_57 = arith.constant 1.000000e+00 : f32
    %329 = vector.broadcast %cst_57 : f32 to vector<8x32xf32>
    %330 = arith.subf %329, %323 : vector<8x32xf32>
    %331 = arith.mulf %330, %328 : vector<8x32xf32>
    %332 = arith.mulf %323, %267 : vector<8x32xf32>
    %333 = arith.addf %331, %332 : vector<8x32xf32>
    %334 = arith.subf %333, %267 : vector<8x32xf32>
    %335 = vector.broadcast %303 : vector<8x1xf32> to vector<8x32xf32>
    %336 = arith.mulf %335, %334 : vector<8x32xf32>
    %337 = arith.addf %267, %336 : vector<8x32xf32>
    %cst_58 = arith.constant dense<0.000000e+00> : vector<8x96xf32>
    %338 = tpu.matmul %337, %4, %cst_58 {dimension_numbers = #tpu.dot_dimension_numbers<[1], [0], [0], [1], [0, 0, 1, 1], [], []>} : vector<8x32xf32>, vector<32x96xf32>, vector<8x96xf32> -> vector<8x96xf32>
    %339 = arith.addf %338, %7 : vector<8x96xf32>
    %cst_59 = arith.constant dense<0.000000e+00> : vector<8x96xf32>
    %340 = tpu.matmul %301, %12, %cst_59 {dimension_numbers = #tpu.dot_dimension_numbers<[1], [0], [0], [1], [0, 0, 1, 1], [], []>} : vector<8x32xf32>, vector<32x96xf32>, vector<8x96xf32> -> vector<8x96xf32>
    %341 = arith.addf %340, %15 : vector<8x96xf32>
    %342 = vector.extract_strided_slice %339 {offsets = [0, 0], sizes = [8, 32], strides = [1, 1]} : vector<8x96xf32> to vector<8x32xf32>
    %343 = vector.extract_strided_slice %341 {offsets = [0, 0], sizes = [8, 32], strides = [1, 1]} : vector<8x96xf32> to vector<8x32xf32>
    %344 = arith.addf %342, %343 : vector<8x32xf32>
    %345 = arith.negf %344 : vector<8x32xf32>
    %346 = math.exp %345 : vector<8x32xf32>
    %cst_60 = arith.constant 1.000000e+00 : f32
    %347 = vector.broadcast %cst_60 : f32 to vector<8x32xf32>
    %348 = arith.addf %347, %346 : vector<8x32xf32>
    %349 = arith.divf %347, %348 : vector<8x32xf32>
    %350 = vector.extract_strided_slice %339 {offsets = [0, 32], sizes = [8, 32], strides = [1, 1]} : vector<8x96xf32> to vector<8x32xf32>
    %351 = vector.extract_strided_slice %341 {offsets = [0, 32], sizes = [8, 32], strides = [1, 1]} : vector<8x96xf32> to vector<8x32xf32>
    %352 = arith.addf %350, %351 : vector<8x32xf32>
    %353 = arith.negf %352 : vector<8x32xf32>
    %354 = math.exp %353 : vector<8x32xf32>
    %cst_61 = arith.constant 1.000000e+00 : f32
    %355 = vector.broadcast %cst_61 : f32 to vector<8x32xf32>
    %356 = arith.addf %355, %354 : vector<8x32xf32>
    %357 = arith.divf %355, %356 : vector<8x32xf32>
    %358 = vector.extract_strided_slice %339 {offsets = [0, 64], sizes = [8, 32], strides = [1, 1]} : vector<8x96xf32> to vector<8x32xf32>
    %359 = vector.extract_strided_slice %341 {offsets = [0, 64], sizes = [8, 32], strides = [1, 1]} : vector<8x96xf32> to vector<8x32xf32>
    %360 = arith.mulf %349, %359 : vector<8x32xf32>
    %361 = arith.addf %358, %360 : vector<8x32xf32>
    %362 = math.tanh %361 : vector<8x32xf32>
    %cst_62 = arith.constant 1.000000e+00 : f32
    %363 = vector.broadcast %cst_62 : f32 to vector<8x32xf32>
    %364 = arith.subf %363, %357 : vector<8x32xf32>
    %365 = arith.mulf %364, %362 : vector<8x32xf32>
    %366 = arith.mulf %357, %301 : vector<8x32xf32>
    %367 = arith.addf %365, %366 : vector<8x32xf32>
    %368 = arith.subf %367, %301 : vector<8x32xf32>
    %369 = vector.broadcast %303 : vector<8x1xf32> to vector<8x32xf32>
    %370 = arith.mulf %369, %368 : vector<8x32xf32>
    %371 = arith.addf %301, %370 : vector<8x32xf32>
    %372 = vector.extract_strided_slice %0 {offsets = [5, 0, 0], sizes = [1, 8, 1], strides = [1, 1, 1]} : vector<8x8x1xf32> to vector<1x8x1xf32>
    %373 = vector.shape_cast %372 : vector<1x8x1xf32> to vector<8x1xf32>
    %cst_63 = arith.constant dense<0.000000e+00> : vector<8x96xf32>
    %374 = tpu.matmul %337, %8, %cst_63 {dimension_numbers = #tpu.dot_dimension_numbers<[1], [0], [0], [1], [0, 0, 1, 1], [], []>} : vector<8x32xf32>, vector<32x96xf32>, vector<8x96xf32> -> vector<8x96xf32>
    %375 = arith.addf %374, %11 : vector<8x96xf32>
    %376 = vector.extract_strided_slice %21 {offsets = [5, 0, 0], sizes = [1, 8, 96], strides = [1, 1, 1]} : vector<8x8x96xf32> to vector<1x8x96xf32>
    %377 = vector.shape_cast %376 : vector<1x8x96xf32> to vector<8x96xf32>
    %378 = vector.extract_strided_slice %377 {offsets = [0, 0], sizes = [8, 32], strides = [1, 1]} : vector<8x96xf32> to vector<8x32xf32>
    %379 = vector.extract_strided_slice %375 {offsets = [0, 0], sizes = [8, 32], strides = [1, 1]} : vector<8x96xf32> to vector<8x32xf32>
    %380 = arith.addf %378, %379 : vector<8x32xf32>
    %381 = arith.negf %380 : vector<8x32xf32>
    %382 = math.exp %381 : vector<8x32xf32>
    %cst_64 = arith.constant 1.000000e+00 : f32
    %383 = vector.broadcast %cst_64 : f32 to vector<8x32xf32>
    %384 = arith.addf %383, %382 : vector<8x32xf32>
    %385 = arith.divf %383, %384 : vector<8x32xf32>
    %386 = vector.extract_strided_slice %377 {offsets = [0, 32], sizes = [8, 32], strides = [1, 1]} : vector<8x96xf32> to vector<8x32xf32>
    %387 = vector.extract_strided_slice %375 {offsets = [0, 32], sizes = [8, 32], strides = [1, 1]} : vector<8x96xf32> to vector<8x32xf32>
    %388 = arith.addf %386, %387 : vector<8x32xf32>
    %389 = arith.negf %388 : vector<8x32xf32>
    %390 = math.exp %389 : vector<8x32xf32>
    %cst_65 = arith.constant 1.000000e+00 : f32
    %391 = vector.broadcast %cst_65 : f32 to vector<8x32xf32>
    %392 = arith.addf %391, %390 : vector<8x32xf32>
    %393 = arith.divf %391, %392 : vector<8x32xf32>
    %394 = vector.extract_strided_slice %377 {offsets = [0, 64], sizes = [8, 32], strides = [1, 1]} : vector<8x96xf32> to vector<8x32xf32>
    %395 = vector.extract_strided_slice %375 {offsets = [0, 64], sizes = [8, 32], strides = [1, 1]} : vector<8x96xf32> to vector<8x32xf32>
    %396 = arith.mulf %385, %395 : vector<8x32xf32>
    %397 = arith.addf %394, %396 : vector<8x32xf32>
    %398 = math.tanh %397 : vector<8x32xf32>
    %cst_66 = arith.constant 1.000000e+00 : f32
    %399 = vector.broadcast %cst_66 : f32 to vector<8x32xf32>
    %400 = arith.subf %399, %393 : vector<8x32xf32>
    %401 = arith.mulf %400, %398 : vector<8x32xf32>
    %402 = arith.mulf %393, %337 : vector<8x32xf32>
    %403 = arith.addf %401, %402 : vector<8x32xf32>
    %404 = arith.subf %403, %337 : vector<8x32xf32>
    %405 = vector.broadcast %373 : vector<8x1xf32> to vector<8x32xf32>
    %406 = arith.mulf %405, %404 : vector<8x32xf32>
    %407 = arith.addf %337, %406 : vector<8x32xf32>
    %cst_67 = arith.constant dense<0.000000e+00> : vector<8x96xf32>
    %408 = tpu.matmul %407, %4, %cst_67 {dimension_numbers = #tpu.dot_dimension_numbers<[1], [0], [0], [1], [0, 0, 1, 1], [], []>} : vector<8x32xf32>, vector<32x96xf32>, vector<8x96xf32> -> vector<8x96xf32>
    %409 = arith.addf %408, %7 : vector<8x96xf32>
    %cst_68 = arith.constant dense<0.000000e+00> : vector<8x96xf32>
    %410 = tpu.matmul %371, %12, %cst_68 {dimension_numbers = #tpu.dot_dimension_numbers<[1], [0], [0], [1], [0, 0, 1, 1], [], []>} : vector<8x32xf32>, vector<32x96xf32>, vector<8x96xf32> -> vector<8x96xf32>
    %411 = arith.addf %410, %15 : vector<8x96xf32>
    %412 = vector.extract_strided_slice %409 {offsets = [0, 0], sizes = [8, 32], strides = [1, 1]} : vector<8x96xf32> to vector<8x32xf32>
    %413 = vector.extract_strided_slice %411 {offsets = [0, 0], sizes = [8, 32], strides = [1, 1]} : vector<8x96xf32> to vector<8x32xf32>
    %414 = arith.addf %412, %413 : vector<8x32xf32>
    %415 = arith.negf %414 : vector<8x32xf32>
    %416 = math.exp %415 : vector<8x32xf32>
    %cst_69 = arith.constant 1.000000e+00 : f32
    %417 = vector.broadcast %cst_69 : f32 to vector<8x32xf32>
    %418 = arith.addf %417, %416 : vector<8x32xf32>
    %419 = arith.divf %417, %418 : vector<8x32xf32>
    %420 = vector.extract_strided_slice %409 {offsets = [0, 32], sizes = [8, 32], strides = [1, 1]} : vector<8x96xf32> to vector<8x32xf32>
    %421 = vector.extract_strided_slice %411 {offsets = [0, 32], sizes = [8, 32], strides = [1, 1]} : vector<8x96xf32> to vector<8x32xf32>
    %422 = arith.addf %420, %421 : vector<8x32xf32>
    %423 = arith.negf %422 : vector<8x32xf32>
    %424 = math.exp %423 : vector<8x32xf32>
    %cst_70 = arith.constant 1.000000e+00 : f32
    %425 = vector.broadcast %cst_70 : f32 to vector<8x32xf32>
    %426 = arith.addf %425, %424 : vector<8x32xf32>
    %427 = arith.divf %425, %426 : vector<8x32xf32>
    %428 = vector.extract_strided_slice %409 {offsets = [0, 64], sizes = [8, 32], strides = [1, 1]} : vector<8x96xf32> to vector<8x32xf32>
    %429 = vector.extract_strided_slice %411 {offsets = [0, 64], sizes = [8, 32], strides = [1, 1]} : vector<8x96xf32> to vector<8x32xf32>
    %430 = arith.mulf %419, %429 : vector<8x32xf32>
    %431 = arith.addf %428, %430 : vector<8x32xf32>
    %432 = math.tanh %431 : vector<8x32xf32>
    %cst_71 = arith.constant 1.000000e+00 : f32
    %433 = vector.broadcast %cst_71 : f32 to vector<8x32xf32>
    %434 = arith.subf %433, %427 : vector<8x32xf32>
    %435 = arith.mulf %434, %432 : vector<8x32xf32>
    %436 = arith.mulf %427, %371 : vector<8x32xf32>
    %437 = arith.addf %435, %436 : vector<8x32xf32>
    %438 = arith.subf %437, %371 : vector<8x32xf32>
    %439 = vector.broadcast %373 : vector<8x1xf32> to vector<8x32xf32>
    %440 = arith.mulf %439, %438 : vector<8x32xf32>
    %441 = arith.addf %371, %440 : vector<8x32xf32>
    %442 = vector.extract_strided_slice %0 {offsets = [6, 0, 0], sizes = [1, 8, 1], strides = [1, 1, 1]} : vector<8x8x1xf32> to vector<1x8x1xf32>
    %443 = vector.shape_cast %442 : vector<1x8x1xf32> to vector<8x1xf32>
    %cst_72 = arith.constant dense<0.000000e+00> : vector<8x96xf32>
    %444 = tpu.matmul %407, %8, %cst_72 {dimension_numbers = #tpu.dot_dimension_numbers<[1], [0], [0], [1], [0, 0, 1, 1], [], []>} : vector<8x32xf32>, vector<32x96xf32>, vector<8x96xf32> -> vector<8x96xf32>
    %445 = arith.addf %444, %11 : vector<8x96xf32>
    %446 = vector.extract_strided_slice %21 {offsets = [6, 0, 0], sizes = [1, 8, 96], strides = [1, 1, 1]} : vector<8x8x96xf32> to vector<1x8x96xf32>
    %447 = vector.shape_cast %446 : vector<1x8x96xf32> to vector<8x96xf32>
    %448 = vector.extract_strided_slice %447 {offsets = [0, 0], sizes = [8, 32], strides = [1, 1]} : vector<8x96xf32> to vector<8x32xf32>
    %449 = vector.extract_strided_slice %445 {offsets = [0, 0], sizes = [8, 32], strides = [1, 1]} : vector<8x96xf32> to vector<8x32xf32>
    %450 = arith.addf %448, %449 : vector<8x32xf32>
    %451 = arith.negf %450 : vector<8x32xf32>
    %452 = math.exp %451 : vector<8x32xf32>
    %cst_73 = arith.constant 1.000000e+00 : f32
    %453 = vector.broadcast %cst_73 : f32 to vector<8x32xf32>
    %454 = arith.addf %453, %452 : vector<8x32xf32>
    %455 = arith.divf %453, %454 : vector<8x32xf32>
    %456 = vector.extract_strided_slice %447 {offsets = [0, 32], sizes = [8, 32], strides = [1, 1]} : vector<8x96xf32> to vector<8x32xf32>
    %457 = vector.extract_strided_slice %445 {offsets = [0, 32], sizes = [8, 32], strides = [1, 1]} : vector<8x96xf32> to vector<8x32xf32>
    %458 = arith.addf %456, %457 : vector<8x32xf32>
    %459 = arith.negf %458 : vector<8x32xf32>
    %460 = math.exp %459 : vector<8x32xf32>
    %cst_74 = arith.constant 1.000000e+00 : f32
    %461 = vector.broadcast %cst_74 : f32 to vector<8x32xf32>
    %462 = arith.addf %461, %460 : vector<8x32xf32>
    %463 = arith.divf %461, %462 : vector<8x32xf32>
    %464 = vector.extract_strided_slice %447 {offsets = [0, 64], sizes = [8, 32], strides = [1, 1]} : vector<8x96xf32> to vector<8x32xf32>
    %465 = vector.extract_strided_slice %445 {offsets = [0, 64], sizes = [8, 32], strides = [1, 1]} : vector<8x96xf32> to vector<8x32xf32>
    %466 = arith.mulf %455, %465 : vector<8x32xf32>
    %467 = arith.addf %464, %466 : vector<8x32xf32>
    %468 = math.tanh %467 : vector<8x32xf32>
    %cst_75 = arith.constant 1.000000e+00 : f32
    %469 = vector.broadcast %cst_75 : f32 to vector<8x32xf32>
    %470 = arith.subf %469, %463 : vector<8x32xf32>
    %471 = arith.mulf %470, %468 : vector<8x32xf32>
    %472 = arith.mulf %463, %407 : vector<8x32xf32>
    %473 = arith.addf %471, %472 : vector<8x32xf32>
    %474 = arith.subf %473, %407 : vector<8x32xf32>
    %475 = vector.broadcast %443 : vector<8x1xf32> to vector<8x32xf32>
    %476 = arith.mulf %475, %474 : vector<8x32xf32>
    %477 = arith.addf %407, %476 : vector<8x32xf32>
    %cst_76 = arith.constant dense<0.000000e+00> : vector<8x96xf32>
    %478 = tpu.matmul %477, %4, %cst_76 {dimension_numbers = #tpu.dot_dimension_numbers<[1], [0], [0], [1], [0, 0, 1, 1], [], []>} : vector<8x32xf32>, vector<32x96xf32>, vector<8x96xf32> -> vector<8x96xf32>
    %479 = arith.addf %478, %7 : vector<8x96xf32>
    %cst_77 = arith.constant dense<0.000000e+00> : vector<8x96xf32>
    %480 = tpu.matmul %441, %12, %cst_77 {dimension_numbers = #tpu.dot_dimension_numbers<[1], [0], [0], [1], [0, 0, 1, 1], [], []>} : vector<8x32xf32>, vector<32x96xf32>, vector<8x96xf32> -> vector<8x96xf32>
    %481 = arith.addf %480, %15 : vector<8x96xf32>
    %482 = vector.extract_strided_slice %479 {offsets = [0, 0], sizes = [8, 32], strides = [1, 1]} : vector<8x96xf32> to vector<8x32xf32>
    %483 = vector.extract_strided_slice %481 {offsets = [0, 0], sizes = [8, 32], strides = [1, 1]} : vector<8x96xf32> to vector<8x32xf32>
    %484 = arith.addf %482, %483 : vector<8x32xf32>
    %485 = arith.negf %484 : vector<8x32xf32>
    %486 = math.exp %485 : vector<8x32xf32>
    %cst_78 = arith.constant 1.000000e+00 : f32
    %487 = vector.broadcast %cst_78 : f32 to vector<8x32xf32>
    %488 = arith.addf %487, %486 : vector<8x32xf32>
    %489 = arith.divf %487, %488 : vector<8x32xf32>
    %490 = vector.extract_strided_slice %479 {offsets = [0, 32], sizes = [8, 32], strides = [1, 1]} : vector<8x96xf32> to vector<8x32xf32>
    %491 = vector.extract_strided_slice %481 {offsets = [0, 32], sizes = [8, 32], strides = [1, 1]} : vector<8x96xf32> to vector<8x32xf32>
    %492 = arith.addf %490, %491 : vector<8x32xf32>
    %493 = arith.negf %492 : vector<8x32xf32>
    %494 = math.exp %493 : vector<8x32xf32>
    %cst_79 = arith.constant 1.000000e+00 : f32
    %495 = vector.broadcast %cst_79 : f32 to vector<8x32xf32>
    %496 = arith.addf %495, %494 : vector<8x32xf32>
    %497 = arith.divf %495, %496 : vector<8x32xf32>
    %498 = vector.extract_strided_slice %479 {offsets = [0, 64], sizes = [8, 32], strides = [1, 1]} : vector<8x96xf32> to vector<8x32xf32>
    %499 = vector.extract_strided_slice %481 {offsets = [0, 64], sizes = [8, 32], strides = [1, 1]} : vector<8x96xf32> to vector<8x32xf32>
    %500 = arith.mulf %489, %499 : vector<8x32xf32>
    %501 = arith.addf %498, %500 : vector<8x32xf32>
    %502 = math.tanh %501 : vector<8x32xf32>
    %cst_80 = arith.constant 1.000000e+00 : f32
    %503 = vector.broadcast %cst_80 : f32 to vector<8x32xf32>
    %504 = arith.subf %503, %497 : vector<8x32xf32>
    %505 = arith.mulf %504, %502 : vector<8x32xf32>
    %506 = arith.mulf %497, %441 : vector<8x32xf32>
    %507 = arith.addf %505, %506 : vector<8x32xf32>
    %508 = arith.subf %507, %441 : vector<8x32xf32>
    %509 = vector.broadcast %443 : vector<8x1xf32> to vector<8x32xf32>
    %510 = arith.mulf %509, %508 : vector<8x32xf32>
    %511 = arith.addf %441, %510 : vector<8x32xf32>
    %512 = vector.extract_strided_slice %0 {offsets = [7, 0, 0], sizes = [1, 8, 1], strides = [1, 1, 1]} : vector<8x8x1xf32> to vector<1x8x1xf32>
    %513 = vector.shape_cast %512 : vector<1x8x1xf32> to vector<8x1xf32>
    %cst_81 = arith.constant dense<0.000000e+00> : vector<8x96xf32>
    %514 = tpu.matmul %477, %8, %cst_81 {dimension_numbers = #tpu.dot_dimension_numbers<[1], [0], [0], [1], [0, 0, 1, 1], [], []>} : vector<8x32xf32>, vector<32x96xf32>, vector<8x96xf32> -> vector<8x96xf32>
    %515 = arith.addf %514, %11 : vector<8x96xf32>
    %516 = vector.extract_strided_slice %21 {offsets = [7, 0, 0], sizes = [1, 8, 96], strides = [1, 1, 1]} : vector<8x8x96xf32> to vector<1x8x96xf32>
    %517 = vector.shape_cast %516 : vector<1x8x96xf32> to vector<8x96xf32>
    %518 = vector.extract_strided_slice %517 {offsets = [0, 0], sizes = [8, 32], strides = [1, 1]} : vector<8x96xf32> to vector<8x32xf32>
    %519 = vector.extract_strided_slice %515 {offsets = [0, 0], sizes = [8, 32], strides = [1, 1]} : vector<8x96xf32> to vector<8x32xf32>
    %520 = arith.addf %518, %519 : vector<8x32xf32>
    %521 = arith.negf %520 : vector<8x32xf32>
    %522 = math.exp %521 : vector<8x32xf32>
    %cst_82 = arith.constant 1.000000e+00 : f32
    %523 = vector.broadcast %cst_82 : f32 to vector<8x32xf32>
    %524 = arith.addf %523, %522 : vector<8x32xf32>
    %525 = arith.divf %523, %524 : vector<8x32xf32>
    %526 = vector.extract_strided_slice %517 {offsets = [0, 32], sizes = [8, 32], strides = [1, 1]} : vector<8x96xf32> to vector<8x32xf32>
    %527 = vector.extract_strided_slice %515 {offsets = [0, 32], sizes = [8, 32], strides = [1, 1]} : vector<8x96xf32> to vector<8x32xf32>
    %528 = arith.addf %526, %527 : vector<8x32xf32>
    %529 = arith.negf %528 : vector<8x32xf32>
    %530 = math.exp %529 : vector<8x32xf32>
    %cst_83 = arith.constant 1.000000e+00 : f32
    %531 = vector.broadcast %cst_83 : f32 to vector<8x32xf32>
    %532 = arith.addf %531, %530 : vector<8x32xf32>
    %533 = arith.divf %531, %532 : vector<8x32xf32>
    %534 = vector.extract_strided_slice %517 {offsets = [0, 64], sizes = [8, 32], strides = [1, 1]} : vector<8x96xf32> to vector<8x32xf32>
    %535 = vector.extract_strided_slice %515 {offsets = [0, 64], sizes = [8, 32], strides = [1, 1]} : vector<8x96xf32> to vector<8x32xf32>
    %536 = arith.mulf %525, %535 : vector<8x32xf32>
    %537 = arith.addf %534, %536 : vector<8x32xf32>
    %538 = math.tanh %537 : vector<8x32xf32>
    %cst_84 = arith.constant 1.000000e+00 : f32
    %539 = vector.broadcast %cst_84 : f32 to vector<8x32xf32>
    %540 = arith.subf %539, %533 : vector<8x32xf32>
    %541 = arith.mulf %540, %538 : vector<8x32xf32>
    %542 = arith.mulf %533, %477 : vector<8x32xf32>
    %543 = arith.addf %541, %542 : vector<8x32xf32>
    %544 = arith.subf %543, %477 : vector<8x32xf32>
    %545 = vector.broadcast %513 : vector<8x1xf32> to vector<8x32xf32>
    %546 = arith.mulf %545, %544 : vector<8x32xf32>
    %547 = arith.addf %477, %546 : vector<8x32xf32>
    %cst_85 = arith.constant dense<0.000000e+00> : vector<8x96xf32>
    %548 = tpu.matmul %547, %4, %cst_85 {dimension_numbers = #tpu.dot_dimension_numbers<[1], [0], [0], [1], [0, 0, 1, 1], [], []>} : vector<8x32xf32>, vector<32x96xf32>, vector<8x96xf32> -> vector<8x96xf32>
    %549 = arith.addf %548, %7 : vector<8x96xf32>
    %cst_86 = arith.constant dense<0.000000e+00> : vector<8x96xf32>
    %550 = tpu.matmul %511, %12, %cst_86 {dimension_numbers = #tpu.dot_dimension_numbers<[1], [0], [0], [1], [0, 0, 1, 1], [], []>} : vector<8x32xf32>, vector<32x96xf32>, vector<8x96xf32> -> vector<8x96xf32>
    %551 = arith.addf %550, %15 : vector<8x96xf32>
    %552 = vector.extract_strided_slice %549 {offsets = [0, 0], sizes = [8, 32], strides = [1, 1]} : vector<8x96xf32> to vector<8x32xf32>
    %553 = vector.extract_strided_slice %551 {offsets = [0, 0], sizes = [8, 32], strides = [1, 1]} : vector<8x96xf32> to vector<8x32xf32>
    %554 = arith.addf %552, %553 : vector<8x32xf32>
    %555 = arith.negf %554 : vector<8x32xf32>
    %556 = math.exp %555 : vector<8x32xf32>
    %cst_87 = arith.constant 1.000000e+00 : f32
    %557 = vector.broadcast %cst_87 : f32 to vector<8x32xf32>
    %558 = arith.addf %557, %556 : vector<8x32xf32>
    %559 = arith.divf %557, %558 : vector<8x32xf32>
    %560 = vector.extract_strided_slice %549 {offsets = [0, 32], sizes = [8, 32], strides = [1, 1]} : vector<8x96xf32> to vector<8x32xf32>
    %561 = vector.extract_strided_slice %551 {offsets = [0, 32], sizes = [8, 32], strides = [1, 1]} : vector<8x96xf32> to vector<8x32xf32>
    %562 = arith.addf %560, %561 : vector<8x32xf32>
    %563 = arith.negf %562 : vector<8x32xf32>
    %564 = math.exp %563 : vector<8x32xf32>
    %cst_88 = arith.constant 1.000000e+00 : f32
    %565 = vector.broadcast %cst_88 : f32 to vector<8x32xf32>
    %566 = arith.addf %565, %564 : vector<8x32xf32>
    %567 = arith.divf %565, %566 : vector<8x32xf32>
    %568 = vector.extract_strided_slice %549 {offsets = [0, 64], sizes = [8, 32], strides = [1, 1]} : vector<8x96xf32> to vector<8x32xf32>
    %569 = vector.extract_strided_slice %551 {offsets = [0, 64], sizes = [8, 32], strides = [1, 1]} : vector<8x96xf32> to vector<8x32xf32>
    %570 = arith.mulf %559, %569 : vector<8x32xf32>
    %571 = arith.addf %568, %570 : vector<8x32xf32>
    %572 = math.tanh %571 : vector<8x32xf32>
    %cst_89 = arith.constant 1.000000e+00 : f32
    %573 = vector.broadcast %cst_89 : f32 to vector<8x32xf32>
    %574 = arith.subf %573, %567 : vector<8x32xf32>
    %575 = arith.mulf %574, %572 : vector<8x32xf32>
    %576 = arith.mulf %567, %511 : vector<8x32xf32>
    %577 = arith.addf %575, %576 : vector<8x32xf32>
    %578 = arith.subf %577, %511 : vector<8x32xf32>
    %579 = vector.broadcast %513 : vector<8x1xf32> to vector<8x32xf32>
    %580 = arith.mulf %579, %578 : vector<8x32xf32>
    %581 = arith.addf %511, %580 : vector<8x32xf32>
    %582 = tpu.concatenate %547, %581 in 1 : vector<8x32xf32>, vector<8x32xf32> -> vector<8x64xf32>
    %c0_90 = arith.constant 0 : index
    %c0_91 = arith.constant 0 : index
    %583 = vector.load %arg8[%c0_90, %c0_91] : memref<280x32xf32, #tpu.memory_space<vmem>>, vector<64x32xf32>
    %c1_92 = arith.constant 1 : index
    %c0_93 = arith.constant 0 : index
    %584 = vector.load %arg9[%c1_92, %c0_93] : memref<10x64xf32, #tpu.memory_space<vmem>>, vector<1x32xf32>
    %cst_94 = arith.constant dense<0.000000e+00> : vector<8x32xf32>
    %585 = tpu.matmul %582, %583, %cst_94 {dimension_numbers = #tpu.dot_dimension_numbers<[1], [0], [0], [1], [0, 0, 1, 1], [], []>} : vector<8x64xf32>, vector<64x32xf32>, vector<8x32xf32> -> vector<8x32xf32>
    %586 = vector.broadcast %584 : vector<1x32xf32> to vector<8x32xf32>
    %587 = arith.addf %585, %586 : vector<8x32xf32>
    %588 = vector.extract_strided_slice %587 {offsets = [0, 0], sizes = [8, 16], strides = [1, 1]} : vector<8x32xf32> to vector<8x16xf32>
    %589 = vector.extract_strided_slice %587 {offsets = [0, 16], sizes = [8, 16], strides = [1, 1]} : vector<8x32xf32> to vector<8x16xf32>
    %c0_95 = arith.constant 0 : index
    %c0_96 = arith.constant 0 : index
    %590 = vector.load %arg3[%c0_95, %c0_96] : memref<8x8xf32, #tpu.memory_space<vmem>>, vector<8x8xf32>
    %c64 = arith.constant 64 : index
    %c0_97 = arith.constant 0 : index
    %591 = vector.load %arg8[%c64, %c0_97] : memref<280x32xf32, #tpu.memory_space<vmem>>, vector<8x32xf32>
    %c2 = arith.constant 2 : index
    %c0_98 = arith.constant 0 : index
    %592 = vector.load %arg9[%c2, %c0_98] : memref<10x64xf32, #tpu.memory_space<vmem>>, vector<1x32xf32>
    %cst_99 = arith.constant dense<0.000000e+00> : vector<8x32xf32>
    %593 = tpu.matmul %590, %591, %cst_99 {dimension_numbers = #tpu.dot_dimension_numbers<[1], [0], [0], [1], [0, 0, 1, 1], [], []>} : vector<8x8xf32>, vector<8x32xf32>, vector<8x32xf32> -> vector<8x32xf32>
    %594 = vector.broadcast %592 : vector<1x32xf32> to vector<8x32xf32>
    %595 = arith.addf %593, %594 : vector<8x32xf32>
    %596 = arith.negf %595 : vector<8x32xf32>
    %597 = math.exp %596 : vector<8x32xf32>
    %cst_100 = arith.constant 1.000000e+00 : f32
    %598 = vector.broadcast %cst_100 : f32 to vector<8x32xf32>
    %599 = arith.addf %598, %597 : vector<8x32xf32>
    %600 = arith.divf %598, %599 : vector<8x32xf32>
    %601 = arith.mulf %595, %600 : vector<8x32xf32>
    %c72 = arith.constant 72 : index
    %c0_101 = arith.constant 0 : index
    %602 = vector.load %arg8[%c72, %c0_101] : memref<280x32xf32, #tpu.memory_space<vmem>>, vector<32x32xf32>
    %c3 = arith.constant 3 : index
    %c0_102 = arith.constant 0 : index
    %603 = vector.load %arg9[%c3, %c0_102] : memref<10x64xf32, #tpu.memory_space<vmem>>, vector<1x32xf32>
    %cst_103 = arith.constant dense<0.000000e+00> : vector<8x32xf32>
    %604 = tpu.matmul %601, %602, %cst_103 {dimension_numbers = #tpu.dot_dimension_numbers<[1], [0], [0], [1], [0, 0, 1, 1], [], []>} : vector<8x32xf32>, vector<32x32xf32>, vector<8x32xf32> -> vector<8x32xf32>
    %605 = vector.broadcast %603 : vector<1x32xf32> to vector<8x32xf32>
    %606 = arith.addf %604, %605 : vector<8x32xf32>
    %607 = arith.negf %606 : vector<8x32xf32>
    %608 = math.exp %607 : vector<8x32xf32>
    %cst_104 = arith.constant 1.000000e+00 : f32
    %609 = vector.broadcast %cst_104 : f32 to vector<8x32xf32>
    %610 = arith.addf %609, %608 : vector<8x32xf32>
    %611 = arith.divf %609, %610 : vector<8x32xf32>
    %612 = arith.mulf %606, %611 : vector<8x32xf32>
    %c104 = arith.constant 104 : index
    %c0_105 = arith.constant 0 : index
    %613 = vector.load %arg8[%c104, %c0_105] : memref<280x32xf32, #tpu.memory_space<vmem>>, vector<32x32xf32>
    %c4_106 = arith.constant 4 : index
    %c0_107 = arith.constant 0 : index
    %614 = vector.load %arg9[%c4_106, %c0_107] : memref<10x64xf32, #tpu.memory_space<vmem>>, vector<1x32xf32>
    %cst_108 = arith.constant dense<0.000000e+00> : vector<8x32xf32>
    %615 = tpu.matmul %612, %613, %cst_108 {dimension_numbers = #tpu.dot_dimension_numbers<[1], [0], [0], [1], [0, 0, 1, 1], [], []>} : vector<8x32xf32>, vector<32x32xf32>, vector<8x32xf32> -> vector<8x32xf32>
    %616 = vector.broadcast %614 : vector<1x32xf32> to vector<8x32xf32>
    %617 = arith.addf %615, %616 : vector<8x32xf32>
    %618 = vector.extract_strided_slice %617 {offsets = [0, 0], sizes = [8, 16], strides = [1, 1]} : vector<8x32xf32> to vector<8x16xf32>
    %619 = vector.extract_strided_slice %617 {offsets = [0, 16], sizes = [8, 16], strides = [1, 1]} : vector<8x32xf32> to vector<8x16xf32>
    %620 = math.exp %589 : vector<8x16xf32>
    %cst_109 = arith.constant 9.99999993E-9 : f32
    %621 = vector.broadcast %cst_109 : f32 to vector<8x16xf32>
    %622 = arith.addf %620, %621 : vector<8x16xf32>
    %cst_110 = arith.constant 1.000000e+00 : f32
    %623 = vector.broadcast %cst_110 : f32 to vector<8x16xf32>
    %624 = arith.divf %623, %622 : vector<8x16xf32>
    %625 = math.exp %619 : vector<8x16xf32>
    %cst_111 = arith.constant 9.99999993E-9 : f32
    %626 = vector.broadcast %cst_111 : f32 to vector<8x16xf32>
    %627 = arith.addf %625, %626 : vector<8x16xf32>
    %cst_112 = arith.constant 1.000000e+00 : f32
    %628 = vector.broadcast %cst_112 : f32 to vector<8x16xf32>
    %629 = arith.divf %628, %627 : vector<8x16xf32>
    %630 = arith.addf %624, %629 : vector<8x16xf32>
    %cst_113 = arith.constant 1.000000e+00 : f32
    %631 = vector.broadcast %cst_113 : f32 to vector<8x16xf32>
    %632 = arith.addf %630, %631 : vector<8x16xf32>
    %633 = arith.mulf %588, %624 : vector<8x16xf32>
    %634 = arith.mulf %618, %629 : vector<8x16xf32>
    %635 = arith.addf %633, %634 : vector<8x16xf32>
    %636 = arith.divf %635, %632 : vector<8x16xf32>
    %637 = math.log %632 : vector<8x16xf32>
    %cst_114 = arith.constant 0.000000e+00 : f32
    %638 = vector.broadcast %cst_114 : f32 to vector<8x16xf32>
    %639 = arith.subf %638, %637 : vector<8x16xf32>
    %c0_115 = arith.constant 0 : index
    %c0_116 = arith.constant 0 : index
    %640 = vector.load %arg14[%c0_115, %c0_116] : memref<8x16xf32, #tpu.memory_space<vmem>>, vector<8x16xf32>
    tpu.vector_store %arg14[%c0_115, %c0_116], %636 {strides = array<i32>} : memref<8x16xf32, #tpu.memory_space<vmem>>, vector<8x16xf32>,
    %c0_117 = arith.constant 0 : index
    %c0_118 = arith.constant 0 : index
    %641 = vector.load %arg15[%c0_117, %c0_118] : memref<8x16xf32, #tpu.memory_space<vmem>>, vector<8x16xf32>
    tpu.vector_store %arg15[%c0_117, %c0_118], %639 {strides = array<i32>} : memref<8x16xf32, #tpu.memory_space<vmem>>, vector<8x16xf32>,
    %c0_119 = arith.constant 0 : index
    %c0_120 = arith.constant 0 : index
    %642 = vector.load %arg4[%c0_119, %c0_120] : memref<8x16xf32, #tpu.memory_space<vmem>>, vector<8x16xf32>
    %cst_121 = arith.constant 5.000000e-01 : f32
    %643 = vector.broadcast %cst_121 : f32 to vector<8x16xf32>
    %644 = arith.mulf %643, %639 : vector<8x16xf32>
    %645 = math.exp %644 : vector<8x16xf32>
    %646 = arith.mulf %642, %645 : vector<8x16xf32>
    %647 = arith.addf %646, %636 : vector<8x16xf32>
    %c0_122 = arith.constant 0 : index
    %c0_123 = arith.constant 0 : index
    %648 = vector.load %arg13[%c0_122, %c0_123] : memref<8x16xf32, #tpu.memory_space<vmem>>, vector<8x16xf32>
    tpu.vector_store %arg13[%c0_122, %c0_123], %647 {strides = array<i32>} : memref<8x16xf32, #tpu.memory_space<vmem>>, vector<8x16xf32>,
    %c136 = arith.constant 136 : index
    %c0_124 = arith.constant 0 : index
    %649 = vector.load %arg8[%c136, %c0_124] : memref<280x32xf32, #tpu.memory_space<vmem>>, vector<16x32xf32>
    %c5_125 = arith.constant 5 : index
    %c0_126 = arith.constant 0 : index
    %650 = vector.load %arg9[%c5_125, %c0_126] : memref<10x64xf32, #tpu.memory_space<vmem>>, vector<1x32xf32>
    %cst_127 = arith.constant dense<0.000000e+00> : vector<8x32xf32>
    %651 = tpu.matmul %647, %649, %cst_127 {dimension_numbers = #tpu.dot_dimension_numbers<[1], [0], [0], [1], [0, 0, 1, 1], [], []>} : vector<8x16xf32>, vector<16x32xf32>, vector<8x32xf32> -> vector<8x32xf32>
    %652 = vector.broadcast %650 : vector<1x32xf32> to vector<8x32xf32>
    %653 = arith.addf %651, %652 : vector<8x32xf32>
    %654 = arith.negf %653 : vector<8x32xf32>
    %655 = math.exp %654 : vector<8x32xf32>
    %cst_128 = arith.constant 1.000000e+00 : f32
    %656 = vector.broadcast %cst_128 : f32 to vector<8x32xf32>
    %657 = arith.addf %656, %655 : vector<8x32xf32>
    %658 = arith.divf %656, %657 : vector<8x32xf32>
    %659 = arith.mulf %653, %658 : vector<8x32xf32>
    %c152 = arith.constant 152 : index
    %c0_129 = arith.constant 0 : index
    %660 = vector.load %arg8[%c152, %c0_129] : memref<280x32xf32, #tpu.memory_space<vmem>>, vector<32x32xf32>
    %c6 = arith.constant 6 : index
    %c0_130 = arith.constant 0 : index
    %661 = vector.load %arg9[%c6, %c0_130] : memref<10x64xf32, #tpu.memory_space<vmem>>, vector<1x32xf32>
    %cst_131 = arith.constant dense<0.000000e+00> : vector<8x32xf32>
    %662 = tpu.matmul %659, %660, %cst_131 {dimension_numbers = #tpu.dot_dimension_numbers<[1], [0], [0], [1], [0, 0, 1, 1], [], []>} : vector<8x32xf32>, vector<32x32xf32>, vector<8x32xf32> -> vector<8x32xf32>
    %663 = vector.broadcast %661 : vector<1x32xf32> to vector<8x32xf32>
    %664 = arith.addf %662, %663 : vector<8x32xf32>
    %665 = arith.negf %664 : vector<8x32xf32>
    %666 = math.exp %665 : vector<8x32xf32>
    %cst_132 = arith.constant 1.000000e+00 : f32
    %667 = vector.broadcast %cst_132 : f32 to vector<8x32xf32>
    %668 = arith.addf %667, %666 : vector<8x32xf32>
    %669 = arith.divf %667, %668 : vector<8x32xf32>
    %670 = arith.mulf %664, %669 : vector<8x32xf32>
    %c184 = arith.constant 184 : index
    %c0_133 = arith.constant 0 : index
    %671 = vector.load %arg8[%c184, %c0_133] : memref<280x32xf32, #tpu.memory_space<vmem>>, vector<32x32xf32>
    %c7 = arith.constant 7 : index
    %c0_134 = arith.constant 0 : index
    %672 = vector.load %arg9[%c7, %c0_134] : memref<10x64xf32, #tpu.memory_space<vmem>>, vector<1x32xf32>
    %cst_135 = arith.constant dense<0.000000e+00> : vector<8x32xf32>
    %673 = tpu.matmul %670, %671, %cst_135 {dimension_numbers = #tpu.dot_dimension_numbers<[1], [0], [0], [1], [0, 0, 1, 1], [], []>} : vector<8x32xf32>, vector<32x32xf32>, vector<8x32xf32> -> vector<8x32xf32>
    %674 = vector.broadcast %672 : vector<1x32xf32> to vector<8x32xf32>
    %675 = arith.addf %673, %674 : vector<8x32xf32>
    %676 = arith.negf %675 : vector<8x32xf32>
    %677 = math.exp %676 : vector<8x32xf32>
    %cst_136 = arith.constant 1.000000e+00 : f32
    %678 = vector.broadcast %cst_136 : f32 to vector<8x32xf32>
    %679 = arith.addf %678, %677 : vector<8x32xf32>
    %680 = arith.divf %678, %679 : vector<8x32xf32>
    %681 = arith.mulf %675, %680 : vector<8x32xf32>
    %c216 = arith.constant 216 : index
    %c0_137 = arith.constant 0 : index
    %682 = vector.load %arg8[%c216, %c0_137] : memref<280x32xf32, #tpu.memory_space<vmem>>, vector<32x8xf32>
    %c8 = arith.constant 8 : index
    %c0_138 = arith.constant 0 : index
    %683 = vector.load %arg9[%c8, %c0_138] : memref<10x64xf32, #tpu.memory_space<vmem>>, vector<1x8xf32>
    %cst_139 = arith.constant dense<0.000000e+00> : vector<8x8xf32>
    %684 = tpu.matmul %681, %682, %cst_139 {dimension_numbers = #tpu.dot_dimension_numbers<[1], [0], [0], [1], [0, 0, 1, 1], [], []>} : vector<8x32xf32>, vector<32x8xf32>, vector<8x8xf32> -> vector<8x8xf32>
    %685 = vector.broadcast %683 : vector<1x8xf32> to vector<8x8xf32>
    %686 = arith.addf %684, %685 : vector<8x8xf32>
    %687 = arith.negf %686 : vector<8x8xf32>
    %688 = math.exp %687 : vector<8x8xf32>
    %cst_140 = arith.constant 1.000000e+00 : f32
    %689 = vector.broadcast %cst_140 : f32 to vector<8x8xf32>
    %690 = arith.addf %689, %688 : vector<8x8xf32>
    %691 = arith.divf %689, %690 : vector<8x8xf32>
    %c0_141 = arith.constant 0 : index
    %c0_142 = arith.constant 0 : index
    %692 = vector.load %arg12[%c0_141, %c0_142] : memref<8x8xf32, #tpu.memory_space<vmem>>, vector<8x8xf32>
    tpu.vector_store %arg12[%c0_141, %c0_142], %691 {strides = array<i32>} : memref<8x8xf32, #tpu.memory_space<vmem>>, vector<8x8xf32>,
    %c0_143 = arith.constant 0 : index
    %c0_144 = arith.constant 0 : index
    %693 = vector.load %arg10[%c0_143, %c0_144] : memref<16x64xf32, #tpu.memory_space<vmem>>, vector<16x64xf32>
    %c0_145 = arith.constant 0 : index
    %c0_146 = arith.constant 0 : index
    %694 = vector.load %arg9[%c0_145, %c0_146] : memref<10x64xf32, #tpu.memory_space<vmem>>, vector<1x64xf32>
    %cst_147 = arith.constant dense<0.000000e+00> : vector<8x64xf32>
    %695 = tpu.matmul %647, %693, %cst_147 {dimension_numbers = #tpu.dot_dimension_numbers<[1], [0], [0], [1], [0, 0, 1, 1], [], []>} : vector<8x16xf32>, vector<16x64xf32>, vector<8x64xf32> -> vector<8x64xf32>
    %696 = vector.broadcast %694 : vector<1x64xf32> to vector<8x64xf32>
    %697 = arith.addf %695, %696 : vector<8x64xf32>
    %698 = vector.extract_strided_slice %697 {offsets = [0, 0], sizes = [8, 32], strides = [1, 1]} : vector<8x64xf32> to vector<8x32xf32>
    %699 = vector.extract_strided_slice %697 {offsets = [0, 32], sizes = [8, 32], strides = [1, 1]} : vector<8x64xf32> to vector<8x32xf32>
    %c64_148 = arith.constant 64 : index
    %c0_149 = arith.constant 0 : index
    %700 = vector.load %arg5[%c64_148, %c0_149] : memref<128x96xf32, #tpu.memory_space<vmem>>, vector<32x96xf32>
    %c2_150 = arith.constant 2 : index
    %c0_151 = arith.constant 0 : index
    %701 = vector.load %arg7[%c2_150, %c0_151] : memref<8x96xf32, #tpu.memory_space<vmem>>, vector<1x96xf32>
    %c96 = arith.constant 96 : index
    %c0_152 = arith.constant 0 : index
    %702 = vector.load %arg5[%c96, %c0_152] : memref<128x96xf32, #tpu.memory_space<vmem>>, vector<32x96xf32>
    %c3_153 = arith.constant 3 : index
    %c0_154 = arith.constant 0 : index
    %703 = vector.load %arg7[%c3_153, %c0_154] : memref<8x96xf32, #tpu.memory_space<vmem>>, vector<1x96xf32>
    %704 = vector.shape_cast %703 : vector<1x96xf32> to vector<1x96xf32>
    %705 = vector.broadcast %704 : vector<1x96xf32> to vector<8x96xf32>
    %c64_155 = arith.constant 64 : index
    %c0_156 = arith.constant 0 : index
    %706 = vector.load %arg6[%c64_155, %c0_156] : memref<128x96xf32, #tpu.memory_space<vmem>>, vector<32x96xf32>
    %c6_157 = arith.constant 6 : index
    %c0_158 = arith.constant 0 : index
    %707 = vector.load %arg7[%c6_157, %c0_158] : memref<8x96xf32, #tpu.memory_space<vmem>>, vector<1x96xf32>
    %708 = vector.shape_cast %707 : vector<1x96xf32> to vector<1x96xf32>
    %709 = vector.broadcast %708 : vector<1x96xf32> to vector<8x96xf32>
    %c96_159 = arith.constant 96 : index
    %c0_160 = arith.constant 0 : index
    %710 = vector.load %arg6[%c96_159, %c0_160] : memref<128x96xf32, #tpu.memory_space<vmem>>, vector<32x96xf32>
    %c7_161 = arith.constant 7 : index
    %c0_162 = arith.constant 0 : index
    %711 = vector.load %arg7[%c7_161, %c0_162] : memref<8x96xf32, #tpu.memory_space<vmem>>, vector<1x96xf32>
    %712 = vector.shape_cast %711 : vector<1x96xf32> to vector<1x96xf32>
    %713 = vector.broadcast %712 : vector<1x96xf32> to vector<8x96xf32>
    %c0_163 = arith.constant 0 : index
    %c0_164 = arith.constant 0 : index
    %c0_165 = arith.constant 0 : index
    %714 = vector.load %arg1[%c0_163, %c0_164, %c0_165] : memref<8x8x32xf32, #tpu.memory_space<vmem>>, vector<8x8x32xf32>
    %715 = vector.shape_cast %714 : vector<8x8x32xf32> to vector<64x32xf32>
    %cst_166 = arith.constant dense<0.000000e+00> : vector<64x96xf32>
    %716 = tpu.matmul %715, %700, %cst_166 {dimension_numbers = #tpu.dot_dimension_numbers<[1], [0], [0], [1], [0, 0, 1, 1], [], []>} : vector<64x32xf32>, vector<32x96xf32>, vector<64x96xf32> -> vector<64x96xf32>
    %717 = vector.broadcast %701 : vector<1x96xf32> to vector<64x96xf32>
    %718 = arith.addf %716, %717 : vector<64x96xf32>
    %719 = vector.shape_cast %718 : vector<64x96xf32> to vector<8x8x96xf32>
    %720 = vector.extract_strided_slice %0 {offsets = [0, 0, 0], sizes = [1, 8, 1], strides = [1, 1, 1]} : vector<8x8x1xf32> to vector<1x8x1xf32>
    %721 = vector.shape_cast %720 : vector<1x8x1xf32> to vector<8x1xf32>
    %cst_167 = arith.constant dense<0.000000e+00> : vector<8x96xf32>
    %722 = tpu.matmul %698, %706, %cst_167 {dimension_numbers = #tpu.dot_dimension_numbers<[1], [0], [0], [1], [0, 0, 1, 1], [], []>} : vector<8x32xf32>, vector<32x96xf32>, vector<8x96xf32> -> vector<8x96xf32>
    %723 = arith.addf %722, %709 : vector<8x96xf32>
    %724 = vector.extract_strided_slice %719 {offsets = [0, 0, 0], sizes = [1, 8, 96], strides = [1, 1, 1]} : vector<8x8x96xf32> to vector<1x8x96xf32>
    %725 = vector.shape_cast %724 : vector<1x8x96xf32> to vector<8x96xf32>
    %726 = vector.extract_strided_slice %725 {offsets = [0, 0], sizes = [8, 32], strides = [1, 1]} : vector<8x96xf32> to vector<8x32xf32>
    %727 = vector.extract_strided_slice %723 {offsets = [0, 0], sizes = [8, 32], strides = [1, 1]} : vector<8x96xf32> to vector<8x32xf32>
    %728 = arith.addf %726, %727 : vector<8x32xf32>
    %729 = arith.negf %728 : vector<8x32xf32>
    %730 = math.exp %729 : vector<8x32xf32>
    %cst_168 = arith.constant 1.000000e+00 : f32
    %731 = vector.broadcast %cst_168 : f32 to vector<8x32xf32>
    %732 = arith.addf %731, %730 : vector<8x32xf32>
    %733 = arith.divf %731, %732 : vector<8x32xf32>
    %734 = vector.extract_strided_slice %725 {offsets = [0, 32], sizes = [8, 32], strides = [1, 1]} : vector<8x96xf32> to vector<8x32xf32>
    %735 = vector.extract_strided_slice %723 {offsets = [0, 32], sizes = [8, 32], strides = [1, 1]} : vector<8x96xf32> to vector<8x32xf32>
    %736 = arith.addf %734, %735 : vector<8x32xf32>
    %737 = arith.negf %736 : vector<8x32xf32>
    %738 = math.exp %737 : vector<8x32xf32>
    %cst_169 = arith.constant 1.000000e+00 : f32
    %739 = vector.broadcast %cst_169 : f32 to vector<8x32xf32>
    %740 = arith.addf %739, %738 : vector<8x32xf32>
    %741 = arith.divf %739, %740 : vector<8x32xf32>
    %742 = vector.extract_strided_slice %725 {offsets = [0, 64], sizes = [8, 32], strides = [1, 1]} : vector<8x96xf32> to vector<8x32xf32>
    %743 = vector.extract_strided_slice %723 {offsets = [0, 64], sizes = [8, 32], strides = [1, 1]} : vector<8x96xf32> to vector<8x32xf32>
    %744 = arith.mulf %733, %743 : vector<8x32xf32>
    %745 = arith.addf %742, %744 : vector<8x32xf32>
    %746 = math.tanh %745 : vector<8x32xf32>
    %cst_170 = arith.constant 1.000000e+00 : f32
    %747 = vector.broadcast %cst_170 : f32 to vector<8x32xf32>
    %748 = arith.subf %747, %741 : vector<8x32xf32>
    %749 = arith.mulf %748, %746 : vector<8x32xf32>
    %750 = arith.mulf %741, %698 : vector<8x32xf32>
    %751 = arith.addf %749, %750 : vector<8x32xf32>
    %752 = arith.subf %751, %698 : vector<8x32xf32>
    %753 = vector.broadcast %721 : vector<8x1xf32> to vector<8x32xf32>
    %754 = arith.mulf %753, %752 : vector<8x32xf32>
    %755 = arith.addf %698, %754 : vector<8x32xf32>
    %cst_171 = arith.constant dense<0.000000e+00> : vector<8x96xf32>
    %756 = tpu.matmul %755, %702, %cst_171 {dimension_numbers = #tpu.dot_dimension_numbers<[1], [0], [0], [1], [0, 0, 1, 1], [], []>} : vector<8x32xf32>, vector<32x96xf32>, vector<8x96xf32> -> vector<8x96xf32>
    %757 = arith.addf %756, %705 : vector<8x96xf32>
    %cst_172 = arith.constant dense<0.000000e+00> : vector<8x96xf32>
    %758 = tpu.matmul %699, %710, %cst_172 {dimension_numbers = #tpu.dot_dimension_numbers<[1], [0], [0], [1], [0, 0, 1, 1], [], []>} : vector<8x32xf32>, vector<32x96xf32>, vector<8x96xf32> -> vector<8x96xf32>
    %759 = arith.addf %758, %713 : vector<8x96xf32>
    %760 = vector.extract_strided_slice %757 {offsets = [0, 0], sizes = [8, 32], strides = [1, 1]} : vector<8x96xf32> to vector<8x32xf32>
    %761 = vector.extract_strided_slice %759 {offsets = [0, 0], sizes = [8, 32], strides = [1, 1]} : vector<8x96xf32> to vector<8x32xf32>
    %762 = arith.addf %760, %761 : vector<8x32xf32>
    %763 = arith.negf %762 : vector<8x32xf32>
    %764 = math.exp %763 : vector<8x32xf32>
    %cst_173 = arith.constant 1.000000e+00 : f32
    %765 = vector.broadcast %cst_173 : f32 to vector<8x32xf32>
    %766 = arith.addf %765, %764 : vector<8x32xf32>
    %767 = arith.divf %765, %766 : vector<8x32xf32>
    %768 = vector.extract_strided_slice %757 {offsets = [0, 32], sizes = [8, 32], strides = [1, 1]} : vector<8x96xf32> to vector<8x32xf32>
    %769 = vector.extract_strided_slice %759 {offsets = [0, 32], sizes = [8, 32], strides = [1, 1]} : vector<8x96xf32> to vector<8x32xf32>
    %770 = arith.addf %768, %769 : vector<8x32xf32>
    %771 = arith.negf %770 : vector<8x32xf32>
    %772 = math.exp %771 : vector<8x32xf32>
    %cst_174 = arith.constant 1.000000e+00 : f32
    %773 = vector.broadcast %cst_174 : f32 to vector<8x32xf32>
    %774 = arith.addf %773, %772 : vector<8x32xf32>
    %775 = arith.divf %773, %774 : vector<8x32xf32>
    %776 = vector.extract_strided_slice %757 {offsets = [0, 64], sizes = [8, 32], strides = [1, 1]} : vector<8x96xf32> to vector<8x32xf32>
    %777 = vector.extract_strided_slice %759 {offsets = [0, 64], sizes = [8, 32], strides = [1, 1]} : vector<8x96xf32> to vector<8x32xf32>
    %778 = arith.mulf %767, %777 : vector<8x32xf32>
    %779 = arith.addf %776, %778 : vector<8x32xf32>
    %780 = math.tanh %779 : vector<8x32xf32>
    %cst_175 = arith.constant 1.000000e+00 : f32
    %781 = vector.broadcast %cst_175 : f32 to vector<8x32xf32>
    %782 = arith.subf %781, %775 : vector<8x32xf32>
    %783 = arith.mulf %782, %780 : vector<8x32xf32>
    %784 = arith.mulf %775, %699 : vector<8x32xf32>
    %785 = arith.addf %783, %784 : vector<8x32xf32>
    %786 = arith.subf %785, %699 : vector<8x32xf32>
    %787 = vector.broadcast %721 : vector<8x1xf32> to vector<8x32xf32>
    %788 = arith.mulf %787, %786 : vector<8x32xf32>
    %789 = arith.addf %699, %788 : vector<8x32xf32>
    %790 = vector.broadcast %721 : vector<8x1xf32> to vector<8x32xf32>
    %791 = arith.mulf %789, %790 : vector<8x32xf32>
    %792 = vector.extract_strided_slice %0 {offsets = [1, 0, 0], sizes = [1, 8, 1], strides = [1, 1, 1]} : vector<8x8x1xf32> to vector<1x8x1xf32>
    %793 = vector.shape_cast %792 : vector<1x8x1xf32> to vector<8x1xf32>
    %cst_176 = arith.constant dense<0.000000e+00> : vector<8x96xf32>
    %794 = tpu.matmul %755, %706, %cst_176 {dimension_numbers = #tpu.dot_dimension_numbers<[1], [0], [0], [1], [0, 0, 1, 1], [], []>} : vector<8x32xf32>, vector<32x96xf32>, vector<8x96xf32> -> vector<8x96xf32>
    %795 = arith.addf %794, %709 : vector<8x96xf32>
    %796 = vector.extract_strided_slice %719 {offsets = [1, 0, 0], sizes = [1, 8, 96], strides = [1, 1, 1]} : vector<8x8x96xf32> to vector<1x8x96xf32>
    %797 = vector.shape_cast %796 : vector<1x8x96xf32> to vector<8x96xf32>
    %798 = vector.extract_strided_slice %797 {offsets = [0, 0], sizes = [8, 32], strides = [1, 1]} : vector<8x96xf32> to vector<8x32xf32>
    %799 = vector.extract_strided_slice %795 {offsets = [0, 0], sizes = [8, 32], strides = [1, 1]} : vector<8x96xf32> to vector<8x32xf32>
    %800 = arith.addf %798, %799 : vector<8x32xf32>
    %801 = arith.negf %800 : vector<8x32xf32>
    %802 = math.exp %801 : vector<8x32xf32>
    %cst_177 = arith.constant 1.000000e+00 : f32
    %803 = vector.broadcast %cst_177 : f32 to vector<8x32xf32>
    %804 = arith.addf %803, %802 : vector<8x32xf32>
    %805 = arith.divf %803, %804 : vector<8x32xf32>
    %806 = vector.extract_strided_slice %797 {offsets = [0, 32], sizes = [8, 32], strides = [1, 1]} : vector<8x96xf32> to vector<8x32xf32>
    %807 = vector.extract_strided_slice %795 {offsets = [0, 32], sizes = [8, 32], strides = [1, 1]} : vector<8x96xf32> to vector<8x32xf32>
    %808 = arith.addf %806, %807 : vector<8x32xf32>
    %809 = arith.negf %808 : vector<8x32xf32>
    %810 = math.exp %809 : vector<8x32xf32>
    %cst_178 = arith.constant 1.000000e+00 : f32
    %811 = vector.broadcast %cst_178 : f32 to vector<8x32xf32>
    %812 = arith.addf %811, %810 : vector<8x32xf32>
    %813 = arith.divf %811, %812 : vector<8x32xf32>
    %814 = vector.extract_strided_slice %797 {offsets = [0, 64], sizes = [8, 32], strides = [1, 1]} : vector<8x96xf32> to vector<8x32xf32>
    %815 = vector.extract_strided_slice %795 {offsets = [0, 64], sizes = [8, 32], strides = [1, 1]} : vector<8x96xf32> to vector<8x32xf32>
    %816 = arith.mulf %805, %815 : vector<8x32xf32>
    %817 = arith.addf %814, %816 : vector<8x32xf32>
    %818 = math.tanh %817 : vector<8x32xf32>
    %cst_179 = arith.constant 1.000000e+00 : f32
    %819 = vector.broadcast %cst_179 : f32 to vector<8x32xf32>
    %820 = arith.subf %819, %813 : vector<8x32xf32>
    %821 = arith.mulf %820, %818 : vector<8x32xf32>
    %822 = arith.mulf %813, %755 : vector<8x32xf32>
    %823 = arith.addf %821, %822 : vector<8x32xf32>
    %824 = arith.subf %823, %755 : vector<8x32xf32>
    %825 = vector.broadcast %793 : vector<8x1xf32> to vector<8x32xf32>
    %826 = arith.mulf %825, %824 : vector<8x32xf32>
    %827 = arith.addf %755, %826 : vector<8x32xf32>
    %cst_180 = arith.constant dense<0.000000e+00> : vector<8x96xf32>
    %828 = tpu.matmul %827, %702, %cst_180 {dimension_numbers = #tpu.dot_dimension_numbers<[1], [0], [0], [1], [0, 0, 1, 1], [], []>} : vector<8x32xf32>, vector<32x96xf32>, vector<8x96xf32> -> vector<8x96xf32>
    %829 = arith.addf %828, %705 : vector<8x96xf32>
    %cst_181 = arith.constant dense<0.000000e+00> : vector<8x96xf32>
    %830 = tpu.matmul %789, %710, %cst_181 {dimension_numbers = #tpu.dot_dimension_numbers<[1], [0], [0], [1], [0, 0, 1, 1], [], []>} : vector<8x32xf32>, vector<32x96xf32>, vector<8x96xf32> -> vector<8x96xf32>
    %831 = arith.addf %830, %713 : vector<8x96xf32>
    %832 = vector.extract_strided_slice %829 {offsets = [0, 0], sizes = [8, 32], strides = [1, 1]} : vector<8x96xf32> to vector<8x32xf32>
    %833 = vector.extract_strided_slice %831 {offsets = [0, 0], sizes = [8, 32], strides = [1, 1]} : vector<8x96xf32> to vector<8x32xf32>
    %834 = arith.addf %832, %833 : vector<8x32xf32>
    %835 = arith.negf %834 : vector<8x32xf32>
    %836 = math.exp %835 : vector<8x32xf32>
    %cst_182 = arith.constant 1.000000e+00 : f32
    %837 = vector.broadcast %cst_182 : f32 to vector<8x32xf32>
    %838 = arith.addf %837, %836 : vector<8x32xf32>
    %839 = arith.divf %837, %838 : vector<8x32xf32>
    %840 = vector.extract_strided_slice %829 {offsets = [0, 32], sizes = [8, 32], strides = [1, 1]} : vector<8x96xf32> to vector<8x32xf32>
    %841 = vector.extract_strided_slice %831 {offsets = [0, 32], sizes = [8, 32], strides = [1, 1]} : vector<8x96xf32> to vector<8x32xf32>
    %842 = arith.addf %840, %841 : vector<8x32xf32>
    %843 = arith.negf %842 : vector<8x32xf32>
    %844 = math.exp %843 : vector<8x32xf32>
    %cst_183 = arith.constant 1.000000e+00 : f32
    %845 = vector.broadcast %cst_183 : f32 to vector<8x32xf32>
    %846 = arith.addf %845, %844 : vector<8x32xf32>
    %847 = arith.divf %845, %846 : vector<8x32xf32>
    %848 = vector.extract_strided_slice %829 {offsets = [0, 64], sizes = [8, 32], strides = [1, 1]} : vector<8x96xf32> to vector<8x32xf32>
    %849 = vector.extract_strided_slice %831 {offsets = [0, 64], sizes = [8, 32], strides = [1, 1]} : vector<8x96xf32> to vector<8x32xf32>
    %850 = arith.mulf %839, %849 : vector<8x32xf32>
    %851 = arith.addf %848, %850 : vector<8x32xf32>
    %852 = math.tanh %851 : vector<8x32xf32>
    %cst_184 = arith.constant 1.000000e+00 : f32
    %853 = vector.broadcast %cst_184 : f32 to vector<8x32xf32>
    %854 = arith.subf %853, %847 : vector<8x32xf32>
    %855 = arith.mulf %854, %852 : vector<8x32xf32>
    %856 = arith.mulf %847, %789 : vector<8x32xf32>
    %857 = arith.addf %855, %856 : vector<8x32xf32>
    %858 = arith.subf %857, %789 : vector<8x32xf32>
    %859 = vector.broadcast %793 : vector<8x1xf32> to vector<8x32xf32>
    %860 = arith.mulf %859, %858 : vector<8x32xf32>
    %861 = arith.addf %789, %860 : vector<8x32xf32>
    %862 = vector.broadcast %793 : vector<8x1xf32> to vector<8x32xf32>
    %863 = arith.mulf %861, %862 : vector<8x32xf32>
    %864 = vector.extract_strided_slice %0 {offsets = [2, 0, 0], sizes = [1, 8, 1], strides = [1, 1, 1]} : vector<8x8x1xf32> to vector<1x8x1xf32>
    %865 = vector.shape_cast %864 : vector<1x8x1xf32> to vector<8x1xf32>
    %cst_185 = arith.constant dense<0.000000e+00> : vector<8x96xf32>
    %866 = tpu.matmul %827, %706, %cst_185 {dimension_numbers = #tpu.dot_dimension_numbers<[1], [0], [0], [1], [0, 0, 1, 1], [], []>} : vector<8x32xf32>, vector<32x96xf32>, vector<8x96xf32> -> vector<8x96xf32>
    %867 = arith.addf %866, %709 : vector<8x96xf32>
    %868 = vector.extract_strided_slice %719 {offsets = [2, 0, 0], sizes = [1, 8, 96], strides = [1, 1, 1]} : vector<8x8x96xf32> to vector<1x8x96xf32>
    %869 = vector.shape_cast %868 : vector<1x8x96xf32> to vector<8x96xf32>
    %870 = vector.extract_strided_slice %869 {offsets = [0, 0], sizes = [8, 32], strides = [1, 1]} : vector<8x96xf32> to vector<8x32xf32>
    %871 = vector.extract_strided_slice %867 {offsets = [0, 0], sizes = [8, 32], strides = [1, 1]} : vector<8x96xf32> to vector<8x32xf32>
    %872 = arith.addf %870, %871 : vector<8x32xf32>
    %873 = arith.negf %872 : vector<8x32xf32>
    %874 = math.exp %873 : vector<8x32xf32>
    %cst_186 = arith.constant 1.000000e+00 : f32
    %875 = vector.broadcast %cst_186 : f32 to vector<8x32xf32>
    %876 = arith.addf %875, %874 : vector<8x32xf32>
    %877 = arith.divf %875, %876 : vector<8x32xf32>
    %878 = vector.extract_strided_slice %869 {offsets = [0, 32], sizes = [8, 32], strides = [1, 1]} : vector<8x96xf32> to vector<8x32xf32>
    %879 = vector.extract_strided_slice %867 {offsets = [0, 32], sizes = [8, 32], strides = [1, 1]} : vector<8x96xf32> to vector<8x32xf32>
    %880 = arith.addf %878, %879 : vector<8x32xf32>
    %881 = arith.negf %880 : vector<8x32xf32>
    %882 = math.exp %881 : vector<8x32xf32>
    %cst_187 = arith.constant 1.000000e+00 : f32
    %883 = vector.broadcast %cst_187 : f32 to vector<8x32xf32>
    %884 = arith.addf %883, %882 : vector<8x32xf32>
    %885 = arith.divf %883, %884 : vector<8x32xf32>
    %886 = vector.extract_strided_slice %869 {offsets = [0, 64], sizes = [8, 32], strides = [1, 1]} : vector<8x96xf32> to vector<8x32xf32>
    %887 = vector.extract_strided_slice %867 {offsets = [0, 64], sizes = [8, 32], strides = [1, 1]} : vector<8x96xf32> to vector<8x32xf32>
    %888 = arith.mulf %877, %887 : vector<8x32xf32>
    %889 = arith.addf %886, %888 : vector<8x32xf32>
    %890 = math.tanh %889 : vector<8x32xf32>
    %cst_188 = arith.constant 1.000000e+00 : f32
    %891 = vector.broadcast %cst_188 : f32 to vector<8x32xf32>
    %892 = arith.subf %891, %885 : vector<8x32xf32>
    %893 = arith.mulf %892, %890 : vector<8x32xf32>
    %894 = arith.mulf %885, %827 : vector<8x32xf32>
    %895 = arith.addf %893, %894 : vector<8x32xf32>
    %896 = arith.subf %895, %827 : vector<8x32xf32>
    %897 = vector.broadcast %865 : vector<8x1xf32> to vector<8x32xf32>
    %898 = arith.mulf %897, %896 : vector<8x32xf32>
    %899 = arith.addf %827, %898 : vector<8x32xf32>
    %cst_189 = arith.constant dense<0.000000e+00> : vector<8x96xf32>
    %900 = tpu.matmul %899, %702, %cst_189 {dimension_numbers = #tpu.dot_dimension_numbers<[1], [0], [0], [1], [0, 0, 1, 1], [], []>} : vector<8x32xf32>, vector<32x96xf32>, vector<8x96xf32> -> vector<8x96xf32>
    %901 = arith.addf %900, %705 : vector<8x96xf32>
    %cst_190 = arith.constant dense<0.000000e+00> : vector<8x96xf32>
    %902 = tpu.matmul %861, %710, %cst_190 {dimension_numbers = #tpu.dot_dimension_numbers<[1], [0], [0], [1], [0, 0, 1, 1], [], []>} : vector<8x32xf32>, vector<32x96xf32>, vector<8x96xf32> -> vector<8x96xf32>
    %903 = arith.addf %902, %713 : vector<8x96xf32>
    %904 = vector.extract_strided_slice %901 {offsets = [0, 0], sizes = [8, 32], strides = [1, 1]} : vector<8x96xf32> to vector<8x32xf32>
    %905 = vector.extract_strided_slice %903 {offsets = [0, 0], sizes = [8, 32], strides = [1, 1]} : vector<8x96xf32> to vector<8x32xf32>
    %906 = arith.addf %904, %905 : vector<8x32xf32>
    %907 = arith.negf %906 : vector<8x32xf32>
    %908 = math.exp %907 : vector<8x32xf32>
    %cst_191 = arith.constant 1.000000e+00 : f32
    %909 = vector.broadcast %cst_191 : f32 to vector<8x32xf32>
    %910 = arith.addf %909, %908 : vector<8x32xf32>
    %911 = arith.divf %909, %910 : vector<8x32xf32>
    %912 = vector.extract_strided_slice %901 {offsets = [0, 32], sizes = [8, 32], strides = [1, 1]} : vector<8x96xf32> to vector<8x32xf32>
    %913 = vector.extract_strided_slice %903 {offsets = [0, 32], sizes = [8, 32], strides = [1, 1]} : vector<8x96xf32> to vector<8x32xf32>
    %914 = arith.addf %912, %913 : vector<8x32xf32>
    %915 = arith.negf %914 : vector<8x32xf32>
    %916 = math.exp %915 : vector<8x32xf32>
    %cst_192 = arith.constant 1.000000e+00 : f32
    %917 = vector.broadcast %cst_192 : f32 to vector<8x32xf32>
    %918 = arith.addf %917, %916 : vector<8x32xf32>
    %919 = arith.divf %917, %918 : vector<8x32xf32>
    %920 = vector.extract_strided_slice %901 {offsets = [0, 64], sizes = [8, 32], strides = [1, 1]} : vector<8x96xf32> to vector<8x32xf32>
    %921 = vector.extract_strided_slice %903 {offsets = [0, 64], sizes = [8, 32], strides = [1, 1]} : vector<8x96xf32> to vector<8x32xf32>
    %922 = arith.mulf %911, %921 : vector<8x32xf32>
    %923 = arith.addf %920, %922 : vector<8x32xf32>
    %924 = math.tanh %923 : vector<8x32xf32>
    %cst_193 = arith.constant 1.000000e+00 : f32
    %925 = vector.broadcast %cst_193 : f32 to vector<8x32xf32>
    %926 = arith.subf %925, %919 : vector<8x32xf32>
    %927 = arith.mulf %926, %924 : vector<8x32xf32>
    %928 = arith.mulf %919, %861 : vector<8x32xf32>
    %929 = arith.addf %927, %928 : vector<8x32xf32>
    %930 = arith.subf %929, %861 : vector<8x32xf32>
    %931 = vector.broadcast %865 : vector<8x1xf32> to vector<8x32xf32>
    %932 = arith.mulf %931, %930 : vector<8x32xf32>
    %933 = arith.addf %861, %932 : vector<8x32xf32>
    %934 = vector.broadcast %865 : vector<8x1xf32> to vector<8x32xf32>
    %935 = arith.mulf %933, %934 : vector<8x32xf32>
    %936 = vector.extract_strided_slice %0 {offsets = [3, 0, 0], sizes = [1, 8, 1], strides = [1, 1, 1]} : vector<8x8x1xf32> to vector<1x8x1xf32>
    %937 = vector.shape_cast %936 : vector<1x8x1xf32> to vector<8x1xf32>
    %cst_194 = arith.constant dense<0.000000e+00> : vector<8x96xf32>
    %938 = tpu.matmul %899, %706, %cst_194 {dimension_numbers = #tpu.dot_dimension_numbers<[1], [0], [0], [1], [0, 0, 1, 1], [], []>} : vector<8x32xf32>, vector<32x96xf32>, vector<8x96xf32> -> vector<8x96xf32>
    %939 = arith.addf %938, %709 : vector<8x96xf32>
    %940 = vector.extract_strided_slice %719 {offsets = [3, 0, 0], sizes = [1, 8, 96], strides = [1, 1, 1]} : vector<8x8x96xf32> to vector<1x8x96xf32>
    %941 = vector.shape_cast %940 : vector<1x8x96xf32> to vector<8x96xf32>
    %942 = vector.extract_strided_slice %941 {offsets = [0, 0], sizes = [8, 32], strides = [1, 1]} : vector<8x96xf32> to vector<8x32xf32>
    %943 = vector.extract_strided_slice %939 {offsets = [0, 0], sizes = [8, 32], strides = [1, 1]} : vector<8x96xf32> to vector<8x32xf32>
    %944 = arith.addf %942, %943 : vector<8x32xf32>
    %945 = arith.negf %944 : vector<8x32xf32>
    %946 = math.exp %945 : vector<8x32xf32>
    %cst_195 = arith.constant 1.000000e+00 : f32
    %947 = vector.broadcast %cst_195 : f32 to vector<8x32xf32>
    %948 = arith.addf %947, %946 : vector<8x32xf32>
    %949 = arith.divf %947, %948 : vector<8x32xf32>
    %950 = vector.extract_strided_slice %941 {offsets = [0, 32], sizes = [8, 32], strides = [1, 1]} : vector<8x96xf32> to vector<8x32xf32>
    %951 = vector.extract_strided_slice %939 {offsets = [0, 32], sizes = [8, 32], strides = [1, 1]} : vector<8x96xf32> to vector<8x32xf32>
    %952 = arith.addf %950, %951 : vector<8x32xf32>
    %953 = arith.negf %952 : vector<8x32xf32>
    %954 = math.exp %953 : vector<8x32xf32>
    %cst_196 = arith.constant 1.000000e+00 : f32
    %955 = vector.broadcast %cst_196 : f32 to vector<8x32xf32>
    %956 = arith.addf %955, %954 : vector<8x32xf32>
    %957 = arith.divf %955, %956 : vector<8x32xf32>
    %958 = vector.extract_strided_slice %941 {offsets = [0, 64], sizes = [8, 32], strides = [1, 1]} : vector<8x96xf32> to vector<8x32xf32>
    %959 = vector.extract_strided_slice %939 {offsets = [0, 64], sizes = [8, 32], strides = [1, 1]} : vector<8x96xf32> to vector<8x32xf32>
    %960 = arith.mulf %949, %959 : vector<8x32xf32>
    %961 = arith.addf %958, %960 : vector<8x32xf32>
    %962 = math.tanh %961 : vector<8x32xf32>
    %cst_197 = arith.constant 1.000000e+00 : f32
    %963 = vector.broadcast %cst_197 : f32 to vector<8x32xf32>
    %964 = arith.subf %963, %957 : vector<8x32xf32>
    %965 = arith.mulf %964, %962 : vector<8x32xf32>
    %966 = arith.mulf %957, %899 : vector<8x32xf32>
    %967 = arith.addf %965, %966 : vector<8x32xf32>
    %968 = arith.subf %967, %899 : vector<8x32xf32>
    %969 = vector.broadcast %937 : vector<8x1xf32> to vector<8x32xf32>
    %970 = arith.mulf %969, %968 : vector<8x32xf32>
    %971 = arith.addf %899, %970 : vector<8x32xf32>
    %cst_198 = arith.constant dense<0.000000e+00> : vector<8x96xf32>
    %972 = tpu.matmul %971, %702, %cst_198 {dimension_numbers = #tpu.dot_dimension_numbers<[1], [0], [0], [1], [0, 0, 1, 1], [], []>} : vector<8x32xf32>, vector<32x96xf32>, vector<8x96xf32> -> vector<8x96xf32>
    %973 = arith.addf %972, %705 : vector<8x96xf32>
    %cst_199 = arith.constant dense<0.000000e+00> : vector<8x96xf32>
    %974 = tpu.matmul %933, %710, %cst_199 {dimension_numbers = #tpu.dot_dimension_numbers<[1], [0], [0], [1], [0, 0, 1, 1], [], []>} : vector<8x32xf32>, vector<32x96xf32>, vector<8x96xf32> -> vector<8x96xf32>
    %975 = arith.addf %974, %713 : vector<8x96xf32>
    %976 = vector.extract_strided_slice %973 {offsets = [0, 0], sizes = [8, 32], strides = [1, 1]} : vector<8x96xf32> to vector<8x32xf32>
    %977 = vector.extract_strided_slice %975 {offsets = [0, 0], sizes = [8, 32], strides = [1, 1]} : vector<8x96xf32> to vector<8x32xf32>
    %978 = arith.addf %976, %977 : vector<8x32xf32>
    %979 = arith.negf %978 : vector<8x32xf32>
    %980 = math.exp %979 : vector<8x32xf32>
    %cst_200 = arith.constant 1.000000e+00 : f32
    %981 = vector.broadcast %cst_200 : f32 to vector<8x32xf32>
    %982 = arith.addf %981, %980 : vector<8x32xf32>
    %983 = arith.divf %981, %982 : vector<8x32xf32>
    %984 = vector.extract_strided_slice %973 {offsets = [0, 32], sizes = [8, 32], strides = [1, 1]} : vector<8x96xf32> to vector<8x32xf32>
    %985 = vector.extract_strided_slice %975 {offsets = [0, 32], sizes = [8, 32], strides = [1, 1]} : vector<8x96xf32> to vector<8x32xf32>
    %986 = arith.addf %984, %985 : vector<8x32xf32>
    %987 = arith.negf %986 : vector<8x32xf32>
    %988 = math.exp %987 : vector<8x32xf32>
    %cst_201 = arith.constant 1.000000e+00 : f32
    %989 = vector.broadcast %cst_201 : f32 to vector<8x32xf32>
    %990 = arith.addf %989, %988 : vector<8x32xf32>
    %991 = arith.divf %989, %990 : vector<8x32xf32>
    %992 = vector.extract_strided_slice %973 {offsets = [0, 64], sizes = [8, 32], strides = [1, 1]} : vector<8x96xf32> to vector<8x32xf32>
    %993 = vector.extract_strided_slice %975 {offsets = [0, 64], sizes = [8, 32], strides = [1, 1]} : vector<8x96xf32> to vector<8x32xf32>
    %994 = arith.mulf %983, %993 : vector<8x32xf32>
    %995 = arith.addf %992, %994 : vector<8x32xf32>
    %996 = math.tanh %995 : vector<8x32xf32>
    %cst_202 = arith.constant 1.000000e+00 : f32
    %997 = vector.broadcast %cst_202 : f32 to vector<8x32xf32>
    %998 = arith.subf %997, %991 : vector<8x32xf32>
    %999 = arith.mulf %998, %996 : vector<8x32xf32>
    %1000 = arith.mulf %991, %933 : vector<8x32xf32>
    %1001 = arith.addf %999, %1000 : vector<8x32xf32>
    %1002 = arith.subf %1001, %933 : vector<8x32xf32>
    %1003 = vector.broadcast %937 : vector<8x1xf32> to vector<8x32xf32>
    %1004 = arith.mulf %1003, %1002 : vector<8x32xf32>
    %1005 = arith.addf %933, %1004 : vector<8x32xf32>
    %1006 = vector.broadcast %937 : vector<8x1xf32> to vector<8x32xf32>
    %1007 = arith.mulf %1005, %1006 : vector<8x32xf32>
    %1008 = vector.extract_strided_slice %0 {offsets = [4, 0, 0], sizes = [1, 8, 1], strides = [1, 1, 1]} : vector<8x8x1xf32> to vector<1x8x1xf32>
    %1009 = vector.shape_cast %1008 : vector<1x8x1xf32> to vector<8x1xf32>
    %cst_203 = arith.constant dense<0.000000e+00> : vector<8x96xf32>
    %1010 = tpu.matmul %971, %706, %cst_203 {dimension_numbers = #tpu.dot_dimension_numbers<[1], [0], [0], [1], [0, 0, 1, 1], [], []>} : vector<8x32xf32>, vector<32x96xf32>, vector<8x96xf32> -> vector<8x96xf32>
    %1011 = arith.addf %1010, %709 : vector<8x96xf32>
    %1012 = vector.extract_strided_slice %719 {offsets = [4, 0, 0], sizes = [1, 8, 96], strides = [1, 1, 1]} : vector<8x8x96xf32> to vector<1x8x96xf32>
    %1013 = vector.shape_cast %1012 : vector<1x8x96xf32> to vector<8x96xf32>
    %1014 = vector.extract_strided_slice %1013 {offsets = [0, 0], sizes = [8, 32], strides = [1, 1]} : vector<8x96xf32> to vector<8x32xf32>
    %1015 = vector.extract_strided_slice %1011 {offsets = [0, 0], sizes = [8, 32], strides = [1, 1]} : vector<8x96xf32> to vector<8x32xf32>
    %1016 = arith.addf %1014, %1015 : vector<8x32xf32>
    %1017 = arith.negf %1016 : vector<8x32xf32>
    %1018 = math.exp %1017 : vector<8x32xf32>
    %cst_204 = arith.constant 1.000000e+00 : f32
    %1019 = vector.broadcast %cst_204 : f32 to vector<8x32xf32>
    %1020 = arith.addf %1019, %1018 : vector<8x32xf32>
    %1021 = arith.divf %1019, %1020 : vector<8x32xf32>
    %1022 = vector.extract_strided_slice %1013 {offsets = [0, 32], sizes = [8, 32], strides = [1, 1]} : vector<8x96xf32> to vector<8x32xf32>
    %1023 = vector.extract_strided_slice %1011 {offsets = [0, 32], sizes = [8, 32], strides = [1, 1]} : vector<8x96xf32> to vector<8x32xf32>
    %1024 = arith.addf %1022, %1023 : vector<8x32xf32>
    %1025 = arith.negf %1024 : vector<8x32xf32>
    %1026 = math.exp %1025 : vector<8x32xf32>
    %cst_205 = arith.constant 1.000000e+00 : f32
    %1027 = vector.broadcast %cst_205 : f32 to vector<8x32xf32>
    %1028 = arith.addf %1027, %1026 : vector<8x32xf32>
    %1029 = arith.divf %1027, %1028 : vector<8x32xf32>
    %1030 = vector.extract_strided_slice %1013 {offsets = [0, 64], sizes = [8, 32], strides = [1, 1]} : vector<8x96xf32> to vector<8x32xf32>
    %1031 = vector.extract_strided_slice %1011 {offsets = [0, 64], sizes = [8, 32], strides = [1, 1]} : vector<8x96xf32> to vector<8x32xf32>
    %1032 = arith.mulf %1021, %1031 : vector<8x32xf32>
    %1033 = arith.addf %1030, %1032 : vector<8x32xf32>
    %1034 = math.tanh %1033 : vector<8x32xf32>
    %cst_206 = arith.constant 1.000000e+00 : f32
    %1035 = vector.broadcast %cst_206 : f32 to vector<8x32xf32>
    %1036 = arith.subf %1035, %1029 : vector<8x32xf32>
    %1037 = arith.mulf %1036, %1034 : vector<8x32xf32>
    %1038 = arith.mulf %1029, %971 : vector<8x32xf32>
    %1039 = arith.addf %1037, %1038 : vector<8x32xf32>
    %1040 = arith.subf %1039, %971 : vector<8x32xf32>
    %1041 = vector.broadcast %1009 : vector<8x1xf32> to vector<8x32xf32>
    %1042 = arith.mulf %1041, %1040 : vector<8x32xf32>
    %1043 = arith.addf %971, %1042 : vector<8x32xf32>
    %cst_207 = arith.constant dense<0.000000e+00> : vector<8x96xf32>
    %1044 = tpu.matmul %1043, %702, %cst_207 {dimension_numbers = #tpu.dot_dimension_numbers<[1], [0], [0], [1], [0, 0, 1, 1], [], []>} : vector<8x32xf32>, vector<32x96xf32>, vector<8x96xf32> -> vector<8x96xf32>
    %1045 = arith.addf %1044, %705 : vector<8x96xf32>
    %cst_208 = arith.constant dense<0.000000e+00> : vector<8x96xf32>
    %1046 = tpu.matmul %1005, %710, %cst_208 {dimension_numbers = #tpu.dot_dimension_numbers<[1], [0], [0], [1], [0, 0, 1, 1], [], []>} : vector<8x32xf32>, vector<32x96xf32>, vector<8x96xf32> -> vector<8x96xf32>
    %1047 = arith.addf %1046, %713 : vector<8x96xf32>
    %1048 = vector.extract_strided_slice %1045 {offsets = [0, 0], sizes = [8, 32], strides = [1, 1]} : vector<8x96xf32> to vector<8x32xf32>
    %1049 = vector.extract_strided_slice %1047 {offsets = [0, 0], sizes = [8, 32], strides = [1, 1]} : vector<8x96xf32> to vector<8x32xf32>
    %1050 = arith.addf %1048, %1049 : vector<8x32xf32>
    %1051 = arith.negf %1050 : vector<8x32xf32>
    %1052 = math.exp %1051 : vector<8x32xf32>
    %cst_209 = arith.constant 1.000000e+00 : f32
    %1053 = vector.broadcast %cst_209 : f32 to vector<8x32xf32>
    %1054 = arith.addf %1053, %1052 : vector<8x32xf32>
    %1055 = arith.divf %1053, %1054 : vector<8x32xf32>
    %1056 = vector.extract_strided_slice %1045 {offsets = [0, 32], sizes = [8, 32], strides = [1, 1]} : vector<8x96xf32> to vector<8x32xf32>
    %1057 = vector.extract_strided_slice %1047 {offsets = [0, 32], sizes = [8, 32], strides = [1, 1]} : vector<8x96xf32> to vector<8x32xf32>
    %1058 = arith.addf %1056, %1057 : vector<8x32xf32>
    %1059 = arith.negf %1058 : vector<8x32xf32>
    %1060 = math.exp %1059 : vector<8x32xf32>
    %cst_210 = arith.constant 1.000000e+00 : f32
    %1061 = vector.broadcast %cst_210 : f32 to vector<8x32xf32>
    %1062 = arith.addf %1061, %1060 : vector<8x32xf32>
    %1063 = arith.divf %1061, %1062 : vector<8x32xf32>
    %1064 = vector.extract_strided_slice %1045 {offsets = [0, 64], sizes = [8, 32], strides = [1, 1]} : vector<8x96xf32> to vector<8x32xf32>
    %1065 = vector.extract_strided_slice %1047 {offsets = [0, 64], sizes = [8, 32], strides = [1, 1]} : vector<8x96xf32> to vector<8x32xf32>
    %1066 = arith.mulf %1055, %1065 : vector<8x32xf32>
    %1067 = arith.addf %1064, %1066 : vector<8x32xf32>
    %1068 = math.tanh %1067 : vector<8x32xf32>
    %cst_211 = arith.constant 1.000000e+00 : f32
    %1069 = vector.broadcast %cst_211 : f32 to vector<8x32xf32>
    %1070 = arith.subf %1069, %1063 : vector<8x32xf32>
    %1071 = arith.mulf %1070, %1068 : vector<8x32xf32>
    %1072 = arith.mulf %1063, %1005 : vector<8x32xf32>
    %1073 = arith.addf %1071, %1072 : vector<8x32xf32>
    %1074 = arith.subf %1073, %1005 : vector<8x32xf32>
    %1075 = vector.broadcast %1009 : vector<8x1xf32> to vector<8x32xf32>
    %1076 = arith.mulf %1075, %1074 : vector<8x32xf32>
    %1077 = arith.addf %1005, %1076 : vector<8x32xf32>
    %1078 = vector.broadcast %1009 : vector<8x1xf32> to vector<8x32xf32>
    %1079 = arith.mulf %1077, %1078 : vector<8x32xf32>
    %1080 = vector.extract_strided_slice %0 {offsets = [5, 0, 0], sizes = [1, 8, 1], strides = [1, 1, 1]} : vector<8x8x1xf32> to vector<1x8x1xf32>
    %1081 = vector.shape_cast %1080 : vector<1x8x1xf32> to vector<8x1xf32>
    %cst_212 = arith.constant dense<0.000000e+00> : vector<8x96xf32>
    %1082 = tpu.matmul %1043, %706, %cst_212 {dimension_numbers = #tpu.dot_dimension_numbers<[1], [0], [0], [1], [0, 0, 1, 1], [], []>} : vector<8x32xf32>, vector<32x96xf32>, vector<8x96xf32> -> vector<8x96xf32>
    %1083 = arith.addf %1082, %709 : vector<8x96xf32>
    %1084 = vector.extract_strided_slice %719 {offsets = [5, 0, 0], sizes = [1, 8, 96], strides = [1, 1, 1]} : vector<8x8x96xf32> to vector<1x8x96xf32>
    %1085 = vector.shape_cast %1084 : vector<1x8x96xf32> to vector<8x96xf32>
    %1086 = vector.extract_strided_slice %1085 {offsets = [0, 0], sizes = [8, 32], strides = [1, 1]} : vector<8x96xf32> to vector<8x32xf32>
    %1087 = vector.extract_strided_slice %1083 {offsets = [0, 0], sizes = [8, 32], strides = [1, 1]} : vector<8x96xf32> to vector<8x32xf32>
    %1088 = arith.addf %1086, %1087 : vector<8x32xf32>
    %1089 = arith.negf %1088 : vector<8x32xf32>
    %1090 = math.exp %1089 : vector<8x32xf32>
    %cst_213 = arith.constant 1.000000e+00 : f32
    %1091 = vector.broadcast %cst_213 : f32 to vector<8x32xf32>
    %1092 = arith.addf %1091, %1090 : vector<8x32xf32>
    %1093 = arith.divf %1091, %1092 : vector<8x32xf32>
    %1094 = vector.extract_strided_slice %1085 {offsets = [0, 32], sizes = [8, 32], strides = [1, 1]} : vector<8x96xf32> to vector<8x32xf32>
    %1095 = vector.extract_strided_slice %1083 {offsets = [0, 32], sizes = [8, 32], strides = [1, 1]} : vector<8x96xf32> to vector<8x32xf32>
    %1096 = arith.addf %1094, %1095 : vector<8x32xf32>
    %1097 = arith.negf %1096 : vector<8x32xf32>
    %1098 = math.exp %1097 : vector<8x32xf32>
    %cst_214 = arith.constant 1.000000e+00 : f32
    %1099 = vector.broadcast %cst_214 : f32 to vector<8x32xf32>
    %1100 = arith.addf %1099, %1098 : vector<8x32xf32>
    %1101 = arith.divf %1099, %1100 : vector<8x32xf32>
    %1102 = vector.extract_strided_slice %1085 {offsets = [0, 64], sizes = [8, 32], strides = [1, 1]} : vector<8x96xf32> to vector<8x32xf32>
    %1103 = vector.extract_strided_slice %1083 {offsets = [0, 64], sizes = [8, 32], strides = [1, 1]} : vector<8x96xf32> to vector<8x32xf32>
    %1104 = arith.mulf %1093, %1103 : vector<8x32xf32>
    %1105 = arith.addf %1102, %1104 : vector<8x32xf32>
    %1106 = math.tanh %1105 : vector<8x32xf32>
    %cst_215 = arith.constant 1.000000e+00 : f32
    %1107 = vector.broadcast %cst_215 : f32 to vector<8x32xf32>
    %1108 = arith.subf %1107, %1101 : vector<8x32xf32>
    %1109 = arith.mulf %1108, %1106 : vector<8x32xf32>
    %1110 = arith.mulf %1101, %1043 : vector<8x32xf32>
    %1111 = arith.addf %1109, %1110 : vector<8x32xf32>
    %1112 = arith.subf %1111, %1043 : vector<8x32xf32>
    %1113 = vector.broadcast %1081 : vector<8x1xf32> to vector<8x32xf32>
    %1114 = arith.mulf %1113, %1112 : vector<8x32xf32>
    %1115 = arith.addf %1043, %1114 : vector<8x32xf32>
    %cst_216 = arith.constant dense<0.000000e+00> : vector<8x96xf32>
    %1116 = tpu.matmul %1115, %702, %cst_216 {dimension_numbers = #tpu.dot_dimension_numbers<[1], [0], [0], [1], [0, 0, 1, 1], [], []>} : vector<8x32xf32>, vector<32x96xf32>, vector<8x96xf32> -> vector<8x96xf32>
    %1117 = arith.addf %1116, %705 : vector<8x96xf32>
    %cst_217 = arith.constant dense<0.000000e+00> : vector<8x96xf32>
    %1118 = tpu.matmul %1077, %710, %cst_217 {dimension_numbers = #tpu.dot_dimension_numbers<[1], [0], [0], [1], [0, 0, 1, 1], [], []>} : vector<8x32xf32>, vector<32x96xf32>, vector<8x96xf32> -> vector<8x96xf32>
    %1119 = arith.addf %1118, %713 : vector<8x96xf32>
    %1120 = vector.extract_strided_slice %1117 {offsets = [0, 0], sizes = [8, 32], strides = [1, 1]} : vector<8x96xf32> to vector<8x32xf32>
    %1121 = vector.extract_strided_slice %1119 {offsets = [0, 0], sizes = [8, 32], strides = [1, 1]} : vector<8x96xf32> to vector<8x32xf32>
    %1122 = arith.addf %1120, %1121 : vector<8x32xf32>
    %1123 = arith.negf %1122 : vector<8x32xf32>
    %1124 = math.exp %1123 : vector<8x32xf32>
    %cst_218 = arith.constant 1.000000e+00 : f32
    %1125 = vector.broadcast %cst_218 : f32 to vector<8x32xf32>
    %1126 = arith.addf %1125, %1124 : vector<8x32xf32>
    %1127 = arith.divf %1125, %1126 : vector<8x32xf32>
    %1128 = vector.extract_strided_slice %1117 {offsets = [0, 32], sizes = [8, 32], strides = [1, 1]} : vector<8x96xf32> to vector<8x32xf32>
    %1129 = vector.extract_strided_slice %1119 {offsets = [0, 32], sizes = [8, 32], strides = [1, 1]} : vector<8x96xf32> to vector<8x32xf32>
    %1130 = arith.addf %1128, %1129 : vector<8x32xf32>
    %1131 = arith.negf %1130 : vector<8x32xf32>
    %1132 = math.exp %1131 : vector<8x32xf32>
    %cst_219 = arith.constant 1.000000e+00 : f32
    %1133 = vector.broadcast %cst_219 : f32 to vector<8x32xf32>
    %1134 = arith.addf %1133, %1132 : vector<8x32xf32>
    %1135 = arith.divf %1133, %1134 : vector<8x32xf32>
    %1136 = vector.extract_strided_slice %1117 {offsets = [0, 64], sizes = [8, 32], strides = [1, 1]} : vector<8x96xf32> to vector<8x32xf32>
    %1137 = vector.extract_strided_slice %1119 {offsets = [0, 64], sizes = [8, 32], strides = [1, 1]} : vector<8x96xf32> to vector<8x32xf32>
    %1138 = arith.mulf %1127, %1137 : vector<8x32xf32>
    %1139 = arith.addf %1136, %1138 : vector<8x32xf32>
    %1140 = math.tanh %1139 : vector<8x32xf32>
    %cst_220 = arith.constant 1.000000e+00 : f32
    %1141 = vector.broadcast %cst_220 : f32 to vector<8x32xf32>
    %1142 = arith.subf %1141, %1135 : vector<8x32xf32>
    %1143 = arith.mulf %1142, %1140 : vector<8x32xf32>
    %1144 = arith.mulf %1135, %1077 : vector<8x32xf32>
    %1145 = arith.addf %1143, %1144 : vector<8x32xf32>
    %1146 = arith.subf %1145, %1077 : vector<8x32xf32>
    %1147 = vector.broadcast %1081 : vector<8x1xf32> to vector<8x32xf32>
    %1148 = arith.mulf %1147, %1146 : vector<8x32xf32>
    %1149 = arith.addf %1077, %1148 : vector<8x32xf32>
    %1150 = vector.broadcast %1081 : vector<8x1xf32> to vector<8x32xf32>
    %1151 = arith.mulf %1149, %1150 : vector<8x32xf32>
    %1152 = vector.extract_strided_slice %0 {offsets = [6, 0, 0], sizes = [1, 8, 1], strides = [1, 1, 1]} : vector<8x8x1xf32> to vector<1x8x1xf32>
    %1153 = vector.shape_cast %1152 : vector<1x8x1xf32> to vector<8x1xf32>
    %cst_221 = arith.constant dense<0.000000e+00> : vector<8x96xf32>
    %1154 = tpu.matmul %1115, %706, %cst_221 {dimension_numbers = #tpu.dot_dimension_numbers<[1], [0], [0], [1], [0, 0, 1, 1], [], []>} : vector<8x32xf32>, vector<32x96xf32>, vector<8x96xf32> -> vector<8x96xf32>
    %1155 = arith.addf %1154, %709 : vector<8x96xf32>
    %1156 = vector.extract_strided_slice %719 {offsets = [6, 0, 0], sizes = [1, 8, 96], strides = [1, 1, 1]} : vector<8x8x96xf32> to vector<1x8x96xf32>
    %1157 = vector.shape_cast %1156 : vector<1x8x96xf32> to vector<8x96xf32>
    %1158 = vector.extract_strided_slice %1157 {offsets = [0, 0], sizes = [8, 32], strides = [1, 1]} : vector<8x96xf32> to vector<8x32xf32>
    %1159 = vector.extract_strided_slice %1155 {offsets = [0, 0], sizes = [8, 32], strides = [1, 1]} : vector<8x96xf32> to vector<8x32xf32>
    %1160 = arith.addf %1158, %1159 : vector<8x32xf32>
    %1161 = arith.negf %1160 : vector<8x32xf32>
    %1162 = math.exp %1161 : vector<8x32xf32>
    %cst_222 = arith.constant 1.000000e+00 : f32
    %1163 = vector.broadcast %cst_222 : f32 to vector<8x32xf32>
    %1164 = arith.addf %1163, %1162 : vector<8x32xf32>
    %1165 = arith.divf %1163, %1164 : vector<8x32xf32>
    %1166 = vector.extract_strided_slice %1157 {offsets = [0, 32], sizes = [8, 32], strides = [1, 1]} : vector<8x96xf32> to vector<8x32xf32>
    %1167 = vector.extract_strided_slice %1155 {offsets = [0, 32], sizes = [8, 32], strides = [1, 1]} : vector<8x96xf32> to vector<8x32xf32>
    %1168 = arith.addf %1166, %1167 : vector<8x32xf32>
    %1169 = arith.negf %1168 : vector<8x32xf32>
    %1170 = math.exp %1169 : vector<8x32xf32>
    %cst_223 = arith.constant 1.000000e+00 : f32
    %1171 = vector.broadcast %cst_223 : f32 to vector<8x32xf32>
    %1172 = arith.addf %1171, %1170 : vector<8x32xf32>
    %1173 = arith.divf %1171, %1172 : vector<8x32xf32>
    %1174 = vector.extract_strided_slice %1157 {offsets = [0, 64], sizes = [8, 32], strides = [1, 1]} : vector<8x96xf32> to vector<8x32xf32>
    %1175 = vector.extract_strided_slice %1155 {offsets = [0, 64], sizes = [8, 32], strides = [1, 1]} : vector<8x96xf32> to vector<8x32xf32>
    %1176 = arith.mulf %1165, %1175 : vector<8x32xf32>
    %1177 = arith.addf %1174, %1176 : vector<8x32xf32>
    %1178 = math.tanh %1177 : vector<8x32xf32>
    %cst_224 = arith.constant 1.000000e+00 : f32
    %1179 = vector.broadcast %cst_224 : f32 to vector<8x32xf32>
    %1180 = arith.subf %1179, %1173 : vector<8x32xf32>
    %1181 = arith.mulf %1180, %1178 : vector<8x32xf32>
    %1182 = arith.mulf %1173, %1115 : vector<8x32xf32>
    %1183 = arith.addf %1181, %1182 : vector<8x32xf32>
    %1184 = arith.subf %1183, %1115 : vector<8x32xf32>
    %1185 = vector.broadcast %1153 : vector<8x1xf32> to vector<8x32xf32>
    %1186 = arith.mulf %1185, %1184 : vector<8x32xf32>
    %1187 = arith.addf %1115, %1186 : vector<8x32xf32>
    %cst_225 = arith.constant dense<0.000000e+00> : vector<8x96xf32>
    %1188 = tpu.matmul %1187, %702, %cst_225 {dimension_numbers = #tpu.dot_dimension_numbers<[1], [0], [0], [1], [0, 0, 1, 1], [], []>} : vector<8x32xf32>, vector<32x96xf32>, vector<8x96xf32> -> vector<8x96xf32>
    %1189 = arith.addf %1188, %705 : vector<8x96xf32>
    %cst_226 = arith.constant dense<0.000000e+00> : vector<8x96xf32>
    %1190 = tpu.matmul %1149, %710, %cst_226 {dimension_numbers = #tpu.dot_dimension_numbers<[1], [0], [0], [1], [0, 0, 1, 1], [], []>} : vector<8x32xf32>, vector<32x96xf32>, vector<8x96xf32> -> vector<8x96xf32>
    %1191 = arith.addf %1190, %713 : vector<8x96xf32>
    %1192 = vector.extract_strided_slice %1189 {offsets = [0, 0], sizes = [8, 32], strides = [1, 1]} : vector<8x96xf32> to vector<8x32xf32>
    %1193 = vector.extract_strided_slice %1191 {offsets = [0, 0], sizes = [8, 32], strides = [1, 1]} : vector<8x96xf32> to vector<8x32xf32>
    %1194 = arith.addf %1192, %1193 : vector<8x32xf32>
    %1195 = arith.negf %1194 : vector<8x32xf32>
    %1196 = math.exp %1195 : vector<8x32xf32>
    %cst_227 = arith.constant 1.000000e+00 : f32
    %1197 = vector.broadcast %cst_227 : f32 to vector<8x32xf32>
    %1198 = arith.addf %1197, %1196 : vector<8x32xf32>
    %1199 = arith.divf %1197, %1198 : vector<8x32xf32>
    %1200 = vector.extract_strided_slice %1189 {offsets = [0, 32], sizes = [8, 32], strides = [1, 1]} : vector<8x96xf32> to vector<8x32xf32>
    %1201 = vector.extract_strided_slice %1191 {offsets = [0, 32], sizes = [8, 32], strides = [1, 1]} : vector<8x96xf32> to vector<8x32xf32>
    %1202 = arith.addf %1200, %1201 : vector<8x32xf32>
    %1203 = arith.negf %1202 : vector<8x32xf32>
    %1204 = math.exp %1203 : vector<8x32xf32>
    %cst_228 = arith.constant 1.000000e+00 : f32
    %1205 = vector.broadcast %cst_228 : f32 to vector<8x32xf32>
    %1206 = arith.addf %1205, %1204 : vector<8x32xf32>
    %1207 = arith.divf %1205, %1206 : vector<8x32xf32>
    %1208 = vector.extract_strided_slice %1189 {offsets = [0, 64], sizes = [8, 32], strides = [1, 1]} : vector<8x96xf32> to vector<8x32xf32>
    %1209 = vector.extract_strided_slice %1191 {offsets = [0, 64], sizes = [8, 32], strides = [1, 1]} : vector<8x96xf32> to vector<8x32xf32>
    %1210 = arith.mulf %1199, %1209 : vector<8x32xf32>
    %1211 = arith.addf %1208, %1210 : vector<8x32xf32>
    %1212 = math.tanh %1211 : vector<8x32xf32>
    %cst_229 = arith.constant 1.000000e+00 : f32
    %1213 = vector.broadcast %cst_229 : f32 to vector<8x32xf32>
    %1214 = arith.subf %1213, %1207 : vector<8x32xf32>
    %1215 = arith.mulf %1214, %1212 : vector<8x32xf32>
    %1216 = arith.mulf %1207, %1149 : vector<8x32xf32>
    %1217 = arith.addf %1215, %1216 : vector<8x32xf32>
    %1218 = arith.subf %1217, %1149 : vector<8x32xf32>
    %1219 = vector.broadcast %1153 : vector<8x1xf32> to vector<8x32xf32>
    %1220 = arith.mulf %1219, %1218 : vector<8x32xf32>
    %1221 = arith.addf %1149, %1220 : vector<8x32xf32>
    %1222 = vector.broadcast %1153 : vector<8x1xf32> to vector<8x32xf32>
    %1223 = arith.mulf %1221, %1222 : vector<8x32xf32>
    %1224 = vector.extract_strided_slice %0 {offsets = [7, 0, 0], sizes = [1, 8, 1], strides = [1, 1, 1]} : vector<8x8x1xf32> to vector<1x8x1xf32>
    %1225 = vector.shape_cast %1224 : vector<1x8x1xf32> to vector<8x1xf32>
    %cst_230 = arith.constant dense<0.000000e+00> : vector<8x96xf32>
    %1226 = tpu.matmul %1187, %706, %cst_230 {dimension_numbers = #tpu.dot_dimension_numbers<[1], [0], [0], [1], [0, 0, 1, 1], [], []>} : vector<8x32xf32>, vector<32x96xf32>, vector<8x96xf32> -> vector<8x96xf32>
    %1227 = arith.addf %1226, %709 : vector<8x96xf32>
    %1228 = vector.extract_strided_slice %719 {offsets = [7, 0, 0], sizes = [1, 8, 96], strides = [1, 1, 1]} : vector<8x8x96xf32> to vector<1x8x96xf32>
    %1229 = vector.shape_cast %1228 : vector<1x8x96xf32> to vector<8x96xf32>
    %1230 = vector.extract_strided_slice %1229 {offsets = [0, 0], sizes = [8, 32], strides = [1, 1]} : vector<8x96xf32> to vector<8x32xf32>
    %1231 = vector.extract_strided_slice %1227 {offsets = [0, 0], sizes = [8, 32], strides = [1, 1]} : vector<8x96xf32> to vector<8x32xf32>
    %1232 = arith.addf %1230, %1231 : vector<8x32xf32>
    %1233 = arith.negf %1232 : vector<8x32xf32>
    %1234 = math.exp %1233 : vector<8x32xf32>
    %cst_231 = arith.constant 1.000000e+00 : f32
    %1235 = vector.broadcast %cst_231 : f32 to vector<8x32xf32>
    %1236 = arith.addf %1235, %1234 : vector<8x32xf32>
    %1237 = arith.divf %1235, %1236 : vector<8x32xf32>
    %1238 = vector.extract_strided_slice %1229 {offsets = [0, 32], sizes = [8, 32], strides = [1, 1]} : vector<8x96xf32> to vector<8x32xf32>
    %1239 = vector.extract_strided_slice %1227 {offsets = [0, 32], sizes = [8, 32], strides = [1, 1]} : vector<8x96xf32> to vector<8x32xf32>
    %1240 = arith.addf %1238, %1239 : vector<8x32xf32>
    %1241 = arith.negf %1240 : vector<8x32xf32>
    %1242 = math.exp %1241 : vector<8x32xf32>
    %cst_232 = arith.constant 1.000000e+00 : f32
    %1243 = vector.broadcast %cst_232 : f32 to vector<8x32xf32>
    %1244 = arith.addf %1243, %1242 : vector<8x32xf32>
    %1245 = arith.divf %1243, %1244 : vector<8x32xf32>
    %1246 = vector.extract_strided_slice %1229 {offsets = [0, 64], sizes = [8, 32], strides = [1, 1]} : vector<8x96xf32> to vector<8x32xf32>
    %1247 = vector.extract_strided_slice %1227 {offsets = [0, 64], sizes = [8, 32], strides = [1, 1]} : vector<8x96xf32> to vector<8x32xf32>
    %1248 = arith.mulf %1237, %1247 : vector<8x32xf32>
    %1249 = arith.addf %1246, %1248 : vector<8x32xf32>
    %1250 = math.tanh %1249 : vector<8x32xf32>
    %cst_233 = arith.constant 1.000000e+00 : f32
    %1251 = vector.broadcast %cst_233 : f32 to vector<8x32xf32>
    %1252 = arith.subf %1251, %1245 : vector<8x32xf32>
    %1253 = arith.mulf %1252, %1250 : vector<8x32xf32>
    %1254 = arith.mulf %1245, %1187 : vector<8x32xf32>
    %1255 = arith.addf %1253, %1254 : vector<8x32xf32>
    %1256 = arith.subf %1255, %1187 : vector<8x32xf32>
    %1257 = vector.broadcast %1225 : vector<8x1xf32> to vector<8x32xf32>
    %1258 = arith.mulf %1257, %1256 : vector<8x32xf32>
    %1259 = arith.addf %1187, %1258 : vector<8x32xf32>
    %cst_234 = arith.constant dense<0.000000e+00> : vector<8x96xf32>
    %1260 = tpu.matmul %1259, %702, %cst_234 {dimension_numbers = #tpu.dot_dimension_numbers<[1], [0], [0], [1], [0, 0, 1, 1], [], []>} : vector<8x32xf32>, vector<32x96xf32>, vector<8x96xf32> -> vector<8x96xf32>
    %1261 = arith.addf %1260, %705 : vector<8x96xf32>
    %cst_235 = arith.constant dense<0.000000e+00> : vector<8x96xf32>
    %1262 = tpu.matmul %1221, %710, %cst_235 {dimension_numbers = #tpu.dot_dimension_numbers<[1], [0], [0], [1], [0, 0, 1, 1], [], []>} : vector<8x32xf32>, vector<32x96xf32>, vector<8x96xf32> -> vector<8x96xf32>
    %1263 = arith.addf %1262, %713 : vector<8x96xf32>
    %1264 = vector.extract_strided_slice %1261 {offsets = [0, 0], sizes = [8, 32], strides = [1, 1]} : vector<8x96xf32> to vector<8x32xf32>
    %1265 = vector.extract_strided_slice %1263 {offsets = [0, 0], sizes = [8, 32], strides = [1, 1]} : vector<8x96xf32> to vector<8x32xf32>
    %1266 = arith.addf %1264, %1265 : vector<8x32xf32>
    %1267 = arith.negf %1266 : vector<8x32xf32>
    %1268 = math.exp %1267 : vector<8x32xf32>
    %cst_236 = arith.constant 1.000000e+00 : f32
    %1269 = vector.broadcast %cst_236 : f32 to vector<8x32xf32>
    %1270 = arith.addf %1269, %1268 : vector<8x32xf32>
    %1271 = arith.divf %1269, %1270 : vector<8x32xf32>
    %1272 = vector.extract_strided_slice %1261 {offsets = [0, 32], sizes = [8, 32], strides = [1, 1]} : vector<8x96xf32> to vector<8x32xf32>
    %1273 = vector.extract_strided_slice %1263 {offsets = [0, 32], sizes = [8, 32], strides = [1, 1]} : vector<8x96xf32> to vector<8x32xf32>
    %1274 = arith.addf %1272, %1273 : vector<8x32xf32>
    %1275 = arith.negf %1274 : vector<8x32xf32>
    %1276 = math.exp %1275 : vector<8x32xf32>
    %cst_237 = arith.constant 1.000000e+00 : f32
    %1277 = vector.broadcast %cst_237 : f32 to vector<8x32xf32>
    %1278 = arith.addf %1277, %1276 : vector<8x32xf32>
    %1279 = arith.divf %1277, %1278 : vector<8x32xf32>
    %1280 = vector.extract_strided_slice %1261 {offsets = [0, 64], sizes = [8, 32], strides = [1, 1]} : vector<8x96xf32> to vector<8x32xf32>
    %1281 = vector.extract_strided_slice %1263 {offsets = [0, 64], sizes = [8, 32], strides = [1, 1]} : vector<8x96xf32> to vector<8x32xf32>
    %1282 = arith.mulf %1271, %1281 : vector<8x32xf32>
    %1283 = arith.addf %1280, %1282 : vector<8x32xf32>
    %1284 = math.tanh %1283 : vector<8x32xf32>
    %cst_238 = arith.constant 1.000000e+00 : f32
    %1285 = vector.broadcast %cst_238 : f32 to vector<8x32xf32>
    %1286 = arith.subf %1285, %1279 : vector<8x32xf32>
    %1287 = arith.mulf %1286, %1284 : vector<8x32xf32>
    %1288 = arith.mulf %1279, %1221 : vector<8x32xf32>
    %1289 = arith.addf %1287, %1288 : vector<8x32xf32>
    %1290 = arith.subf %1289, %1221 : vector<8x32xf32>
    %1291 = vector.broadcast %1225 : vector<8x1xf32> to vector<8x32xf32>
    %1292 = arith.mulf %1291, %1290 : vector<8x32xf32>
    %1293 = arith.addf %1221, %1292 : vector<8x32xf32>
    %1294 = vector.broadcast %1225 : vector<8x1xf32> to vector<8x32xf32>
    %1295 = arith.mulf %1293, %1294 : vector<8x32xf32>
    %1296 = tpu.concatenate %791, %863, %935, %1007, %1079, %1151, %1223, %1295 in 0 : vector<8x32xf32>, vector<8x32xf32>, vector<8x32xf32>, vector<8x32xf32>, vector<8x32xf32>, vector<8x32xf32>, vector<8x32xf32>, vector<8x32xf32> -> vector<64x32xf32>
    %c248 = arith.constant 248 : index
    %c0_239 = arith.constant 0 : index
    %1297 = vector.load %arg8[%c248, %c0_239] : memref<280x32xf32, #tpu.memory_space<vmem>>, vector<32x32xf32>
    %c9 = arith.constant 9 : index
    %c0_240 = arith.constant 0 : index
    %1298 = vector.load %arg9[%c9, %c0_240] : memref<10x64xf32, #tpu.memory_space<vmem>>, vector<1x32xf32>
    %cst_241 = arith.constant dense<0.000000e+00> : vector<64x32xf32>
    %1299 = tpu.matmul %1296, %1297, %cst_241 {dimension_numbers = #tpu.dot_dimension_numbers<[1], [0], [0], [1], [0, 0, 1, 1], [], []>} : vector<64x32xf32>, vector<32x32xf32>, vector<64x32xf32> -> vector<64x32xf32>
    %1300 = vector.broadcast %1298 : vector<1x32xf32> to vector<64x32xf32>
    %1301 = arith.addf %1299, %1300 : vector<64x32xf32>
    %1302 = vector.shape_cast %1301 : vector<64x32xf32> to vector<8x8x32xf32>
    %c0_242 = arith.constant 0 : index
    %c0_243 = arith.constant 0 : index
    %c0_244 = arith.constant 0 : index
    %1303 = vector.load %arg11[%c0_242, %c0_243, %c0_244] : memref<8x8x32xf32, #tpu.memory_space<vmem>>, vector<8x8x32xf32>
    tpu.vector_store %arg11[%c0_242, %c0_243, %c0_244], %1302 {strides = array<i32>} : memref<8x8x32xf32, #tpu.memory_space<vmem>>, vector<8x8x32xf32>,
    return
  }
}

</mosaic_0001>

<bundles_post_ra>
// kernel: program_mvae_forward.1
= control target key start
LH: loop header
LB: loop body
LE: loop exit
PB: predicated region body
PF: predicated region fallthrough
CT: control target
= control target key end

     0   :  { %vm95_vm0 = vcmask 261120   ;;  %v7684_v3 = vmov 0.0|0.0   ;;  %vm7685_vm1 = vmmov 0   ;;  %v7686_v4 = vmov 0.0   ;;  %s7688_s25 = smov 64   ;;  %s7689_s27 = smov 96   ;;  %s9125_s5 = inlined_call_operand.vmem [shape: f32[128,96], index: 5, kind: input, shape index: {}]   ;;  %s9126_s0 = inlined_call_operand.vmem [shape: f32[8,8,32], index: 0, kind: input, shape index: {}]   ;;  %s9127_s6 = inlined_call_operand.vmem [shape: f32[128,96], index: 6, kind: input, shape index: {}]   ;;  %s9128_s7 = inlined_call_operand.vmem [shape: f32[8,96], index: 7, kind: input, shape index: {}]   ;;  %s9129_s2 = inlined_call_operand.vmem [shape: f32[8,8,1], index: 2, kind: input, shape index: {}]   ;;  %s9130_s8 = inlined_call_operand.vmem [shape: f32[280,32], index: 8, kind: input, shape index: {}]   ;;  %s9131_s3 = inlined_call_operand.vmem [shape: f32[8,8], index: 3, kind: input, shape index: {}]   ;;  %s9132_s9 = inlined_call_operand.vmem [shape: f32[10,64], index: 9, kind: input, shape index: {}]   ;;  %s9133_s14 = inlined_call_operand.vmem [shape: f32[8,16], index: 14, kind: output, shape index: {3}]   ;;  %s9134_s4 = inlined_call_operand.vmem [shape: f32[8,16], index: 4, kind: input, shape index: {}]   ;;  %s9135_s13 = inlined_call_operand.vmem [shape: f32[8,16], index: 13, kind: output, shape index: {2}]   ;;  %s9136_s10 = inlined_call_operand.vmem [shape: f32[16,64], index: 10, kind: input, shape index: {}]   ;;  %s9137_s1 = inlined_call_operand.vmem [shape: f32[8,8,32], index: 1, kind: input, shape index: {}]   ;;  %s9138_s12 = inlined_call_operand.vmem [shape: f32[8,8], index: 12, kind: output, shape index: {1}]   ;;  %s9139_s15 = inlined_call_operand.vmem [shape: f32[8,16], index: 15, kind: output, shape index: {4}]   ;;  %s9140_s11 = inlined_call_operand.vmem [shape: f32[8,8,32], index: 11, kind: output, shape index: {0}]  }
   0x1   :  { %v51_v0 = vld [vmem:[%s9125_s5] sm:$0xff]  ;;  %v52_v1 = vld [vmem:[%s9125_s5 + $0x8] sm:$0xff]  ;;  %v53_v2 = vld [vmem:[%s9125_s5 + $0x10] sm:$0xff]  ;;  %7091 = vmatprep.subr.bf16.mxu1 %v7684_v3  ;;  %6435 = vmatprep.mubr.msk.f32.mxu1 %vm7685_vm1, %v7686_v4  ;;  %v7687_v33 = vmov 0   ;;  %vm2581_vm2 = vcmask 64512   ;;  %vm2500_vm3 = vcmask 523264  }
   0x2   :  { %v7077_v5 = vpack.c.bf16 %v52_v1, %v51_v0  ;;  %v54_v6 = vld [vmem:[%s9125_s5 + $0x18] sm:$0xff]  ;;  %v83_v7 = vld [vmem:[%s9126_s0] sm:$0xff]  ;;  %v66_v10 = vld [vmem:[%s9127_s6 + $0x8] sm:$0xff]  ;;  %7445 = vset.pattern.permute.xlu1 %v7687_v33  ;;  %7446 = vset.pattern.permute.xlu0 %v7687_v33  ;;  %vm2865_vm4 = vcmask 130048  }
   0x3   :  { %v7081_v8 = vpack.c.bf16 %v54_v6, %v53_v2  ;;  %6404 = vmatprep.mubr.msk.f32.mxu0 %vm95_vm0, %v83_v7  ;;  %v65_v9 = vld [vmem:[%s9127_s6] sm:$0xff]  ;;  %v84_v11 = vld [vmem:[%s9126_s0 + $0x8] sm:$0xff]  ;;  %v85_v13 = vld [vmem:[%s9126_s0 + $0x10] sm:$0xff] }
   0x4   :  { %7078 = vmatprep.subr.bf16.mxu0 %v7077_v5  ;;  %v7800_v12 = vpack.c.bf16 %v66_v10, %v65_v9  ;;  %v67_v14 = vld [vmem:[%s9127_s6 + $0x10] sm:$0xff]  ;;  %v68_v15 = vld [vmem:[%s9127_s6 + $0x18] sm:$0xff]  ;;  %v87_v18 = vld [vmem:[%s9126_s0 + $0x20] sm:$0xff] }
   0x5   :  { %7080 = vmatpush3.bf16.msra.mxu0 %v7077_v5  ;;  %v86_v16 = vld [vmem:[%s9126_s0 + $0x18] sm:$0xff]  ;;  %v7818_v17 = vpack.c.bf16 %v68_v15, %v67_v14  ;;  %v88_v19 = vld [vmem:[%s9126_s0 + $0x28] sm:$0xff]  ;;  %v89_v20 = vld [vmem:[%s9126_s0 + $0x30] sm:$0xff] }
   0x6   :  { %7082 = vmatprep.subr.bf16.mxu0 %v7081_v8  ;;  %v90_v21 = vld [vmem:[%s9126_s0 + $0x38] sm:$0xff]  ;;  %v5946_v22 = vld [vmem:[%s9128_s7] ss:$0 sm:$0xff]  ;;  %v7868_v40 = vld [vmem:[%s9128_s7 + $0x4] ss:$0 sm:$0xff] }
   0x7   :  { %v43_v34 = vld [vmem:[%s9129_s2] sm:$0xff]  ;;  %v75_v55 = vld [vmem:[%s9127_s6 + $0x28] sm:$0xff]  ;;  %v76_v56 = vld [vmem:[%s9127_s6 + $0x30] sm:$0xff] }
   0x8   :  { %326 = vperm.xlu1 %7445, %v43_v34   ;;  %v74_v54 = vld [vmem:[%s9127_s6 + $0x20] sm:$0xff]  ;;  %v77_v58 = vld [vmem:[%s9127_s6 + $0x38] sm:$0xff]  ;;  %v57_v60 = vld [vmem:[%s9125_s5 + $0x28] sm:$0xff] }
   0x9   :  { %7084 = vmatpush3.bf16.msra.mxu0 %v7081_v8  ;;  %v7882_v57 = vpack.c.bf16 %v75_v55, %v74_v54  ;;  %v56_v59 = vld [vmem:[%s9125_s5 + $0x20] sm:$0xff]  ;;  %v58_v62 = vld [vmem:[%s9125_s5 + $0x30] sm:$0xff]  ;;  %v59_v63 = vld [vmem:[%s9125_s5 + $0x38] sm:$0xff]  ;;  %v7902_v0 = vpack.c.bf16 %v77_v58, %v76_v56 }
   0xa   :  { %7085 = vmatprep.subr.bf16.mxu0 %v7684_v3  ;;  %v7893_v61 = vpack.c.bf16 %v57_v60, %v56_v59  ;;  %v7906_v1 = vpack.c.bf16 %v59_v63, %v58_v62 }
   0xc   :  { %6405 = vmatmul.mubr.msk.f32.vlgmr.msra.gmra.mrb[0].mxu0 %vm95_vm0, %v84_v11  ;;  %7093 = vmatpush3.bf16.msra.mxu1 %v7893_v61 }
   0xd   :  { %7087 = vmatpush3.bf16.msra.mxu0 %v7800_v12  ;;  %6407 = vmatprep.mubr.msk.f32.mxu0 %vm95_vm0, %v85_v13  ;;  %v7931_v13 = vld [vmem:[%s9128_s7 + $0x5] ss:$0 sm:$0xff] }
   0xe   :  { %7088 = vmatprep.subr.bf16.mxu0 %v7684_v3  ;;  %7094 = vmatprep.subr.bf16.mxu1 %v7684_v3 }
  0x10   :  { %6408 = vmatmul.mubr.msk.f32.gmra.mrb[2].mxu0 %vm95_vm0, %v86_v16  ;;  %7096 = vmatpush3.bf16.msra.mxu1 %v7906_v1 }
  0x11   :  { %6410 = vmatprep.mubr.msk.f32.mxu0 %vm95_vm0, %v87_v18  ;;  %7090 = vmatpush3.bf16.msra.mxu0 %v7818_v17 }
  0x12   :  { %7097 = vmatprep.subr.bf16.mxu0 %v7684_v3  ;;  %7103 = vmatprep.subr.bf16.mxu1 %v7684_v3 }
  0x14   :  { %6411 = vmatmul.mubr.msk.f32.gmra.mrb[4].mxu0 %vm95_vm0, %v88_v19  ;;  %v7952_v19 = vld [vmem:[%s9128_s7 + $0x1] ss:$0 sm:$0xff] }
  0x15   :  { %6413 = vmatprep.mubr.msk.f32.mxu0 %vm95_vm0, %v89_v20 }
  0x18   :  { %6414 = vmatmul.mubr.msk.f32.gmra.mrb[6].mxu0 %vm95_vm0, %v90_v21 }
  0x19   :  { %6424 = vmatprep.mubr.msk.f32.mxu0 %vm7685_vm1, %v7686_v4 }
  0x1c   :  { %6425 = vmatmul.mubr.f32.vlgmr.msra.gmra.mrb[8].mxu0 %v7686_v4 }
  0x1d   :  { %6446 = vmatprep.mubr.msk.f32.mxu0 %vm7685_vm1, %v7686_v4  ;;  %7099 = vmatpush3.bf16.msra.mxu0 %v7882_v57 }
  0x1e   :  { %7100 = vmatprep.subr.bf16.mxu0 %v7684_v3 }
  0x21   :  { %7102 = vmatpush3.bf16.msra.mxu0 %v7902_v0 }
  0x22   :  { %7109 = vmatprep.subr.bf16.mxu0 %v7684_v3 }
  0x24   :  { %6447 = vmatmul.mubr.f32.vlgmr.msra.gmra.mrb[10].mxu0 %v7686_v4 }
  0x25   :  { %7111 = vmatpush3.bf16.msra.mxu0 %v7893_v61  ;;  %6468 = vmatprep.mubr.msk.f32.mxu0 %vm7685_vm1, %v7686_v4 }
  0x26   :  { %7112 = vmatprep.subr.bf16.mxu0 %v7684_v3 }
  0x29   :  { %7114 = vmatpush3.bf16.msra.mxu0 %v7906_v1 }
  0x2a   :  { %7121 = vmatprep.subr.bf16.mxu0 %v7684_v3 }
  0x87   :  { %v7921_v5 = vpop.permute.xlu1 %326 }
  0xdf   :  { %v6406_v23 = vpop.f32.mrb[0].mxu0 }
  0xe0   :  { %v7848_v24 = vadd.f32 %v6406_v23, %v5946_v22  ;;  %v186_v25 = vpop.f32.mrb[1].mxu0 }
  0xe1   :  { %v187_v44 = vadd.f32 %v5946_v22, %v186_v25 }
  0xe3   :  { %v6409_v26 = vpop.f32.mrb[2].mxu0 }
  0xe4   :  { %v7850_v27 = vadd.f32 %v6409_v26, %v5946_v22  ;;  %v196_v28 = vpop.f32.mrb[3].mxu0 }
  0xe5   :  { %v7852_v29 = vadd.f32 %v5946_v22, %v196_v28 }
  0xe7   :  { %v6412_v30 = vpop.f32.mrb[4].mxu0 }
  0xe8   :  { %v7854_v31 = vadd.f32 %v6412_v30, %v5946_v22  ;;  %v206_v32 = vpop.f32.mrb[5].mxu0 }
  0xe9   :  { %v7859_v35 = vadd.f32 %v5946_v22, %v206_v32 }
  0xeb   :  { %v6415_v36 = vpop.f32.mrb[6].mxu0 }
  0xec   :  { %v7861_v37 = vadd.f32 %v6415_v36, %v5946_v22  ;;  %v216_v38 = vpop.f32.mrb[7].mxu0 }
  0xed   :  { %v7863_v39 = vadd.f32 %v5946_v22, %v216_v38 }
  0xef   :  { %v294_v41 = vpop.f32.mrb[8].mxu0 }
  0xf0   :  { %v295_v42 = vadd.f32 %v7868_v40, %v294_v41  ;;  %v6426_v43 = vpop.f32.mrb[9].mxu0 }
  0xf2   :  { %306 = vrot.lane.b32.xlu0 %v295_v42, %s7688_s25  ;;  %v298_v45 = vadd.f32 %v295_v42, %v187_v44 }
  0xf4   :  { %v5955_v46 = vmul.f32 -1.442695, %v298_v45 }
  0xf6   :  { %7447 = vpow2.f32 %v5955_v46 }
  0xf7   :  { %v472_v14 = vpop.f32.mrb[10].mxu0 }
  0xf8   :  { %v473_v15 = vadd.f32 %v7931_v13, %v472_v14  ;;  %v6448_v16 = vpop.f32.mrb[11].mxu0 }
 0x100   :  { %v7448_v47 = vpop.eup %7447 }
 0x101   :  { %v302_v48 = vadd.f32 1.0, %v7448_v47 }
 0x103   :  { %7449 = vrcp.f32 %v302_v48  ;;  %v44_v48 = vld [vmem:[%s9129_s2 + $0x8] sm:$0xff] }
 0x10d   :  { %v7450_v49 = vpop.eup %7449 }
 0x10e   :  { %v316_v6 = vsub.f32 1.0, %v7450_v49  ;;  %v322_v8 = vmul.f32 0.0, %v7450_v49 }
 0x164   :  { %v307_v50 = vpop.permute.xlu0 %306 }
 0x165   :  { %v309_v51 = vmul.f32 %v7450_v49, %v307_v50 }
 0x167   :  { %311 = vrot.lane.b32.xlu0 %v309_v51, %s7688_s25 }
 0x1d9   :  { %v312_v52 = vpop.permute.xlu0 %311 }
 0x1da   :  { %v314_v53 = vadd.f32 %v312_v52, %v187_v44 }
 0x1dc   :  { %7451 = vtanh.f32 %v314_v53 }
 0x1e6   :  { %v7452_v2 = vpop.eup %7451 }
 0x1e7   :  { %318 = vrot.lane.b32.xlu1 %v7452_v2, %s7689_s27 }
 0x259   :  { %v319_v7 = vpop.permute.xlu1 %318 }
 0x25a   :  { %v321_v9 = vmul.f32 %v319_v7, %v316_v6 }
 0x25c   :  { %v323_v10 = vadd.f32 %v322_v8, %v321_v9 }
 0x25e   :  { %v7924_v11 = vmul.f32 %v7921_v5, %v323_v10 }
 0x260   :  { %332 = vrot.lane.b32.xlu0 %v7924_v11, %s7689_s27 }
 0x264   :  { %484 = vrot.lane.b32.xlu0 %v473_v15, %s7688_s25 }
 0x2d2   :  { %v333_v18 = vpop.permute.xlu0 %332 }
 0x2d3   :  { %6436 = vmatmul.mubr.msk.f32.vlgmr.msra.gmra.mrb[0].mxu1 %vm95_vm0, %v333_v18 }
 0x2d4   :  { %7105 = vmatpush3.bf16.msra.mxu1 %v7800_v12  ;;  %6457 = vmatprep.mubr.msk.f32.mxu1 %vm7685_vm1, %v7686_v4 }
 0x2d5   :  { %7106 = vmatprep.subr.bf16.mxu1 %v7684_v3 }
 0x2d6   :  { %v485_v34 = vpop.permute.xlu0 %484 }
 0x2d8   :  { %7108 = vmatpush3.bf16.msra.mxu1 %v7818_v17 }
 0x2d9   :  { %7115 = vmatprep.subr.bf16.mxu1 %v7684_v3 }
 0x2db   :  { %6458 = vmatmul.mubr.msk.f32.vlgmr.msra.gmra.mrb[2].mxu1 %vm95_vm0, %v333_v18 }
 0x2dc   :  { %7117 = vmatpush3.bf16.msra.mxu1 %v7882_v57  ;;  %6479 = vmatprep.mubr.msk.f32.mxu1 %vm7685_vm1, %v7686_v4 }
 0x2dd   :  { %7118 = vmatprep.subr.bf16.mxu1 %v7684_v3 }
 0x2e0   :  { %7120 = vmatpush3.bf16.msra.mxu1 %v7902_v0 }
 0x2e1   :  { %7127 = vmatprep.subr.bf16.mxu1 %v7684_v3 }
 0x3a6   :  { %v402_v20 = vpop.f32.mrb[0].mxu1 }
 0x3a7   :  { %v403_v21 = vadd.f32 %v7952_v19, %v402_v20  ;;  %v6437_v22 = vpop.f32.mrb[1].mxu1 }
 0x3a9   :  { %v476_v23 = vadd.f32 %v473_v15, %v403_v21 }
 0x3ab   :  { %v5957_v25 = vmul.f32 -1.442695, %v476_v23 }
 0x3ad   :  { %7453 = vpow2.f32 %v5957_v25 }
 0x3ae   :  { %v570_v26 = vpop.f32.mrb[2].mxu1 }
 0x3af   :  { %v571_v28 = vadd.f32 %v7868_v40, %v570_v26  ;;  %v6459_v30 = vpop.f32.mrb[3].mxu1 }
 0x3b1   :  { %582 = vrot.lane.b32.xlu1 %v571_v28, %s7688_s25  ;;  %v574_v41 = vadd.f32 %v571_v28, %v7848_v24 }
 0x3b3   :  { %v5959_v42 = vmul.f32 -1.442695, %v574_v41 }
 0x3b7   :  { %v7454_v32 = vpop.eup %7453 }
 0x3b8   :  { %v480_v33 = vadd.f32 1.0, %v7454_v32 }
 0x3ba   :  { %7455 = vrcp.f32 %v480_v33 }
 0x3bb   :  { %7457 = vpow2.f32 %v5959_v42 }
 0x3c4   :  { %v7456_v36 = vpop.eup %7455 }
 0x3c5   :  { %v487_v38 = vmul.f32 %v7456_v36, %v485_v34  ;;  %v7458_v43 = vpop.eup %7457  ;;  %v494_v56 = vsub.f32 1.0, %v7456_v36  ;;  %v500_v59 = vmul.f32 0.0, %v7456_v36 }
 0x3c6   :  { %v578_v44 = vadd.f32 1.0, %v7458_v43 }
 0x3c7   :  { %489 = vrot.lane.b32.xlu0 %v487_v38, %s7688_s25 }
 0x3c8   :  { %7459 = vrcp.f32 %v578_v44 }
 0x3d2   :  { %v7460_v45 = vpop.eup %7459 }
 0x3d3   :  { %v592_v2 = vsub.f32 1.0, %v7460_v45 }
 0x423   :  { %v583_v46 = vpop.permute.xlu1 %582 }
 0x424   :  { %v585_v47 = vmul.f32 %v7460_v45, %v583_v46 }
 0x426   :  { %587 = vrot.lane.b32.xlu1 %v585_v47, %s7688_s25 }
 0x42a   :  { %603 = vperm.xlu1 %7445, %v44_v48  }
 0x439   :  { %v490_v49 = vpop.permute.xlu0 %489 }
 0x43a   :  { %v492_v50 = vadd.f32 %v490_v49, %v403_v21  ;;  %v45_v49 = vld [vmem:[%s9129_s2 + $0x10] sm:$0xff] }
 0x43c   :  { %7461 = vtanh.f32 %v492_v50 }
 0x446   :  { %v7462_v51 = vpop.eup %7461 }
 0x447   :  { %496 = vrot.lane.b32.xlu1 %v7462_v51, %s7689_s27 }
 0x498   :  { %v588_v52 = vpop.permute.xlu1 %587 }
 0x499   :  { %v590_v53 = vadd.f32 %v588_v52, %v7848_v24  ;;  %v598_v24 = vmul.f32 %v7460_v45, %v7924_v11 }
 0x49b   :  { %7463 = vtanh.f32 %v590_v53 }
 0x4a5   :  { %v7464_v54 = vpop.eup %7463 }
 0x4a6   :  { %594 = vrot.lane.b32.xlu0 %v7464_v54, %s7689_s27 }
 0x4a9   :  { %v7966_v55 = vpop.permute.xlu1 %603 }
 0x4b9   :  { %v497_v58 = vpop.permute.xlu1 %496 }
 0x4ba   :  { %v499_v60 = vmul.f32 %v497_v58, %v494_v56 }
 0x4bc   :  { %v501_v62 = vadd.f32 %v500_v59, %v499_v60 }
 0x4be   :  { %v7969_v63 = vmul.f32 %v501_v62, %v7921_v5 }
 0x4c0   :  { %684 = vrot.lane.b32.xlu1 %v7969_v63, %s7689_s27 }
 0x518   :  { %v595_v6 = vpop.permute.xlu0 %594 }
 0x519   :  { %v597_v7 = vmul.f32 %v595_v6, %v592_v2 }
 0x51b   :  { %v599_v8 = vadd.f32 %v598_v24, %v597_v7 }
 0x51d   :  { %v600_v9 = vsub.f32 %v599_v8, %v7924_v11 }
 0x51f   :  { %v606_v10 = vmul.f32 %v7966_v55, %v600_v9 }
 0x521   :  { %v7977_v14 = vadd.f32 %v606_v10, %v7924_v11 }
 0x523   :  { %609 = vrot.lane.b32.xlu0 %v7977_v14, %s7689_s27 }
 0x532   :  { %v685_v15 = vpop.permute.xlu1 %684 }
 0x533   :  { %6480 = vmatmul.mubr.msk.f32.vlgmr.msra.gmra.mrb[4].mxu1 %vm95_vm0, %v685_v15 }
 0x534   :  { %7129 = vmatpush3.bf16.msra.mxu1 %v7893_v61  ;;  %6501 = vmatprep.mubr.msk.f32.mxu1 %vm7685_vm1, %v7686_v4 }
 0x535   :  { %7130 = vmatprep.subr.bf16.mxu1 %v7684_v3 }
 0x538   :  { %7132 = vmatpush3.bf16.msra.mxu1 %v7906_v1 }
 0x539   :  { %7139 = vmatprep.subr.bf16.mxu1 %v7684_v3 }
 0x595   :  { %v610_v16 = vpop.permute.xlu0 %609 }
 0x596   :  { %6469 = vmatmul.mubr.msk.f32.vlgmr.msra.gmra.mrb[12].mxu0 %vm95_vm0, %v610_v16 }
 0x597   :  { %7123 = vmatpush3.bf16.msra.mxu0 %v7800_v12  ;;  %6490 = vmatprep.mubr.msk.f32.mxu0 %vm7685_vm1, %v7686_v4 }
 0x598   :  { %7124 = vmatprep.subr.bf16.mxu0 %v7684_v3 }
 0x59b   :  { %7126 = vmatpush3.bf16.msra.mxu0 %v7818_v17 }
 0x59c   :  { %7133 = vmatprep.subr.bf16.mxu0 %v7684_v3 }
 0x59e   :  { %6491 = vmatmul.mubr.msk.f32.vlgmr.msra.gmra.mrb[14].mxu0 %vm95_vm0, %v610_v16 }
 0x59f   :  { %7135 = vmatpush3.bf16.msra.mxu0 %v7882_v57  ;;  %6512 = vmatprep.mubr.msk.f32.mxu0 %vm7685_vm1, %v7686_v4 }
 0x5a0   :  { %7136 = vmatprep.subr.bf16.mxu0 %v7684_v3 }
 0x5a3   :  { %7138 = vmatpush3.bf16.msra.mxu0 %v7902_v0 }
 0x5a4   :  { %7145 = vmatprep.subr.bf16.mxu0 %v7684_v3 }
 0x606   :  { %v754_v11 = vpop.f32.mrb[4].mxu1 }
 0x607   :  { %v755_v18 = vadd.f32 %v7931_v13, %v754_v11  ;;  %v6481_v20 = vpop.f32.mrb[5].mxu1 }
 0x609   :  { %766 = vrot.lane.b32.xlu0 %v755_v18, %s7688_s25 }
 0x669   :  { %v679_v21 = vpop.f32.mrb[12].mxu0 }
 0x66a   :  { %v680_v22 = vadd.f32 %v7952_v19, %v679_v21  ;;  %v6470_v23 = vpop.f32.mrb[13].mxu0 }
 0x66c   :  { %v758_v25 = vadd.f32 %v755_v18, %v680_v22 }
 0x66e   :  { %v5962_v26 = vmul.f32 -1.442695, %v758_v25 }
 0x670   :  { %7465 = vpow2.f32 %v5962_v26 }
 0x671   :  { %v853_v28 = vpop.f32.mrb[14].mxu0 }
 0x672   :  { %v854_v30 = vadd.f32 %v7868_v40, %v853_v28  ;;  %v6492_v32 = vpop.f32.mrb[15].mxu0 }
 0x674   :  { %865 = vrot.lane.b32.xlu1 %v854_v30, %s7688_s25  ;;  %v857_v42 = vadd.f32 %v854_v30, %v7852_v29 }
 0x676   :  { %v5964_v43 = vmul.f32 -1.442695, %v857_v42 }
 0x67a   :  { %v7466_v33 = vpop.eup %7465 }
 0x67b   :  { %v762_v34 = vadd.f32 1.0, %v7466_v33  ;;  %v767_v38 = vpop.permute.xlu0 %766 }
 0x67d   :  { %7467 = vrcp.f32 %v762_v34 }
 0x67e   :  { %7469 = vpow2.f32 %v5964_v43 }
 0x687   :  { %v7468_v36 = vpop.eup %7467 }
 0x688   :  { %v769_v41 = vmul.f32 %v7468_v36, %v767_v38  ;;  %v7470_v44 = vpop.eup %7469  ;;  %v776_v58 = vsub.f32 1.0, %v7468_v36  ;;  %v782_v60 = vmul.f32 %v7468_v36, %v7969_v63 }
 0x689   :  { %v861_v45 = vadd.f32 1.0, %v7470_v44 }
 0x68a   :  { %771 = vrot.lane.b32.xlu0 %v769_v41, %s7688_s25 }
 0x68b   :  { %7471 = vrcp.f32 %v861_v45 }
 0x695   :  { %v7472_v46 = vpop.eup %7471 }
 0x696   :  { %v881_v9 = vmul.f32 %v7472_v46, %v7977_v14 }
 0x6e6   :  { %v866_v47 = vpop.permute.xlu1 %865 }
 0x6e7   :  { %v868_v48 = vmul.f32 %v7472_v46, %v866_v47 }
 0x6e9   :  { %870 = vrot.lane.b32.xlu1 %v868_v48, %s7688_s25 }
 0x6ed   :  { %886 = vperm.xlu1 %7445, %v45_v49  }
 0x6fc   :  { %v772_v50 = vpop.permute.xlu0 %771 }
 0x6fd   :  { %v774_v51 = vadd.f32 %v772_v50, %v680_v22 }
 0x6ff   :  { %7473 = vtanh.f32 %v774_v51 }
 0x709   :  { %v7474_v52 = vpop.eup %7473 }
 0x70a   :  { %778 = vrot.lane.b32.xlu0 %v7474_v52, %s7689_s27  ;;  %v46_v52 = vld [vmem:[%s9129_s2 + $0x18] sm:$0xff] }
 0x75b   :  { %v871_v53 = vpop.permute.xlu1 %870 }
 0x75c   :  { %v873_v54 = vadd.f32 %v871_v53, %v7852_v29  ;;  %v875_v29 = vsub.f32 1.0, %v7472_v46 }
 0x75e   :  { %7475 = vtanh.f32 %v873_v54 }
 0x768   :  { %v7476_v56 = vpop.eup %7475 }
 0x769   :  { %877 = vrot.lane.b32.xlu0 %v7476_v56, %s7689_s27 }
 0x76c   :  { %v8026_v11 = vpop.permute.xlu1 %886 }
 0x77c   :  { %v779_v59 = vpop.permute.xlu0 %778 }
 0x77d   :  { %v781_v62 = vmul.f32 %v779_v59, %v776_v58 }
 0x77f   :  { %v783_v2 = vadd.f32 %v782_v60, %v781_v62 }
 0x781   :  { %v784_v6 = vsub.f32 %v783_v2, %v7969_v63 }
 0x783   :  { %v785_v24 = vmul.f32 %v784_v6, %v7966_v55 }
 0x785   :  { %v8020_v7 = vadd.f32 %v785_v24, %v7969_v63 }
 0x787   :  { %967 = vrot.lane.b32.xlu1 %v8020_v7, %s7689_s27 }
 0x7db   :  { %v878_v8 = vpop.permute.xlu0 %877 }
 0x7dc   :  { %v880_v10 = vmul.f32 %v878_v8, %v875_v29 }
 0x7de   :  { %v882_v15 = vadd.f32 %v881_v9, %v880_v10 }
 0x7e0   :  { %v883_v16 = vsub.f32 %v882_v15, %v7977_v14 }
 0x7e2   :  { %v889_v18 = vmul.f32 %v8026_v11, %v883_v16 }
 0x7e4   :  { %v8030_v20 = vadd.f32 %v889_v18, %v7977_v14 }
 0x7e6   :  { %892 = vrot.lane.b32.xlu0 %v8030_v20, %s7689_s27 }
 0x7f9   :  { %v968_v63 = vpop.permute.xlu1 %967 }
 0x7fa   :  { %6513 = vmatmul.mubr.msk.f32.vlgmr.msra.gmra.mrb[16].mxu0 %vm95_vm0, %v968_v63 }
 0x7fb   :  { %7147 = vmatpush3.bf16.msra.mxu0 %v7893_v61  ;;  %6534 = vmatprep.mubr.msk.f32.mxu0 %vm7685_vm1, %v7686_v4 }
 0x7fc   :  { %7148 = vmatprep.subr.bf16.mxu0 %v7684_v3 }
 0x7ff   :  { %7150 = vmatpush3.bf16.msra.mxu0 %v7906_v1 }
 0x800   :  { %7157 = vmatprep.subr.bf16.mxu0 %v7684_v3 }
 0x858   :  { %v893_v21 = vpop.permute.xlu0 %892 }
 0x859   :  { %6502 = vmatmul.mubr.msk.f32.vlgmr.msra.gmra.mrb[6].mxu1 %vm95_vm0, %v893_v21 }
 0x85a   :  { %7141 = vmatpush3.bf16.msra.mxu1 %v7800_v12  ;;  %6523 = vmatprep.mubr.msk.f32.mxu1 %vm7685_vm1, %v7686_v4 }
 0x85b   :  { %7142 = vmatprep.subr.bf16.mxu1 %v7684_v3 }
 0x85e   :  { %7144 = vmatpush3.bf16.msra.mxu1 %v7818_v17 }
 0x85f   :  { %7151 = vmatprep.subr.bf16.mxu1 %v7684_v3 }
 0x861   :  { %6524 = vmatmul.mubr.msk.f32.vlgmr.msra.gmra.mrb[8].mxu1 %vm95_vm0, %v893_v21 }
 0x862   :  { %7153 = vmatpush3.bf16.msra.mxu1 %v7882_v57  ;;  %6545 = vmatprep.mubr.msk.f32.mxu1 %vm7685_vm1, %v7686_v4 }
 0x863   :  { %7154 = vmatprep.subr.bf16.mxu1 %v7684_v3 }
 0x866   :  { %7156 = vmatpush3.bf16.msra.mxu1 %v7902_v0 }
 0x867   :  { %7163 = vmatprep.subr.bf16.mxu1 %v7684_v3 }
 0x8cd   :  { %v1037_v14 = vpop.f32.mrb[16].mxu0 }
 0x8ce   :  { %v1038_v22 = vadd.f32 %v7931_v13, %v1037_v14  ;;  %v6514_v23 = vpop.f32.mrb[17].mxu0 }
 0x8d0   :  { %1049 = vrot.lane.b32.xlu1 %v1038_v22, %s7688_s25 }
 0x92c   :  { %v962_v25 = vpop.f32.mrb[6].mxu1 }
 0x92d   :  { %v963_v26 = vadd.f32 %v7952_v19, %v962_v25  ;;  %v6503_v28 = vpop.f32.mrb[7].mxu1 }
 0x92f   :  { %v1041_v30 = vadd.f32 %v1038_v22, %v963_v26 }
 0x931   :  { %v5967_v32 = vmul.f32 -1.442695, %v1041_v30 }
 0x933   :  { %7477 = vpow2.f32 %v5967_v32 }
 0x934   :  { %v1136_v33 = vpop.f32.mrb[8].mxu1 }
 0x935   :  { %v1137_v34 = vadd.f32 %v7868_v40, %v1136_v33  ;;  %v6525_v36 = vpop.f32.mrb[9].mxu1 }
 0x937   :  { %1148 = vrot.lane.b32.xlu0 %v1137_v34, %s7688_s25  ;;  %v1140_v45 = vadd.f32 %v1137_v34, %v7850_v27 }
 0x939   :  { %v5969_v46 = vmul.f32 -1.442695, %v1140_v45 }
 0x93d   :  { %v7478_v38 = vpop.eup %7477 }
 0x93e   :  { %v1045_v41 = vadd.f32 1.0, %v7478_v38 }
 0x940   :  { %7479 = vrcp.f32 %v1045_v41 }
 0x941   :  { %7481 = vpow2.f32 %v5969_v46 }
 0x942   :  { %v1050_v43 = vpop.permute.xlu1 %1049 }
 0x94a   :  { %v7480_v42 = vpop.eup %7479 }
 0x94b   :  { %v1052_v44 = vmul.f32 %v7480_v42, %v1050_v43  ;;  %v7482_v47 = vpop.eup %7481  ;;  %v1059_v62 = vsub.f32 1.0, %v7480_v42  ;;  %v1065_v6 = vmul.f32 %v7480_v42, %v8020_v7 }
 0x94c   :  { %v1144_v48 = vadd.f32 1.0, %v7482_v47 }
 0x94d   :  { %1054 = vrot.lane.b32.xlu1 %v1052_v44, %s7688_s25 }
 0x94e   :  { %7483 = vrcp.f32 %v1144_v48 }
 0x958   :  { %v7484_v49 = vpop.eup %7483 }
 0x959   :  { %v1164_v16 = vmul.f32 %v7484_v49, %v8030_v20 }
 0x9a9   :  { %v1149_v50 = vpop.permute.xlu0 %1148 }
 0x9aa   :  { %v1151_v51 = vmul.f32 %v7484_v49, %v1149_v50 }
 0x9ac   :  { %1153 = vrot.lane.b32.xlu0 %v1151_v51, %s7688_s25 }
 0x9b0   :  { %1169 = vperm.xlu0 %7446, %v46_v52  }
 0x9bf   :  { %v1055_v53 = vpop.permute.xlu1 %1054 }
 0x9c0   :  { %v1057_v54 = vadd.f32 %v1055_v53, %v963_v26 }
 0x9c2   :  { %7485 = vtanh.f32 %v1057_v54 }
 0x9cc   :  { %v7486_v56 = vpop.eup %7485 }
 0x9cd   :  { %1061 = vrot.lane.b32.xlu1 %v7486_v56, %s7689_s27  ;;  %v47_v56 = vld [vmem:[%s9129_s2 + $0x20] sm:$0xff] }
 0xa1e   :  { %v1154_v58 = vpop.permute.xlu0 %1153 }
 0xa1f   :  { %v1156_v59 = vadd.f32 %v1154_v58, %v7850_v27  ;;  %v1158_v27 = vsub.f32 1.0, %v7484_v49 }
 0xa21   :  { %7487 = vtanh.f32 %v1156_v59 }
 0xa2b   :  { %v7488_v60 = vpop.eup %7487 }
 0xa2c   :  { %1160 = vrot.lane.b32.xlu1 %v7488_v60, %s7689_s27 }
 0xa2f   :  { %v8078_v21 = vpop.permute.xlu0 %1169 }
 0xa3f   :  { %v1062_v2 = vpop.permute.xlu1 %1061 }
 0xa40   :  { %v1064_v24 = vmul.f32 %v1062_v2, %v1059_v62 }
 0xa42   :  { %v1066_v29 = vadd.f32 %v1065_v6, %v1064_v24 }
 0xa44   :  { %v1067_v8 = vsub.f32 %v1066_v29, %v8020_v7 }
 0xa46   :  { %v1068_v9 = vmul.f32 %v1067_v8, %v8026_v11 }
 0xa48   :  { %v8073_v10 = vadd.f32 %v1068_v9, %v8020_v7 }
 0xa4a   :  { %1250 = vrot.lane.b32.xlu1 %v8073_v10, %s7689_s27 }
 0xa9e   :  { %v1161_v15 = vpop.permute.xlu1 %1160 }
 0xa9f   :  { %v1163_v18 = vmul.f32 %v1161_v15, %v1158_v27 }
 0xaa1   :  { %v1165_v63 = vadd.f32 %v1164_v16, %v1163_v18 }
 0xaa3   :  { %v1166_v14 = vsub.f32 %v1165_v63, %v8030_v20 }
 0xaa5   :  { %v1172_v22 = vmul.f32 %v8078_v21, %v1166_v14 }
 0xaa7   :  { %v8083_v23 = vadd.f32 %v1172_v22, %v8030_v20 }
 0xaa9   :  { %1175 = vrot.lane.b32.xlu0 %v8083_v23, %s7689_s27 }
 0xabc   :  { %v1251_v7 = vpop.permute.xlu1 %1250 }
 0xabd   :  { %6546 = vmatmul.mubr.msk.f32.vlgmr.msra.gmra.mrb[10].mxu1 %vm95_vm0, %v1251_v7 }
 0xabe   :  { %7165 = vmatpush3.bf16.msra.mxu1 %v7893_v61  ;;  %6567 = vmatprep.mubr.msk.f32.mxu1 %vm7685_vm1, %v7686_v4 }
 0xabf   :  { %7166 = vmatprep.subr.bf16.mxu1 %v7684_v3 }
 0xac2   :  { %7168 = vmatpush3.bf16.msra.mxu1 %v7906_v1 }
 0xac3   :  { %7175 = vmatprep.subr.bf16.mxu1 %v7684_v3 }
 0xb1b   :  { %v1176_v25 = vpop.permute.xlu0 %1175 }
 0xb1c   :  { %6535 = vmatmul.mubr.msk.f32.vlgmr.msra.gmra.mrb[18].mxu0 %vm95_vm0, %v1176_v25 }
 0xb1d   :  { %7159 = vmatpush3.bf16.msra.mxu0 %v7800_v12  ;;  %6556 = vmatprep.mubr.msk.f32.mxu0 %vm7685_vm1, %v7686_v4 }
 0xb1e   :  { %7160 = vmatprep.subr.bf16.mxu0 %v7684_v3 }
 0xb21   :  { %7162 = vmatpush3.bf16.msra.mxu0 %v7818_v17 }
 0xb22   :  { %7169 = vmatprep.subr.bf16.mxu0 %v7684_v3 }
 0xb24   :  { %6557 = vmatmul.mubr.msk.f32.vlgmr.msra.gmra.mrb[20].mxu0 %vm95_vm0, %v1176_v25 }
 0xb25   :  { %7171 = vmatpush3.bf16.msra.mxu0 %v7882_v57  ;;  %6578 = vmatprep.mubr.msk.f32.mxu0 %vm7685_vm1, %v7686_v4 }
 0xb26   :  { %7172 = vmatprep.subr.bf16.mxu0 %v7684_v3 }
 0xb29   :  { %7174 = vmatpush3.bf16.msra.mxu0 %v7902_v0 }
 0xb2a   :  { %7181 = vmatprep.subr.bf16.mxu0 %v7684_v3 }
 0xb90   :  { %v1320_v20 = vpop.f32.mrb[10].mxu1 }
 0xb91   :  { %v1321_v26 = vadd.f32 %v7931_v13, %v1320_v20  ;;  %v6547_v28 = vpop.f32.mrb[11].mxu1 }
 0xb93   :  { %1332 = vrot.lane.b32.xlu1 %v1321_v26, %s7688_s25 }
 0xbef   :  { %v1245_v30 = vpop.f32.mrb[18].mxu0 }
 0xbf0   :  { %v1246_v32 = vadd.f32 %v7952_v19, %v1245_v30  ;;  %v6536_v33 = vpop.f32.mrb[19].mxu0 }
 0xbf2   :  { %v1324_v34 = vadd.f32 %v1321_v26, %v1246_v32 }
 0xbf4   :  { %v5972_v36 = vmul.f32 -1.442695, %v1324_v34 }
 0xbf6   :  { %7489 = vpow2.f32 %v5972_v36 }
 0xbf7   :  { %v1419_v38 = vpop.f32.mrb[20].mxu0 }
 0xbf8   :  { %v1420_v41 = vadd.f32 %v7868_v40, %v1419_v38  ;;  %v6558_v42 = vpop.f32.mrb[21].mxu0 }
 0xbfa   :  { %1431 = vrot.lane.b32.xlu0 %v1420_v41, %s7688_s25  ;;  %v1423_v48 = vadd.f32 %v1420_v41, %v7859_v35 }
 0xbfc   :  { %v5974_v49 = vmul.f32 -1.442695, %v1423_v48 }
 0xc00   :  { %v7490_v43 = vpop.eup %7489 }
 0xc01   :  { %v1328_v44 = vadd.f32 1.0, %v7490_v43 }
 0xc03   :  { %7491 = vrcp.f32 %v1328_v44 }
 0xc04   :  { %7493 = vpow2.f32 %v5974_v49 }
 0xc05   :  { %v1333_v46 = vpop.permute.xlu1 %1332 }
 0xc0d   :  { %v7492_v45 = vpop.eup %7491 }
 0xc0e   :  { %v1335_v47 = vmul.f32 %v7492_v45, %v1333_v46  ;;  %v7494_v50 = vpop.eup %7493  ;;  %v1342_v24 = vsub.f32 1.0, %v7492_v45  ;;  %v1348_v8 = vmul.f32 %v7492_v45, %v8073_v10 }
 0xc0f   :  { %v1427_v51 = vadd.f32 1.0, %v7494_v50 }
 0xc10   :  { %1337 = vrot.lane.b32.xlu1 %v1335_v47, %s7688_s25 }
 0xc11   :  { %7495 = vrcp.f32 %v1427_v51 }
 0xc1b   :  { %v7496_v52 = vpop.eup %7495 }
 0xc1c   :  { %v1447_v14 = vmul.f32 %v7496_v52, %v8083_v23 }
 0xc6c   :  { %v1432_v53 = vpop.permute.xlu0 %1431 }
 0xc6d   :  { %v1434_v54 = vmul.f32 %v7496_v52, %v1432_v53 }
 0xc6f   :  { %1436 = vrot.lane.b32.xlu0 %v1434_v54, %s7688_s25 }
 0xc73   :  { %1452 = vperm.xlu0 %7446, %v47_v56  }
 0xc82   :  { %v1338_v58 = vpop.permute.xlu1 %1337 }
 0xc83   :  { %v1340_v59 = vadd.f32 %v1338_v58, %v1246_v32 }
 0xc85   :  { %7497 = vtanh.f32 %v1340_v59 }
 0xc8f   :  { %v7498_v60 = vpop.eup %7497 }
 0xc90   :  { %1344 = vrot.lane.b32.xlu1 %v7498_v60, %s7689_s27  ;;  %v48_v60 = vld [vmem:[%s9129_s2 + $0x28] sm:$0xff] }
 0xce1   :  { %v1437_v62 = vpop.permute.xlu0 %1436 }
 0xce2   :  { %v1439_v2 = vadd.f32 %v1437_v62, %v7859_v35  ;;  %v1441_v35 = vsub.f32 1.0, %v7496_v52 }
 0xce4   :  { %7499 = vtanh.f32 %v1439_v2 }
 0xcee   :  { %v7500_v6 = vpop.eup %7499 }
 0xcef   :  { %1443 = vrot.lane.b32.xlu1 %v7500_v6, %s7689_s27 }
 0xcf2   :  { %v8132_v20 = vpop.permute.xlu0 %1452 }
 0xd02   :  { %v1345_v29 = vpop.permute.xlu1 %1344 }
 0xd03   :  { %v1347_v9 = vmul.f32 %v1345_v29, %v1342_v24 }
 0xd05   :  { %v1349_v27 = vadd.f32 %v1348_v8, %v1347_v9 }
 0xd07   :  { %v1350_v15 = vsub.f32 %v1349_v27, %v8073_v10 }
 0xd09   :  { %v1351_v16 = vmul.f32 %v1350_v15, %v8078_v21 }
 0xd0b   :  { %v8126_v18 = vadd.f32 %v1351_v16, %v8073_v10 }
 0xd0d   :  { %1533 = vrot.lane.b32.xlu0 %v8126_v18, %s7689_s27 }
 0xd61   :  { %v1444_v63 = vpop.permute.xlu1 %1443 }
 0xd62   :  { %v1446_v22 = vmul.f32 %v1444_v63, %v1441_v35 }
 0xd64   :  { %v1448_v7 = vadd.f32 %v1447_v14, %v1446_v22 }
 0xd66   :  { %v1449_v25 = vsub.f32 %v1448_v7, %v8083_v23 }
 0xd68   :  { %v1455_v26 = vmul.f32 %v8132_v20, %v1449_v25 }
 0xd6a   :  { %v8136_v28 = vadd.f32 %v1455_v26, %v8083_v23 }
 0xd6c   :  { %1458 = vrot.lane.b32.xlu1 %v8136_v28, %s7689_s27 }
 0xd7f   :  { %v1534_v10 = vpop.permute.xlu0 %1533 }
 0xd80   :  { %6579 = vmatmul.mubr.msk.f32.vlgmr.msra.gmra.mrb[22].mxu0 %vm95_vm0, %v1534_v10 }
 0xd81   :  { %7183 = vmatpush3.bf16.msra.mxu0 %v7893_v61  ;;  %6600 = vmatprep.mubr.msk.f32.mxu0 %vm7685_vm1, %v7686_v4 }
 0xd82   :  { %7184 = vmatprep.subr.bf16.mxu0 %v7684_v3 }
 0xd85   :  { %7186 = vmatpush3.bf16.msra.mxu0 %v7906_v1 }
 0xd86   :  { %7193 = vmatprep.subr.bf16.mxu0 %v7684_v3 }
 0xdde   :  { %v1459_v30 = vpop.permute.xlu1 %1458 }
 0xddf   :  { %6568 = vmatmul.mubr.msk.f32.vlgmr.msra.gmra.mrb[12].mxu1 %vm95_vm0, %v1459_v30 }
 0xde0   :  { %7177 = vmatpush3.bf16.msra.mxu1 %v7800_v12  ;;  %6589 = vmatprep.mubr.msk.f32.mxu1 %vm7685_vm1, %v7686_v4 }
 0xde1   :  { %7178 = vmatprep.subr.bf16.mxu1 %v7684_v3 }
 0xde4   :  { %7180 = vmatpush3.bf16.msra.mxu1 %v7818_v17 }
 0xde5   :  { %7187 = vmatprep.subr.bf16.mxu1 %v7684_v3 }
 0xde7   :  { %6590 = vmatmul.mubr.msk.f32.vlgmr.msra.gmra.mrb[14].mxu1 %vm95_vm0, %v1459_v30 }
 0xde8   :  { %7189 = vmatpush3.bf16.msra.mxu1 %v7882_v57  ;;  %6611 = vmatprep.mubr.msk.f32.mxu1 %vm7685_vm1, %v7686_v4 }
 0xde9   :  { %7190 = vmatprep.subr.bf16.mxu1 %v7684_v3 }
 0xdec   :  { %7192 = vmatpush3.bf16.msra.mxu1 %v7902_v0 }
 0xded   :  { %7199 = vmatprep.subr.bf16.mxu1 %v7684_v3 }
 0xe53   :  { %v1603_v23 = vpop.f32.mrb[22].mxu0 }
 0xe54   :  { %v1604_v32 = vadd.f32 %v7931_v13, %v1603_v23  ;;  %v6580_v33 = vpop.f32.mrb[23].mxu0 }
 0xe56   :  { %1615 = vrot.lane.b32.xlu0 %v1604_v32, %s7688_s25 }
 0xeb2   :  { %v1528_v34 = vpop.f32.mrb[12].mxu1 }
 0xeb3   :  { %v1529_v36 = vadd.f32 %v7952_v19, %v1528_v34  ;;  %v6569_v38 = vpop.f32.mrb[13].mxu1 }
 0xeb5   :  { %v1607_v41 = vadd.f32 %v1604_v32, %v1529_v36 }
 0xeb7   :  { %v5977_v42 = vmul.f32 -1.442695, %v1607_v41 }
 0xeb9   :  { %7501 = vpow2.f32 %v5977_v42 }
 0xeba   :  { %v1702_v43 = vpop.f32.mrb[14].mxu1 }
 0xebb   :  { %v1703_v44 = vadd.f32 %v7868_v40, %v1702_v43  ;;  %v6591_v45 = vpop.f32.mrb[15].mxu1 }
 0xebd   :  { %1714 = vrot.lane.b32.xlu1 %v1703_v44, %s7688_s25  ;;  %v1706_v51 = vadd.f32 %v1703_v44, %v7854_v31 }
 0xebf   :  { %v5979_v52 = vmul.f32 -1.442695, %v1706_v51 }
 0xec3   :  { %v7502_v46 = vpop.eup %7501 }
 0xec4   :  { %v1611_v47 = vadd.f32 1.0, %v7502_v46 }
 0xec6   :  { %7503 = vrcp.f32 %v1611_v47 }
 0xec7   :  { %7505 = vpow2.f32 %v5979_v52 }
 0xec8   :  { %v1616_v49 = vpop.permute.xlu0 %1615 }
 0xed0   :  { %v7504_v48 = vpop.eup %7503 }
 0xed1   :  { %v1618_v50 = vmul.f32 %v7504_v48, %v1616_v49  ;;  %v7506_v53 = vpop.eup %7505  ;;  %v1625_v9 = vsub.f32 1.0, %v7504_v48  ;;  %v1631_v15 = vmul.f32 %v7504_v48, %v8126_v18 }
 0xed2   :  { %v1710_v54 = vadd.f32 1.0, %v7506_v53 }
 0xed3   :  { %1620 = vrot.lane.b32.xlu0 %v1618_v50, %s7688_s25 }
 0xed4   :  { %7507 = vrcp.f32 %v1710_v54 }
 0xede   :  { %v7508_v56 = vpop.eup %7507 }
 0xedf   :  { %v1730_v25 = vmul.f32 %v7508_v56, %v8136_v28 }
 0xf2f   :  { %v1715_v58 = vpop.permute.xlu1 %1714 }
 0xf30   :  { %v1717_v59 = vmul.f32 %v7508_v56, %v1715_v58 }
 0xf32   :  { %1719 = vrot.lane.b32.xlu1 %v1717_v59, %s7688_s25 }
 0xf36   :  { %1735 = vperm.xlu1 %7445, %v48_v60  }
 0xf45   :  { %v1621_v62 = vpop.permute.xlu0 %1620 }
 0xf46   :  { %v1623_v2 = vadd.f32 %v1621_v62, %v1529_v36 }
 0xf48   :  { %7509 = vtanh.f32 %v1623_v2  ;;  %v49_v2 = vld [vmem:[%s9129_s2 + $0x30] sm:$0xff] }
 0xf52   :  { %v7510_v6 = vpop.eup %7509 }
 0xf53   :  { %1627 = vrot.lane.b32.xlu0 %v7510_v6, %s7689_s27 }
 0xfa4   :  { %v1720_v24 = vpop.permute.xlu1 %1719 }
 0xfa5   :  { %v1722_v29 = vadd.f32 %v1720_v24, %v7854_v31  ;;  %v1724_v31 = vsub.f32 1.0, %v7508_v56 }
 0xfa7   :  { %7511 = vtanh.f32 %v1722_v29 }
 0xfb1   :  { %v7512_v8 = vpop.eup %7511 }
 0xfb2   :  { %1726 = vrot.lane.b32.xlu0 %v7512_v8, %s7689_s27 }
 0xfb5   :  { %v8185_v23 = vpop.permute.xlu1 %1735 }
 0xfc5   :  { %v1628_v27 = vpop.permute.xlu0 %1627 }
 0xfc6   :  { %v1630_v16 = vmul.f32 %v1628_v27, %v1625_v9 }
 0xfc8   :  { %v1632_v35 = vadd.f32 %v1631_v15, %v1630_v16 }
 0xfca   :  { %v1633_v63 = vsub.f32 %v1632_v35, %v8126_v18 }
 0xfcc   :  { %v1634_v14 = vmul.f32 %v1633_v63, %v8132_v20 }
 0xfce   :  { %v8179_v22 = vadd.f32 %v1634_v14, %v8126_v18 }
 0xfd0   :  { %1816 = vrot.lane.b32.xlu1 %v8179_v22, %s7689_s27 }
0x1024   :  { %v1727_v7 = vpop.permute.xlu0 %1726 }
0x1025   :  { %v1729_v26 = vmul.f32 %v1727_v7, %v1724_v31 }
0x1027   :  { %v1731_v10 = vadd.f32 %v1730_v25, %v1729_v26 }
0x1029   :  { %v1732_v30 = vsub.f32 %v1731_v10, %v8136_v28 }
0x102b   :  { %v1738_v32 = vmul.f32 %v8185_v23, %v1732_v30 }
0x102d   :  { %v8189_v33 = vadd.f32 %v1738_v32, %v8136_v28 }
0x102f   :  { %1741 = vrot.lane.b32.xlu0 %v8189_v33, %s7689_s27 }
0x1042   :  { %v1817_v18 = vpop.permute.xlu1 %1816 }
0x1043   :  { %6612 = vmatmul.mubr.msk.f32.vlgmr.msra.gmra.mrb[16].mxu1 %vm95_vm0, %v1817_v18 }
0x1044   :  { %7201 = vmatpush3.bf16.msra.mxu1 %v7893_v61  ;;  %6633 = vmatprep.mubr.msk.f32.mxu1 %vm7685_vm1, %v7686_v4 }
0x1045   :  { %7202 = vmatprep.subr.bf16.mxu1 %v7684_v3 }
0x1048   :  { %7204 = vmatpush3.bf16.msra.mxu1 %v7906_v1 }
0x1049   :  { %7211 = vmatprep.subr.bf16.mxu1 %v7684_v3 }
0x10a1   :  { %v1742_v34 = vpop.permute.xlu0 %1741 }
0x10a2   :  { %6601 = vmatmul.mubr.msk.f32.vlgmr.msra.gmra.mrb[24].mxu0 %vm95_vm0, %v1742_v34 }
0x10a3   :  { %7195 = vmatpush3.bf16.msra.mxu0 %v7800_v12  ;;  %6622 = vmatprep.mubr.msk.f32.mxu0 %vm7685_vm1, %v7686_v4 }
0x10a4   :  { %7196 = vmatprep.subr.bf16.mxu0 %v7684_v3 }
0x10a7   :  { %7198 = vmatpush3.bf16.msra.mxu0 %v7818_v17 }
0x10a8   :  { %7205 = vmatprep.subr.bf16.mxu0 %v7684_v3 }
0x10aa   :  { %6623 = vmatmul.mubr.msk.f32.vlgmr.msra.gmra.mrb[26].mxu0 %vm95_vm0, %v1742_v34 }
0x10ab   :  { %7207 = vmatpush3.bf16.msra.mxu0 %v7882_v57  ;;  %6644 = vmatprep.mubr.msk.f32.mxu0 %vm7685_vm1, %v7686_v4 }
0x10ac   :  { %7208 = vmatprep.subr.bf16.mxu0 %v7684_v3 }
0x10af   :  { %7210 = vmatpush3.bf16.msra.mxu0 %v7902_v0 }
0x10b0   :  { %7217 = vmatprep.subr.bf16.mxu0 %v7684_v3 }
0x1116   :  { %v1886_v28 = vpop.f32.mrb[16].mxu1 }
0x1117   :  { %v1887_v36 = vadd.f32 %v7931_v13, %v1886_v28  ;;  %v6613_v38 = vpop.f32.mrb[17].mxu1 }
0x1119   :  { %1898 = vrot.lane.b32.xlu1 %v1887_v36, %s7688_s25 }
0x1175   :  { %v1811_v41 = vpop.f32.mrb[24].mxu0 }
0x1176   :  { %v1812_v42 = vadd.f32 %v7952_v19, %v1811_v41  ;;  %v6602_v43 = vpop.f32.mrb[25].mxu0 }
0x1178   :  { %v1890_v44 = vadd.f32 %v1887_v36, %v1812_v42 }
0x117a   :  { %v5982_v45 = vmul.f32 -1.442695, %v1890_v44 }
0x117c   :  { %7513 = vpow2.f32 %v5982_v45 }
0x117d   :  { %v1985_v46 = vpop.f32.mrb[26].mxu0 }
0x117e   :  { %v1986_v47 = vadd.f32 %v7868_v40, %v1985_v46  ;;  %v6624_v48 = vpop.f32.mrb[27].mxu0 }
0x1180   :  { %1997 = vrot.lane.b32.xlu0 %v1986_v47, %s7688_s25  ;;  %v1989_v54 = vadd.f32 %v1986_v47, %v7863_v39 }
0x1182   :  { %v5984_v56 = vmul.f32 -1.442695, %v1989_v54 }
0x1186   :  { %v7514_v49 = vpop.eup %7513 }
0x1187   :  { %v1894_v50 = vadd.f32 1.0, %v7514_v49 }
0x1189   :  { %7515 = vrcp.f32 %v1894_v50 }
0x118a   :  { %7517 = vpow2.f32 %v5984_v56 }
0x118b   :  { %v1899_v52 = vpop.permute.xlu1 %1898 }
0x1193   :  { %v7516_v51 = vpop.eup %7515 }
0x1194   :  { %v1901_v53 = vmul.f32 %v7516_v51, %v1899_v52  ;;  %v7518_v58 = vpop.eup %7517  ;;  %v1908_v15 = vsub.f32 1.0, %v7516_v51  ;;  %v1914_v35 = vmul.f32 %v7516_v51, %v8179_v22 }
0x1195   :  { %v1993_v59 = vadd.f32 1.0, %v7518_v58  ;;  %v50_v58 = vld [vmem:[%s9129_s2 + $0x38] sm:$0xff]  ;;  %s7690_s2 = smov 112  }
0x1196   :  { %1903 = vrot.lane.b32.xlu1 %v1901_v53, %s7688_s25 }
0x1197   :  { %7519 = vrcp.f32 %v1993_v59 }
0x11a1   :  { %v7520_v60 = vpop.eup %7519 }
0x11a2   :  { %v2013_v10 = vmul.f32 %v7520_v60, %v8189_v33 }
0x11f2   :  { %v1998_v40 = vpop.permute.xlu0 %1997 }
0x11f3   :  { %v2000_v62 = vmul.f32 %v7520_v60, %v1998_v40 }
0x11f5   :  { %2002 = vrot.lane.b32.xlu0 %v2000_v62, %s7688_s25 }
0x11f9   :  { %2018 = vperm.xlu0 %7446, %v49_v2  }
0x1208   :  { %v1904_v6 = vpop.permute.xlu1 %1903 }
0x1209   :  { %v1906_v24 = vadd.f32 %v1904_v6, %v1812_v42 }
0x120b   :  { %7521 = vtanh.f32 %v1906_v24 }
0x1215   :  { %v7522_v29 = vpop.eup %7521 }
0x1216   :  { %1910 = vrot.lane.b32.xlu1 %v7522_v29, %s7689_s27 }
0x1267   :  { %v2003_v8 = vpop.permute.xlu0 %2002 }
0x1268   :  { %v2005_v9 = vadd.f32 %v2003_v8, %v7863_v39  ;;  %v2007_v39 = vsub.f32 1.0, %v7520_v60 }
0x126a   :  { %7523 = vtanh.f32 %v2005_v9 }
0x1274   :  { %v7524_v27 = vpop.eup %7523 }
0x1275   :  { %2009 = vrot.lane.b32.xlu1 %v7524_v27, %s7689_s27 }
0x1278   :  { %v8238_v34 = vpop.permute.xlu0 %2018 }
0x1288   :  { %v1911_v16 = vpop.permute.xlu1 %1910 }
0x1289   :  { %v1913_v63 = vmul.f32 %v1911_v16, %v1908_v15 }
0x128b   :  { %v1915_v14 = vadd.f32 %v1914_v35, %v1913_v63 }
0x128d   :  { %v1916_v31 = vsub.f32 %v1915_v14, %v8179_v22  ;;  %v2574_v14 = vld [vmem:[%s9131_s3] sm:$0xff] }
0x128f   :  { %v1917_v7 = vmul.f32 %v1916_v31, %v8185_v23 }
0x1291   :  { %v8232_v25 = vadd.f32 %v1917_v7, %v8179_v22 }
0x1293   :  { %2099 = vrot.lane.b32.xlu0 %v8232_v25, %s7689_s27 }
0x12e7   :  { %v2010_v26 = vpop.permute.xlu1 %2009 }
0x12e8   :  { %v2012_v30 = vmul.f32 %v2010_v26, %v2007_v39 }
0x12ea   :  { %v2014_v32 = vadd.f32 %v2013_v10, %v2012_v30 }
0x12ec   :  { %v2015_v18 = vsub.f32 %v2014_v32, %v8189_v33 }
0x12ee   :  { %v2021_v28 = vmul.f32 %v8238_v34, %v2015_v18 }
0x12f0   :  { %v8242_v36 = vadd.f32 %v2021_v28, %v8189_v33  ;;  %v2662_v28 = vld [vmem:[%s9130_s8 + $0x48] sm:$0xff] }
0x12f2   :  { %2024 = vrot.lane.b32.xlu1 %v8242_v36, %s7689_s27 }
0x1305   :  { %v2100_v22 = vpop.permute.xlu0 %2099 }
0x1306   :  { %6645 = vmatmul.mubr.msk.f32.vlgmr.msra.gmra.mrb[28].mxu0 %vm95_vm0, %v2100_v22  ;;  %v2663_v22 = vld [vmem:[%s9130_s8 + $0x50] sm:$0xff] }
0x1307   :  { %7219 = vmatpush3.bf16.msra.mxu0 %v7893_v61  ;;  %6666 = vmatprep.mubr.msk.f32.mxu0 %vm7685_vm1, %v7686_v4 }
0x1308   :  { %7220 = vmatprep.subr.bf16.mxu0 %v7684_v3 }
0x130b   :  { %7222 = vmatpush3.bf16.msra.mxu0 %v7906_v1 }
0x130c   :  { %7229 = vmatprep.subr.bf16.mxu0 %v7684_v3 }
0x1364   :  { %v2025_v38 = vpop.permute.xlu1 %2024 }
0x1365   :  { %6634 = vmatmul.mubr.msk.f32.vlgmr.msra.gmra.mrb[18].mxu1 %vm95_vm0, %v2025_v38 }
0x1366   :  { %7213 = vmatpush3.bf16.msra.mxu1 %v7800_v12  ;;  %6655 = vmatprep.mubr.msk.f32.mxu1 %vm7685_vm1, %v7686_v4 }
0x1367   :  { %7214 = vmatprep.subr.bf16.mxu1 %v7684_v3 }
0x136a   :  { %7216 = vmatpush3.bf16.msra.mxu1 %v7818_v17 }
0x136b   :  { %7223 = vmatprep.subr.bf16.mxu1 %v7684_v3 }
0x136d   :  { %6656 = vmatmul.mubr.msk.f32.vlgmr.msra.gmra.mrb[20].mxu1 %vm95_vm0, %v2025_v38  ;;  %v7242_v38 = vpack.c.bf16 %v2663_v22, %v2662_v28  ;;  %v2491_v22 = vld [vmem:[%s9130_s8 + $0x20] sm:$0xff] }
0x136e   :  { %7225 = vmatpush3.bf16.msra.mxu1 %v7882_v57  ;;  %6677 = vmatprep.mubr.msk.f32.mxu1 %vm7685_vm1, %v7686_v4 }
0x136f   :  { %7226 = vmatprep.subr.bf16.mxu1 %v7684_v3 }
0x1372   :  { %7228 = vmatpush3.bf16.msra.mxu1 %v7902_v0  ;;  %v7677_v0 = vld [vmem:[%s9128_s7 + $0x4] ss:$0 sm:$0xff] }
0x1373   :  { %6699 = vmatprep.subr.mxu1 %v7686_v4 }
0x13d9   :  { %v2169_v12 = vpop.f32.mrb[28].mxu0 }
0x13da   :  { %v2170_v61 = vadd.f32 %v7931_v13, %v2169_v12  ;;  %v6646_v1 = vpop.f32.mrb[29].mxu0 }
0x13dc   :  { %2181 = vrot.lane.b32.xlu0 %v2170_v61, %s7688_s25 }
0x1438   :  { %v2094_v17 = vpop.f32.mrb[18].mxu1 }
0x1439   :  { %v2095_v33 = vadd.f32 %v7952_v19, %v2094_v17  ;;  %v6635_v41 = vpop.f32.mrb[19].mxu1 }
0x143b   :  { %v2173_v57 = vadd.f32 %v2170_v61, %v2095_v33  ;;  %v2665_v61 = vld [vmem:[%s9130_s8 + $0x60] sm:$0xff] }
0x143d   :  { %v5987_v42 = vmul.f32 -1.442695, %v2173_v57 }
0x143f   :  { %7525 = vpow2.f32 %v5987_v42  ;;  %v5995_v42 = vld [vmem:[%s9132_s9 + $0x2] ss:$0 sm:$0xff] }
0x1440   :  { %v2268_v43 = vpop.f32.mrb[20].mxu1 }
0x1441   :  { %v2269_v44 = vadd.f32 %v7677_v0, %v2268_v43  ;;  %v6657_v45 = vpop.f32.mrb[21].mxu1 }
0x1443   :  { %2280 = vrot.lane.b32.xlu0 %v2269_v44, %s7688_s25  ;;  %v2272_v19 = vadd.f32 %v2269_v44, %v7861_v37 }
0x1445   :  { %v5989_v50 = vmul.f32 -1.442695, %v2272_v19  ;;  %v7679_v19 = vld [vmem:[%s9128_s7 + $0x1] ss:$0 sm:$0xff] }
0x1449   :  { %v7526_v13 = vpop.eup %7525 }
0x144a   :  { %v2177_v46 = vadd.f32 1.0, %v7526_v13 }
0x144c   :  { %7527 = vrcp.f32 %v2177_v46 }
0x144d   :  { %7529 = vpow2.f32 %v5989_v50 }
0x144e   :  { %v2182_v48 = vpop.permute.xlu0 %2181 }
0x1456   :  { %v7528_v47 = vpop.eup %7527 }
0x1457   :  { %v2184_v49 = vmul.f32 %v7528_v47, %v2182_v48  ;;  %v7530_v51 = vpop.eup %7529  ;;  %v2191_v2 = vsub.f32 1.0, %v7528_v47  ;;  %v2197_v29 = vmul.f32 %v7528_v47, %v8232_v25 }
0x1458   :  { %v2276_v52 = vadd.f32 1.0, %v7530_v51 }
0x1459   :  { %2186 = vrot.lane.b32.xlu1 %v2184_v49, %s7688_s25 }
0x145a   :  { %7531 = vrcp.f32 %v2276_v52 }
0x1464   :  { %v7532_v53 = vpop.eup %7531 }
0x1465   :  { %v2290_v31 = vsub.f32 1.0, %v7532_v53 }
0x14b5   :  { %v2281_v54 = vpop.permute.xlu0 %2280 }
0x14b6   :  { %v2283_v56 = vmul.f32 %v7532_v53, %v2281_v54 }
0x14b8   :  { %2285 = vrot.lane.b32.xlu0 %v2283_v56, %s7688_s25 }
0x14bc   :  { %2301 = vperm.xlu0 %7446, %v50_v58  }
0x14cb   :  { %v2187_v59 = vpop.permute.xlu1 %2186 }
0x14cc   :  { %v2189_v60 = vadd.f32 %v2187_v59, %v2095_v33  ;;  %v7678_v33 = vld [vmem:[%s9128_s7 + $0x5] ss:$0 sm:$0xff] }
0x14ce   :  { %7533 = vtanh.f32 %v2189_v60 }
0x14d8   :  { %v7534_v40 = vpop.eup %7533 }
0x14d9   :  { %2193 = vrot.lane.b32.xlu1 %v7534_v40, %s7689_s27  ;;  %v2751_v40 = vld [vmem:[%s9130_s8 + $0x68] sm:$0xff] }
0x152a   :  { %v2286_v62 = vpop.permute.xlu0 %2285 }
0x152b   :  { %v2288_v6 = vadd.f32 %v2286_v62, %v7861_v37  ;;  %v2575_v37 = vld [vmem:[%s9130_s8 + $0x40] sm:$0xff]  ;;  %v2752_v62 = vld [vmem:[%s9130_s8 + $0x70] sm:$0xff] }
0x152d   :  { %7535 = vtanh.f32 %v2288_v6  ;;  %v2753_v6 = vld [vmem:[%s9130_s8 + $0x78] sm:$0xff] }
0x1537   :  { %v7536_v35 = vpop.eup %7535 }
0x153b   :  { %v8306_v30 = vpop.permute.xlu0 %2301 }
0x154b   :  { %v2194_v24 = vpop.permute.xlu1 %2193 }
0x154c   :  { %v2196_v8 = vmul.f32 %v2194_v24, %v2191_v2  ;;  %v7248_v2 = vpack.c.bf16 %v2752_v62, %v2751_v40  ;;  %v2754_v24 = vld [vmem:[%s9130_s8 + $0x80] sm:$0xff] }
0x154e   :  { %v2198_v9 = vadd.f32 %v2197_v29, %v2196_v8  ;;  %v2487_v29 = vld [vmem:[%s9130_s8] sm:$0xff]  ;;  %v2488_v8 = vld [vmem:[%s9130_s8 + $0x8] sm:$0xff] }
0x1550   :  { %v2199_v27 = vsub.f32 %v2198_v9, %v8232_v25  ;;  %v7251_v9 = vpack.c.bf16 %v2754_v24, %v2753_v6 }
0x1552   :  { %v2200_v15 = vmul.f32 %v2199_v27, %v8238_v34  ;;  %v7230_v27 = vpack.c.bf16 %v2488_v8, %v2487_v29 }
0x1554   :  { %v8286_v16 = vadd.f32 %v2200_v15, %v8232_v25  ;;  %v2296_v25 = vmul.f32 %v7532_v53, %v8242_v36  ;;  %v5998_v15 = vld [vmem:[%s9132_s9 + $0x3] ss:$0 sm:$0xff] }
0x1556   :  { %2382 = vrot.lane.b32.xlu1 %v8286_v16, %s7689_s27 }
0x155a   :  { %2292 = vrot.lane.b32.xlu1 %v7536_v35, %s7689_s27 }
0x15c8   :  { %v2383_v63 = vpop.permute.xlu1 %2382 }
0x15c9   :  { %6678 = vmatmul.mubr.msk.f32.vlgmr.msra.gmra.mrb[22].mxu1 %vm95_vm0, %v2383_v63 }
0x15ca   :  { %6700 = vmatpush3.msra.mxu1 %v2575_v37  ;;  %6701 = vmatprep.mubr.msk.f32.mxu1 %vm7685_vm1, %v7686_v4 }
0x15cb   :  { %7241 = vmatprep.subr.bf16.mxu1 %v7684_v3 }
0x15cc   :  { %v2293_v7 = vpop.permute.xlu1 %2292 }
0x15cd   :  { %v2295_v39 = vmul.f32 %v2293_v7, %v2290_v31  ;;  %6702 = vmatmul.mubr.msk.f32.vlgmr.msra.gmra.mrb[24].mxu1 %vm2581_vm2, %v2574_v14 }
0x15ce   :  { %6712 = vmatprep.mubr.msk.f32.mxu1 %vm7685_vm1, %v7686_v4  ;;  %7243 = vmatpush3.bf16.msra.mxu1 %v7242_v38  ;;  %v2492_v38 = vld [vmem:[%s9130_s8 + $0x28] sm:$0xff] }
0x15cf   :  { %v2297_v26 = vadd.f32 %v2296_v25, %v2295_v39  ;;  %7244 = vmatprep.subr.bf16.mxu1 %v7684_v3 }
0x15d1   :  { %v2298_v10 = vsub.f32 %v2297_v26, %v8242_v36  ;;  %v2489_v26 = vld [vmem:[%s9130_s8 + $0x10] sm:$0xff] }
0x15d3   :  { %v2304_v32 = vmul.f32 %v8306_v30, %v2298_v10  ;;  %v2490_v10 = vld [vmem:[%s9130_s8 + $0x18] sm:$0xff] }
0x15d5   :  { %v2305_v18 = vadd.f32 %v2304_v32, %v8242_v36  ;;  %v2664_v36 = vld [vmem:[%s9130_s8 + $0x58] sm:$0xff] }
0x15d6   :  { %v7245_v1 = vpack.c.bf16 %v2665_v61, %v2664_v36  ;;  %v7236_v36 = vpack.c.bf16 %v2492_v38, %v2491_v22  ;;  %v2493_v61 = vld [vmem:[%s9130_s8 + $0x30] sm:$0xff]  ;;  %v2970_v38 = vld [vmem:[%s9130_s8 + $0x98] sm:$0xff] }
0x15d7   :  { %2307 = vrot.lane.b32.xlu0 %v2305_v18, %s7689_s27  ;;  %v7233_v18 = vpack.c.bf16 %v2490_v10, %v2489_v26 }
0x15d8   :  { %7246 = vmatpush3.bf16.msra.mxu1 %v7245_v1  ;;  %v2494_v1 = vld [vmem:[%s9130_s8 + $0x38] sm:$0xff] }
0x15d9   :  { %7247 = vmatprep.subr.bf16.mxu1 %v7684_v3 }
0x1649   :  { %v8318_v12 = vpop.permute.xlu0 %2307 }
0x164a   :  { %6667 = vmatmul.mubr.msk.f32.vlgmr.msra.gmra.mrb[30].mxu0 %vm95_vm0, %v8318_v12 }
0x164b   :  { %6696 = vmatprep.mubr.msk.f32.mxu0 %vm7685_vm1, %v7686_v4  ;;  %7231 = vmatpush3.bf16.msra.mxu0 %v7230_v27  ;;  %v2884_v27 = vld [vmem:[%s9130_s8 + $0x90] sm:$0xff] }
0x164c   :  { %7232 = vmatprep.subr.bf16.mxu0 %v7684_v3 }
0x164f   :  { %7234 = vmatpush3.bf16.msra.mxu0 %v7233_v18 }
0x1650   :  { %7235 = vmatprep.subr.bf16.mxu0 %v7684_v3 }
0x1653   :  { %7237 = vmatpush3.bf16.msra.mxu0 %v7236_v36  ;;  %v2971_v36 = vld [vmem:[%s9130_s8 + $0xa0] sm:$0xff] }
0x1654   :  { %7238 = vmatprep.subr.bf16.mxu0 %v7684_v3 }
0x169c   :  { %v2452_v17 = vpop.f32.mrb[22].mxu1 }
0x169d   :  { %v2453_v41 = vadd.f32 %v7678_v33, %v2452_v17  ;;  %v6679_v57 = vpop.f32.mrb[23].mxu1  ;;  %v7239_v17 = vpack.c.bf16 %v2494_v1, %v2493_v61  ;;  %v7257_v61 = vpack.c.bf16 %v2971_v36, %v2970_v38  ;;  %v2972_v1 = vld [vmem:[%s9130_s8 + $0xa8] sm:$0xff] }
0x169f   :  { %2464 = vrot.lane.b32.xlu1 %v2453_v41, %s7688_s25  ;;  %7240 = vmatpush3.bf16.msra.mxu0 %v7239_v17  ;;  %v2973_v17 = vld [vmem:[%s9130_s8 + $0xb0] sm:$0xff] }
0x16a0   :  { %v2651_v43 = vpop.f32.mrb[24].mxu1  ;;  %7253 = vmatprep.subr.bf16.mxu0 %v7684_v3 }
0x16a1   :  { %v2652_v0 = vadd.f32 %v5995_v42, %v2651_v43  ;;  %v6703_v44 = vpop.f32.mrb[25].mxu1 }
0x16a3   :  { %v5997_v45 = vmul.f32 -1.442695, %v2652_v0 }
0x16a5   :  { %7537 = vpow2.f32 %v5997_v45 }
0x16af   :  { %v7538_v13 = vpop.eup %7537 }
0x16b0   :  { %v2658_v46 = vadd.f32 1.0, %v7538_v13 }
0x16b2   :  { %7539 = vrcp.f32 %v2658_v46 }
0x16bc   :  { %v7540_v47 = vpop.eup %7539 }
0x16bd   :  { %v2661_v48 = vmul.f32 %v7540_v47, %v2652_v0 }
0x16bf   :  { %6713 = vmatmul.mubr.msk.f32.vlgmr.msra.gmra.mrb[26].mxu1 %vm95_vm0, %v2661_v48 }
0x16c0   :  { %6723 = vmatprep.mubr.msk.f32.mxu1 %vm7685_vm1, %v7686_v4  ;;  %7249 = vmatpush3.bf16.msra.mxu1 %v7248_v2 }
0x16c1   :  { %7250 = vmatprep.subr.bf16.mxu1 %v7684_v3 }
0x16c4   :  { %7252 = vmatpush3.bf16.msra.mxu1 %v7251_v9  ;;  %v2883_v9 = vld [vmem:[%s9130_s8 + $0x88] sm:$0xff] }
0x16c5   :  { %7262 = vmatprep.subr.bf16.mxu1 %v7684_v3 }
0x1711   :  { %v2465_v59 = vpop.permute.xlu1 %2464 }
0x171d   :  { %v2377_v49 = vpop.f32.mrb[30].mxu0 }
0x171e   :  { %v2378_v50 = vadd.f32 %v7679_v19, %v2377_v49  ;;  %v6668_v51 = vpop.f32.mrb[31].mxu0  ;;  %v6001_v49 = vld [vmem:[%s9132_s9 + $0x4] ss:$0 sm:$0xff] }
0x1720   :  { %v2456_v52 = vadd.f32 %v2453_v41, %v2378_v50 }
0x1722   :  { %v5992_v53 = vmul.f32 -1.442695, %v2456_v52 }
0x1724   :  { %7541 = vpow2.f32 %v5992_v53 }
0x172e   :  { %v7542_v54 = vpop.eup %7541 }
0x172f   :  { %v2460_v56 = vadd.f32 1.0, %v7542_v54 }
0x1731   :  { %7543 = vrcp.f32 %v2460_v56 }
0x173b   :  { %v7544_v58 = vpop.eup %7543 }
0x173c   :  { %v2467_v60 = vmul.f32 %v7544_v58, %v2465_v59  ;;  %v2474_v41 = vsub.f32 1.0, %v7544_v58  ;;  %v2480_v42 = vmul.f32 %v7544_v58, %v8286_v16 }
0x173e   :  { %2469 = vrot.lane.b32.xlu0 %v2467_v60, %s7688_s25 }
0x1792   :  { %v2740_v35 = vpop.f32.mrb[26].mxu1 }
0x1793   :  { %v2741_v37 = vadd.f32 %v5998_v15, %v2740_v35  ;;  %v6714_v63 = vpop.f32.mrb[27].mxu1  ;;  %v7254_v35 = vpack.c.bf16 %v2884_v27, %v2883_v9  ;;  %v3150_v27 = vld [vmem:[%s9130_s8 + $0xe8] sm:$0xff] }
0x1795   :  { %v6000_v14 = vmul.f32 -1.442695, %v2741_v37 }
0x1797   :  { %7545 = vpow2.f32 %v6000_v14 }
0x17a1   :  { %v7546_v31 = vpop.eup %7545 }
0x17a2   :  { %v2747_v7 = vadd.f32 1.0, %v7546_v31 }
0x17a4   :  { %7547 = vrcp.f32 %v2747_v7 }
0x17ae   :  { %v7548_v25 = vpop.eup %7547 }
0x17af   :  { %v2750_v39 = vmul.f32 %v7548_v25, %v2741_v37 }
0x17b0   :  { %v2470_v32 = vpop.permute.xlu0 %2469 }
0x17b1   :  { %v2472_v28 = vadd.f32 %v2470_v32, %v2378_v50  ;;  %6724 = vmatmul.mubr.msk.f32.vlgmr.msra.gmra.mrb[28].mxu1 %vm95_vm0, %v2750_v39  ;;  %v2872_v32 = vld [vmem:[%s9134_s4] sm:$0xff] }
0x17b2   :  { %6752 = vmatprep.mubr.msk.f32.mxu1 %vm7685_vm1, %v7686_v4 }
0x17b3   :  { %7549 = vtanh.f32 %v2472_v28 }
0x17bd   :  { %v7550_v33 = vpop.eup %7549 }
0x17be   :  { %2476 = vrot.lane.b32.xlu1 %v7550_v33, %s7689_s27  ;;  %v7260_v33 = vpack.c.bf16 %v2973_v17, %v2972_v1  ;;  %v3328_v17 = vld [vmem:[%s9127_s6 + $0x40] sm:$0xff] }
0x1830   :  { %v2477_v57 = vpop.permute.xlu1 %2476 }
0x1831   :  { %v2479_v43 = vmul.f32 %v2477_v57, %v2474_v41  ;;  %v6003_v41 = vld [vmem:[%s9132_s9 + $0x5] ss:$0 sm:$0xff] }
0x1833   :  { %v2481_v0 = vadd.f32 %v2480_v42, %v2479_v43 }
0x1835   :  { %v2482_v44 = vsub.f32 %v2481_v0, %v8286_v16 }
0x1837   :  { %v2483_v45 = vmul.f32 %v2482_v44, %v8306_v30 }
0x1839   :  { %v2484_v13 = vadd.f32 %v2483_v45, %v8286_v16  ;;  %v5993_v16 = vld [vmem:[%s9132_s9 + $0x1] ss:$0 sm:$0xff] }
0x183b   :  { %v2486_v46 = vsel %vm95_vm0, %v8318_v12, %v2484_v13 }
0x183c   :  { %6697 = vmatmul.mubr.msk.f32.vlgmr.msra.gmra.mrb[32].mxu0 %vm2500_vm3, %v2486_v46 }
0x183d   :  { %6730 = vmatprep.mubr.msk.f32.mxu0 %vm7685_vm1, %v7686_v4  ;;  %7255 = vmatpush3.bf16.msra.mxu0 %v7254_v35 }
0x183e   :  { %7256 = vmatprep.subr.bf16.mxu0 %v7684_v3 }
0x1884   :  { %v2829_v47 = vpop.f32.mrb[28].mxu1 }
0x1885   :  { %v6725_v48 = vpop.f32.mrb[29].mxu1  ;;  %v2830_v19 = vadd.f32 %v6001_v49, %v2829_v47  ;;  %v3059_v47 = vld [vmem:[%s9130_s8 + $0xb8] sm:$0xff] }
0x1886   :  { %v3060_v48 = vld [vmem:[%s9130_s8 + $0xc0] sm:$0xff] }
0x1887   :  { %v2838_v50 = vmul.f32 1.442695, %v2830_v19  ;;  %v7263_v49 = vpack.c.bf16 %v3060_v48, %v3059_v47  ;;  %v6012_v48 = vld [vmem:[%s9132_s9 + $0x8] ss:$0 sm:$0xff] }
0x1889   :  { %7551 = vpow2.f32 %v2838_v50  ;;  %7264 = vmatpush3.bf16.msra.mxu1 %v7263_v49  ;;  %v3062_v50 = vld [vmem:[%s9130_s8 + $0xd0] sm:$0xff] }
0x188a   :  { %7265 = vmatprep.subr.bf16.mxu1 %v7684_v3 }
0x1893   :  { %v7552_v54 = vpop.eup %7551 }
0x1894   :  { %v2840_v56 = vadd.f32 1e-08, %v7552_v54 }
0x190f   :  { %v2570_v51 = vpop.f32.mrb[32].mxu0 }
0x1910   :  { %v2571_v52 = vadd.f32 %v5993_v16, %v2570_v51  ;;  %v6698_v12 = vpop.f32.mrb[33].mxu0  ;;  %v6006_v51 = vld [vmem:[%s9132_s9 + $0x6] ss:$0 sm:$0xff] }
0x1912   :  { %v2833_v53 = vmul.f32 1.442695, %v2571_v52 }
0x1914   :  { %7553 = vpow2.f32 %v2833_v53 }
0x1915   :  { %7555 = vrcp.f32 %v2840_v56 }
0x191e   :  { %v7554_v58 = vpop.eup %7553 }
0x191f   :  { %v2835_v59 = vadd.f32 1e-08, %v7554_v58  ;;  %v7556_v60 = vpop.eup %7555 }
0x1921   :  { %7557 = vrcp.f32 %v2835_v59  ;;  %v3237_v59 = vld [vmem:[%s9136_s10] sm:$0xff] }
0x192b   :  { %v7558_v40 = vpop.eup %7557 }
0x192c   :  { %2846 = vrot.lane.b32.xlu1 %v7558_v40, %s7690_s2  ;;  %v2843_v62 = vadd.f32 %v7558_v40, %v7556_v60 }
0x192e   :  { %v2844_v2 = vadd.f32 1.0, %v2843_v62 }
0x1930   :  { %2857 = vrot.lane.b32.xlu0 %v2844_v2, %s7690_s2  ;;  %7559 = vlog2.f32 %v2844_v2 }
0x1934   :  { %2851 = vrot.lane.b32.xlu0 %v7556_v60, %s7690_s2  ;;  %v3238_v60 = vld [vmem:[%s9136_s10 + $0x8] sm:$0xff] }
0x1935   :  { %v7275_v62 = vpack.c.bf16 %v3238_v60, %v3237_v59 }
0x193a   :  { %v7560_v6 = vpop.eup %7559 }
0x193b   :  { %v8411_v24 = vmul.f32 0.6931472, %v7560_v6  ;;  %v3148_v6 = vld [vmem:[%s9130_s8 + $0xd8] sm:$0xff] }
0x193d   :  { %v2864_v29 = vsub.f32 0.0, %v8411_v24 }
0x193f   :  { %v2873_v8 = vmul.f32 0.5, %v2864_v29 }
0x1941   :  { %v2874_v15 = vmul.f32 1.442695, %v2873_v8  ;;  %v3149_v8 = vld [vmem:[%s9130_s8 + $0xe0] sm:$0xff] }
0x1942   :  { %v7269_v9 = vpack.c.bf16 %v3149_v8, %v3148_v6 }
0x1943   :  { %7561 = vpow2.f32 %v2874_v15  ;;  %v3151_v15 = vld [vmem:[%s9130_s8 + $0xf0] sm:$0xff] }
0x1944   :  { %v7272_v35 = vpack.c.bf16 %v3151_v15, %v3150_v27  ;;  %v3337_v15 = vld [vmem:[%s9127_s6 + $0x60] sm:$0xff] }
0x194d   :  { %v7562_v37 = vpop.eup %7561 }
0x194e   :  { %2877 = vrot.lane.b32.xlu1 %v7562_v37, %s7690_s2  ;;  %v3314_v37 = vld [vmem:[%s9125_s5 + $0x40] sm:$0xff] }
0x199e   :  { %v2847_v31 = vpop.permute.xlu1 %2846 }
0x199f   :  { %v2849_v25 = vmul.f32 %v2847_v31, %v2571_v52  ;;  %v3316_v31 = vld [vmem:[%s9125_s5 + $0x50] sm:$0xff] }
0x19a2   :  { %v2858_v63 = vpop.permute.xlu0 %2857 }
0x19a3   :  { %7563 = vrcp.f32 %v2858_v63  ;;  %v3315_v63 = vld [vmem:[%s9125_s5 + $0x48] sm:$0xff] }
0x19a6   :  { %v2852_v14 = vpop.permute.xlu0 %2851 }
0x19a7   :  { %v2854_v7 = vmul.f32 %v2852_v14, %v2830_v19  ;;  %v3061_v19 = vld [vmem:[%s9130_s8 + $0xc8] sm:$0xff]  ;;  %v7277_v14 = vpack.c.bf16 %v3315_v63, %v3314_v37 }
0x19a8   :  { %v7266_v16 = vpack.c.bf16 %v3062_v50, %v3061_v19  ;;  %v3351_v37 = vld [vmem:[%s9137_s1 + $0x28] sm:$0xff] }
0x19a9   :  { %v2855_v39 = vadd.f32 %v2854_v7, %v2849_v25  ;;  %v3317_v7 = vld [vmem:[%s9125_s5 + $0x58] sm:$0xff] }
0x19aa   :  { %7267 = vmatpush3.bf16.msra.mxu1 %v7266_v16  ;;  %v7281_v25 = vpack.c.bf16 %v3317_v7, %v3316_v31  ;;  %v3339_v31 = vld [vmem:[%s9127_s6 + $0x70] sm:$0xff]  ;;  %v3340_v7 = vld [vmem:[%s9127_s6 + $0x78] sm:$0xff] }
0x19ab   :  { %7274 = vmatprep.subr.bf16.mxu1 %v7684_v3 }
0x19ad   :  { %v7564_v26 = vpop.eup %7563 }
0x19ae   :  { %v2861_v10 = vmul.f32 %v7564_v26, %v2855_v39  ;;  %v3346_v39 = vld [vmem:[%s9137_s1] sm:$0xff]  ;;  %v3347_v26 = vld [vmem:[%s9137_s1 + $0x8] sm:$0xff] }
0x19b0   :  { %2866 = vst.msk [vmem:[%s9133_s14] sm:$0xff] %vm2865_vm4, %v2861_v10 }
0x19c0   :  { %v2878_v18 = vpop.permute.xlu1 %2877 }
0x19c1   :  { %v2880_v28 = vmul.f32 %v2878_v18, %v2872_v32 }
0x19c3   :  { %v2881_v22 = vadd.f32 %v2880_v28, %v2861_v10  ;;  %v6009_v10 = vld [vmem:[%s9132_s9 + $0x7] ss:$0 sm:$0xff] }
0x19c5   :  { %2882 = vst.msk [vmem:[%s9135_s13] sm:$0xff] %vm2865_vm4, %v2881_v22  ;;  %6731 = vmatmul.mubr.msk.f32.vlgmr.msra.gmra.mrb[34].mxu0 %vm2865_vm4, %v2881_v22 }
0x19c6   :  { %6741 = vmatprep.mubr.msk.f32.mxu0 %vm7685_vm1, %v7686_v4  ;;  %7258 = vmatpush3.bf16.msra.mxu0 %v7257_v61 }
0x19c7   :  { %7259 = vmatprep.subr.bf16.mxu0 %v7684_v3 }
0x19ca   :  { %7261 = vmatpush3.bf16.msra.mxu0 %v7260_v33  ;;  %v3329_v33 = vld [vmem:[%s9127_s6 + $0x48] sm:$0xff] }
0x19cb   :  { %7268 = vmatprep.subr.bf16.mxu0 %v7684_v3 }
0x1a98   :  { %v2959_v57 = vpop.f32.mrb[34].mxu0 }
0x1a99   :  { %v2960_v42 = vadd.f32 %v6003_v41, %v2959_v57  ;;  %v6732_v43 = vpop.f32.mrb[35].mxu0  ;;  %v8529_v57 = vpack.c.bf16 %v3329_v33, %v3328_v17 }
0x1a9a   :  { %v3330_v43 = vld [vmem:[%s9127_s6 + $0x50] sm:$0xff] }
0x1a9b   :  { %v6005_v0 = vmul.f32 -1.442695, %v2960_v42 }
0x1a9d   :  { %7565 = vpow2.f32 %v6005_v0  ;;  %v3331_v0 = vld [vmem:[%s9127_s6 + $0x58] sm:$0xff] }
0x1aa7   :  { %v7566_v44 = vpop.eup %7565 }
0x1aa8   :  { %v2966_v45 = vadd.f32 1.0, %v7566_v44  ;;  %v8539_v44 = vpack.c.bf16 %v3331_v0, %v3330_v43  ;;  %v3319_v43 = vld [vmem:[%s9125_s5 + $0x60] sm:$0xff]  ;;  %v3320_v0 = vld [vmem:[%s9125_s5 + $0x68] sm:$0xff] }
0x1aaa   :  { %7567 = vrcp.f32 %v2966_v45  ;;  %v6015_v45 = vld [vmem:[%s9132_s9] ss:$0 sm:$0xff] }
0x1ab4   :  { %v7568_v13 = vpop.eup %7567 }
0x1ab5   :  { %v2969_v46 = vmul.f32 %v7568_v13, %v2960_v42 }
0x1ab7   :  { %6742 = vmatmul.mubr.msk.f32.vlgmr.msra.gmra.mrb[36].mxu0 %vm95_vm0, %v2969_v46 }
0x1ab8   :  { %6763 = vmatprep.mubr.msk.f32.mxu0 %vm7685_vm1, %v7686_v4  ;;  %7270 = vmatpush3.bf16.msra.mxu0 %v7269_v9 }
0x1ab9   :  { %7271 = vmatprep.subr.bf16.mxu0 %v7684_v3 }
0x1abc   :  { %7273 = vmatpush3.bf16.msra.mxu0 %v7272_v35  ;;  %v3338_v35 = vld [vmem:[%s9127_s6 + $0x68] sm:$0xff]  ;;  %s7691_s6 = smov 32  }
0x1abd   :  { %7285 = vmatprep.subr.bf16.mxu0 %v7684_v3  ;;  %v8598_v63 = vpack.c.bf16 %v3338_v35, %v3337_v15 }
0x1b8a   :  { %v3048_v52 = vpop.f32.mrb[36].mxu0 }
0x1b8b   :  { %v3049_v12 = vadd.f32 %v6006_v51, %v3048_v52  ;;  %v6743_v53 = vpop.f32.mrb[37].mxu0  ;;  %v8563_v51 = vld [vmem:[%s9128_s7 + $0x6] ss:$0 sm:$0xff] }
0x1b8c   :  { %v3349_v53 = vld [vmem:[%s9137_s1 + $0x18] sm:$0xff] }
0x1b8d   :  { %v6008_v54 = vmul.f32 -1.442695, %v3049_v12 }
0x1b8f   :  { %7569 = vpow2.f32 %v6008_v54  ;;  %v3350_v54 = vld [vmem:[%s9137_s1 + $0x20] sm:$0xff] }
0x1b99   :  { %v7570_v56 = vpop.eup %7569 }
0x1b9a   :  { %v3055_v58 = vadd.f32 1.0, %v7570_v56 }
0x1b9c   :  { %7571 = vrcp.f32 %v3055_v58 }
0x1ba6   :  { %v7572_v40 = vpop.eup %7571 }
0x1ba7   :  { %v3058_v2 = vmul.f32 %v7572_v40, %v3049_v12  ;;  %v3348_v12 = vld [vmem:[%s9137_s1 + $0x10] sm:$0xff] }
0x1ba9   :  { %6753 = vmatmul.mubr.msk.f32.vlgmr.msra.gmra.mrb[30].mxu1 %vm95_vm0, %v3058_v2 }
0x1baa   :  { %7276 = vmatpush3.bf16.msra.mxu1 %v7275_v62  ;;  %6770 = vmatprep.mubr.msk.f32.mxu1 %vm7685_vm1, %v7686_v4  ;;  %v8586_v62 = vld [vmem:[%s9128_s7 + $0x2] ss:$0 sm:$0xff] }
0x1bab   :  { %7278 = vmatprep.subr.bf16.mxu1 %v7277_v14 }
0x1bad   :  { %6771 = vmatmul.mubr.msk.f32.vlgmr.msra.gmra.mrb[32].mxu1 %vm2865_vm4, %v2881_v22 }
0x1bae   :  { %7280 = vmatpush3.bf16.msra.mxu1 %v7277_v14  ;;  %6781 = vmatprep.mubr.msk.f32.mxu1 %vm95_vm0, %v3346_v39  ;;  %v3352_v14 = vld [vmem:[%s9137_s1 + $0x30] sm:$0xff]  ;;  %v8616_v39 = vpack.c.bf16 %v3340_v7, %v3339_v31 }
0x1baf   :  { %7282 = vmatprep.subr.bf16.mxu1 %v7281_v25 }
0x1bb2   :  { %7284 = vmatpush3.bf16.msra.mxu1 %v7281_v25  ;;  %v3353_v25 = vld [vmem:[%s9137_s1 + $0x38] sm:$0xff] }
0x1bb3   :  { %7297 = vmatprep.subr.bf16.mxu1 %v7684_v3 }
0x1bb5   :  { %6782 = vmatmul.mubr.msk.f32.vlgmr.msra.gmra.mrb[34].mxu1 %vm95_vm0, %v3347_v26 }
0x1bb6   :  { %6784 = vmatprep.mubr.msk.f32.mxu1 %vm95_vm0, %v3348_v12  ;;  %7299 = vmatpush3.bf16.msra.mxu1 %v8598_v63 }
0x1bb7   :  { %7300 = vmatprep.subr.bf16.mxu1 %v7684_v3 }
0x1bb9   :  { %6785 = vmatmul.mubr.msk.f32.gmra.mrb[36].mxu1 %vm95_vm0, %v3349_v53 }
0x1bba   :  { %6787 = vmatprep.mubr.msk.f32.mxu1 %vm95_vm0, %v3350_v54  ;;  %7302 = vmatpush3.bf16.msra.mxu1 %v8616_v39 }
0x1bbb   :  { %7309 = vmatprep.subr.bf16.mxu1 %v7684_v3 }
0x1bbd   :  { %6788 = vmatmul.mubr.msk.f32.gmra.mrb[38].mxu1 %vm95_vm0, %v3351_v37 }
0x1bbe   :  { %6790 = vmatprep.mubr.msk.f32.mxu1 %vm95_vm0, %v3352_v14 }
0x1bc1   :  { %6791 = vmatmul.mubr.msk.f32.gmra.mrb[40].mxu1 %vm95_vm0, %v3353_v25 }
0x1bc2   :  { %6823 = vmatprep.mubr.msk.f32.mxu1 %vm7685_vm1, %v7686_v4 }
0x1c7c   :  { %v3137_v32 = vpop.f32.mrb[30].mxu1 }
0x1c7d   :  { %v3138_v18 = vadd.f32 %v6009_v10, %v3137_v32  ;;  %v6754_v28 = vpop.f32.mrb[31].mxu1 }
0x1c7f   :  { %v6011_v22 = vmul.f32 -1.442695, %v3138_v18 }
0x1c80   :  { %v3310_v38 = vpop.f32.mrb[32].mxu1 }
0x1c81   :  { %7573 = vpow2.f32 %v6011_v22  ;;  %v6772_v36 = vpop.f32.mrb[33].mxu1  ;;  %v8548_v13 = vadd.f32 %v6015_v45, %v3310_v38  ;;  %v3321_v45 = vld [vmem:[%s9125_s5 + $0x70] sm:$0xff] }
0x1c88   :  { %v8555_v46 = vpop.f32.mrb[34].mxu1 }
0x1c89   :  { %v3448_v47 = vpop.f32.mrb[35].mxu1 }
0x1c8a   :  { %v3449_v2 = vadd.f32 %v8586_v62, %v3448_v47  ;;  %v8653_v47 = vpack.c.bf16 %v3320_v0, %v3319_v43 }
0x1c8b   :  { %v7574_v61 = vpop.eup %7573 }
0x1c8c   :  { %v3144_v1 = vadd.f32 1.0, %v7574_v61  ;;  %v8629_v36 = vpop.f32.mrb[36].mxu1 }
0x1c8d   :  { %v8631_v61 = vpop.f32.mrb[37].mxu1 }
0x1c8e   :  { %7575 = vrcp.f32 %v3144_v1 }
0x1c90   :  { %v8636_v17 = vpop.f32.mrb[38].mxu1 }
0x1c91   :  { %v8638_v33 = vpop.f32.mrb[39].mxu1 }
0x1c98   :  { %v7576_v41 = vpop.eup %7575 }
0x1c99   :  { %v3147_v42 = vmul.f32 %v7576_v41, %v3138_v18  ;;  %v8640_v41 = vpop.f32.mrb[40].mxu1 }
0x1c9b   :  { %6764 = vmatmul.mubr.msk.f32.vlgmr.msra.gmra.mrb[38].mxu0 %vm95_vm0, %v3147_v42  ;;  %v8642_v42 = vpop.f32.mrb[41].mxu1 }
0x1c9c   :  { %7287 = vmatpush3.bf16.msra.mxu0 %v8529_v57  ;;  %6801 = vmatprep.mubr.msk.f32.mxu0 %vm7685_vm1, %v7686_v4 }
0x1c9d   :  { %7288 = vmatprep.subr.bf16.mxu0 %v7684_v3 }
0x1ca0   :  { %7290 = vmatpush3.bf16.msra.mxu0 %v8539_v44 }
0x1ca1   :  { %7291 = vmatprep.subr.bf16.mxu0 %v7684_v3 }
0x1ca3   :  { %6802 = vmatmul.mubr.msk.f32.vlgmr.msra.gmra.mrb[40].mxu0 %vm95_vm0, %v8548_v13 }
0x1ca4   :  { %6812 = vmatprep.mubr.msk.f32.mxu0 %vm7685_vm1, %v7686_v4  ;;  %7293 = vmatpush3.bf16.msra.mxu0 %v8653_v47 }
0x1ca5   :  { %7294 = vmatprep.subr.bf16.mxu0 %v7684_v3 }
0x1d6e   :  { %v3226_v49 = vpop.f32.mrb[38].mxu0 }
0x1d6f   :  { %v3227_v19 = vadd.f32 %v6012_v48, %v3226_v49  ;;  %v6765_v50 = vpop.f32.mrb[39].mxu0  ;;  %v3322_v48 = vld [vmem:[%s9125_s5 + $0x78] sm:$0xff] }
0x1d70   :  { %v8659_v49 = vpack.c.bf16 %v3322_v48, %v3321_v45 }
0x1d71   :  { %v6014_v16 = vmul.f32 -1.442695, %v3227_v19 }
0x1d72   :  { %7296 = vmatpush3.bf16.msra.mxu0 %v8659_v49 }
0x1d73   :  { %7577 = vpow2.f32 %v6014_v16  ;;  %7303 = vmatprep.subr.bf16.mxu0 %v7684_v3 }
0x1d76   :  { %v3556_v52 = vpop.f32.mrb[40].mxu0 }
0x1d77   :  { %v3557_v56 = vadd.f32 %v8563_v51, %v3556_v52  ;;  %v6803_v58 = vpop.f32.mrb[41].mxu0 }
0x1d79   :  { %3568 = vrot.lane.b32.xlu0 %v3557_v56, %s7688_s25  ;;  %v3560_v6 = vadd.f32 %v3557_v56, %v3449_v2  ;;  %v8673_v56 = vld [vmem:[%s9128_s7 + $0x7] ss:$0 sm:$0xff] }
0x1d7b   :  { %v6030_v8 = vmul.f32 -1.442695, %v3560_v6  ;;  %v8699_v6 = vld [vmem:[%s9128_s7 + $0x3] ss:$0 sm:$0xff] }
0x1d7d   :  { %v7578_v59 = vpop.eup %7577 }
0x1d7e   :  { %v3233_v60 = vadd.f32 1.0, %v7578_v59 }
0x1d80   :  { %7579 = vrcp.f32 %v3233_v60 }
0x1d81   :  { %7581 = vpow2.f32 %v6030_v8 }
0x1d8a   :  { %v7580_v40 = vpop.eup %7579 }
0x1d8b   :  { %3236 = vst.msk [vmem:[%s9138_s12] sm:$0xff] %vm2581_vm2, %v7580_v40  ;;  %v7582_v9 = vpop.eup %7581 }
0x1d8c   :  { %v3564_v27 = vadd.f32 1.0, %v7582_v9 }
0x1d8e   :  { %7583 = vrcp.f32 %v3564_v27 }
0x1d98   :  { %v7584_v26 = vpop.eup %7583 }
0x1d99   :  { %v3578_v19 = vsub.f32 1.0, %v7584_v26 }
0x1deb   :  { %v3569_v10 = vpop.permute.xlu0 %3568 }
0x1dec   :  { %v3571_v32 = vmul.f32 %v7584_v26, %v3569_v10 }
0x1dee   :  { %3573 = vrot.lane.b32.xlu1 %v3571_v32, %s7688_s25 }
0x1df2   :  { %3584 = vrot.lane.b32.xlu1 %v8548_v13, %s7691_s6 }
0x1df6   :  { %3669 = vrot.lane.b32.xlu1 %v8548_v13, %s7689_s27 }
0x1e60   :  { %v3574_v18 = vpop.permute.xlu1 %3573 }
0x1e61   :  { %v3576_v28 = vadd.f32 %v3574_v18, %v3449_v2  ;;  %v3454_v18 = vadd.f32 %v8555_v46, %v8586_v62 }
0x1e63   :  { %7585 = vtanh.f32 %v3576_v28 }
0x1e64   :  { %v3585_v22 = vpop.permute.xlu1 %3584 }
0x1e65   :  { %v3587_v16 = vmul.f32 %v7584_v26, %v3585_v22 }
0x1e68   :  { %v3670_v38 = vpop.permute.xlu1 %3669 }
0x1e69   :  { %6824 = vmatmul.mubr.msk.f32.vlgmr.msra.gmra.mrb[42].mxu1 %vm95_vm0, %v3670_v38 }
0x1e6a   :  { %6845 = vmatprep.mubr.msk.f32.mxu1 %vm7685_vm1, %v7686_v4  ;;  %7311 = vmatpush3.bf16.msra.mxu1 %v8653_v47 }
0x1e6b   :  { %7312 = vmatprep.subr.bf16.mxu1 %v7684_v3 }
0x1e6d   :  { %v7586_v1 = vpop.eup %7585 }
0x1e6e   :  { %3580 = vrot.lane.b32.xlu0 %v7586_v1, %s7689_s27  ;;  %7314 = vmatpush3.bf16.msra.mxu1 %v8659_v49 }
0x1e6f   :  { %7321 = vmatprep.subr.bf16.mxu1 %v7684_v3 }
0x1ee0   :  { %v3581_v50 = vpop.permute.xlu0 %3580 }
0x1ee1   :  { %v3583_v52 = vmul.f32 %v3581_v50, %v3578_v19 }
0x1ee3   :  { %v3588_v12 = vadd.f32 %v3587_v16, %v3583_v52 }
0x1ee5   :  { %v3589_v53 = vsub.f32 %v3588_v12, %v3585_v22 }
0x1ee7   :  { %v3590_v54 = vmul.f32 %v3589_v53, %v7921_v5 }
0x1ee9   :  { %3592 = vrot.lane.b32.xlu0 %v3590_v54, %s7689_s27 }
0x1f3c   :  { %v3739_v58 = vpop.f32.mrb[42].mxu1 }
0x1f3d   :  { %v3740_v59 = vadd.f32 %v8673_v56, %v3739_v58  ;;  %v6825_v60 = vpop.f32.mrb[43].mxu1 }
0x1f3f   :  { %3751 = vrot.lane.b32.xlu1 %v3740_v59, %s7688_s25 }
0x1f5b   :  { %v3593_v40 = vpop.permute.xlu0 %3592 }
0x1f5c   :  { %v8678_v2 = vadd.f32 %v3593_v40, %v8548_v13 }
0x1f5e   :  { %6813 = vmatmul.mubr.msk.f32.vlgmr.msra.gmra.mrb[42].mxu0 %vm95_vm0, %v8678_v2 }
0x1f5f   :  { %7305 = vmatpush3.bf16.msra.mxu0 %v8529_v57  ;;  %6834 = vmatprep.mubr.msk.f32.mxu0 %vm7685_vm1, %v7686_v4 }
0x1f60   :  { %7306 = vmatprep.subr.bf16.mxu0 %v7684_v3 }
0x1f63   :  { %7308 = vmatpush3.bf16.msra.mxu0 %v8539_v44 }
0x1f64   :  { %7315 = vmatprep.subr.bf16.mxu0 %v7684_v3 }
0x1f66   :  { %6835 = vmatmul.mubr.msk.f32.vlgmr.msra.gmra.mrb[44].mxu0 %vm95_vm0, %v8678_v2 }
0x1f67   :  { %7317 = vmatpush3.bf16.msra.mxu0 %v8598_v63  ;;  %6856 = vmatprep.mubr.msk.f32.mxu0 %vm7685_vm1, %v7686_v4 }
0x1f68   :  { %7318 = vmatprep.subr.bf16.mxu0 %v7684_v3 }
0x1f6b   :  { %7320 = vmatpush3.bf16.msra.mxu0 %v8616_v39 }
0x1f6c   :  { %7327 = vmatprep.subr.bf16.mxu0 %v7684_v3 }
0x1fb1   :  { %v3752_v10 = vpop.permute.xlu1 %3751 }
0x2031   :  { %v3665_v8 = vpop.f32.mrb[42].mxu0 }
0x2032   :  { %v3666_v9 = vadd.f32 %v8699_v6, %v3665_v8  ;;  %v6814_v27 = vpop.f32.mrb[43].mxu0 }
0x2034   :  { %v3743_v15 = vadd.f32 %v3740_v59, %v3666_v9 }
0x2036   :  { %v6033_v35 = vmul.f32 -1.442695, %v3743_v15 }
0x2038   :  { %7587 = vpow2.f32 %v6033_v35 }
0x2039   :  { %v3839_v37 = vpop.f32.mrb[44].mxu0 }
0x203a   :  { %v3840_v14 = vadd.f32 %v8563_v51, %v3839_v37  ;;  %v6836_v31 = vpop.f32.mrb[45].mxu0 }
0x203c   :  { %3851 = vrot.lane.b32.xlu0 %v3840_v14, %s7688_s25  ;;  %v3843_v28 = vadd.f32 %v3840_v14, %v3454_v18 }
0x203e   :  { %v6035_v22 = vmul.f32 -1.442695, %v3843_v28 }
0x2042   :  { %v7588_v7 = vpop.eup %7587 }
0x2043   :  { %v3747_v25 = vadd.f32 1.0, %v7588_v7 }
0x2045   :  { %7589 = vrcp.f32 %v3747_v25 }
0x2046   :  { %7591 = vpow2.f32 %v6035_v22 }
0x204f   :  { %v7590_v26 = vpop.eup %7589 }
0x2050   :  { %v3754_v32 = vmul.f32 %v7590_v26, %v3752_v10  ;;  %v7592_v38 = vpop.eup %7591  ;;  %v3761_v40 = vsub.f32 1.0, %v7590_v26  ;;  %v3767_v15 = vmul.f32 %v7590_v26, %v8548_v13 }
0x2051   :  { %v3847_v1 = vadd.f32 1.0, %v7592_v38 }
0x2052   :  { %3756 = vrot.lane.b32.xlu1 %v3754_v32, %s7688_s25 }
0x2053   :  { %7593 = vrcp.f32 %v3847_v1 }
0x2056   :  { %3867 = vrot.lane.b32.xlu1 %v8678_v2, %s7691_s6 }
0x205d   :  { %v7594_v43 = vpop.eup %7593 }
0x205e   :  { %v3861_v53 = vsub.f32 1.0, %v7594_v43 }
0x20ae   :  { %v3852_v0 = vpop.permute.xlu0 %3851 }
0x20af   :  { %v3854_v45 = vmul.f32 %v7594_v43, %v3852_v0 }
0x20b1   :  { %3856 = vrot.lane.b32.xlu0 %v3854_v45, %s7688_s25  ;;  %v3459_v45 = vadd.f32 %v8586_v62, %v8631_v61 }
0x20c4   :  { %v3757_v48 = vpop.permute.xlu1 %3756 }
0x20c5   :  { %v3759_v16 = vadd.f32 %v3757_v48, %v3666_v9 }
0x20c8   :  { %v3868_v12 = vpop.permute.xlu1 %3867 }
0x20c9   :  { %v3870_v58 = vmul.f32 %v7594_v43, %v3868_v12 }
0x2123   :  { %v3857_v19 = vpop.permute.xlu0 %3856 }
0x2124   :  { %v3859_v50 = vadd.f32 %v3857_v19, %v3454_v18 }
0x2126   :  { %7595 = vtanh.f32 %v3859_v50 }
0x2127   :  { %7597 = vtanh.f32 %v3759_v16 }
0x2130   :  { %v7596_v52 = vpop.eup %7595 }
0x2131   :  { %3863 = vrot.lane.b32.xlu0 %v7596_v52, %s7689_s27  ;;  %v7598_v46 = vpop.eup %7597 }
0x2135   :  { %3763 = vrot.lane.b32.xlu0 %v7598_v46, %s7689_s27 }
0x21a3   :  { %v3864_v54 = vpop.permute.xlu0 %3863 }
0x21a4   :  { %v3866_v59 = vmul.f32 %v3864_v54, %v3861_v53 }
0x21a6   :  { %v3871_v60 = vadd.f32 %v3870_v58, %v3866_v59 }
0x21a7   :  { %v3764_v8 = vpop.permute.xlu0 %3763 }
0x21a8   :  { %v3872_v27 = vsub.f32 %v3871_v60, %v3868_v12  ;;  %v3766_v9 = vmul.f32 %v3764_v8, %v3761_v40 }
0x21aa   :  { %v3768_v35 = vadd.f32 %v3767_v15, %v3766_v9  ;;  %v3873_v37 = vmul.f32 %v3872_v27, %v7966_v55 }
0x21ac   :  { %v3769_v14 = vsub.f32 %v3768_v35, %v8548_v13  ;;  %3875 = vrot.lane.b32.xlu1 %v3873_v37, %s7689_s27 }
0x21ae   :  { %v3770_v31 = vmul.f32 %v3769_v14, %v7921_v5 }
0x21b0   :  { %v8718_v7 = vadd.f32 %v3770_v31, %v8548_v13 }
0x21b2   :  { %3953 = vrot.lane.b32.xlu0 %v8718_v7, %s7689_s27 }
0x221e   :  { %v3876_v25 = vpop.permute.xlu1 %3875 }
0x221f   :  { %v8723_v10 = vadd.f32 %v3876_v25, %v8678_v2 }
0x2221   :  { %6846 = vmatmul.mubr.msk.f32.vlgmr.msra.gmra.mrb[44].mxu1 %vm95_vm0, %v8723_v10 }
0x2222   :  { %7323 = vmatpush3.bf16.msra.mxu1 %v8529_v57  ;;  %6867 = vmatprep.mubr.msk.f32.mxu1 %vm7685_vm1, %v7686_v4 }
0x2223   :  { %7324 = vmatprep.subr.bf16.mxu1 %v7684_v3 }
0x2224   :  { %v3954_v26 = vpop.permute.xlu0 %3953 }
0x2225   :  { %6857 = vmatmul.mubr.msk.f32.vlgmr.msra.gmra.mrb[46].mxu0 %vm95_vm0, %v3954_v26 }
0x2226   :  { %7326 = vmatpush3.bf16.msra.mxu1 %v8539_v44  ;;  %7329 = vmatpush3.bf16.msra.mxu0 %v8653_v47 }
0x2227   :  { %7330 = vmatprep.subr.bf16.mxu0 %v7684_v3  ;;  %7333 = vmatprep.subr.bf16.mxu1 %v7684_v3 }
0x2228   :  { %6878 = vmatprep.mubr.msk.f32.mxu0 %vm7685_vm1, %v7686_v4 }
0x2229   :  { %6868 = vmatmul.mubr.msk.f32.vlgmr.msra.gmra.mrb[46].mxu1 %vm95_vm0, %v8723_v10 }
0x222a   :  { %7332 = vmatpush3.bf16.msra.mxu0 %v8659_v49  ;;  %7335 = vmatpush3.bf16.msra.mxu1 %v8598_v63 }
0x222b   :  { %7339 = vmatprep.subr.bf16.mxu0 %v7684_v3  ;;  %7336 = vmatprep.subr.bf16.mxu1 %v7684_v3 }
0x222c   :  { %6889 = vmatprep.mubr.msk.f32.mxu1 %vm7685_vm1, %v7686_v4 }
0x222e   :  { %7338 = vmatpush3.bf16.msra.mxu1 %v8616_v39 }
0x222f   :  { %7345 = vmatprep.subr.bf16.mxu1 %v7684_v3 }
0x22f4   :  { %v3948_v13 = vpop.f32.mrb[44].mxu1 }
0x22f5   :  { %v6847_v2 = vpop.f32.mrb[45].mxu1  ;;  %v3949_v43 = vadd.f32 %v8699_v6, %v3948_v13 }
0x22f8   :  { %v4023_v32 = vpop.f32.mrb[46].mxu0 }
0x22f9   :  { %v4024_v18 = vadd.f32 %v8673_v56, %v4023_v32  ;;  %v6858_v28 = vpop.f32.mrb[47].mxu0 }
0x22fb   :  { %4035 = vrot.lane.b32.xlu0 %v4024_v18, %s7688_s25  ;;  %v4027_v0 = vadd.f32 %v4024_v18, %v3949_v43 }
0x22fc   :  { %v4123_v22 = vpop.f32.mrb[46].mxu1 }
0x22fd   :  { %v4124_v38 = vadd.f32 %v8563_v51, %v4123_v22  ;;  %v6869_v1 = vpop.f32.mrb[47].mxu1  ;;  %v6038_v48 = vmul.f32 -1.442695, %v4027_v0 }
0x22ff   :  { %4135 = vrot.lane.b32.xlu1 %v4124_v38, %s7688_s25  ;;  %v4127_v19 = vadd.f32 %v4124_v38, %v3459_v45  ;;  %7599 = vpow2.f32 %v6038_v48 }
0x2301   :  { %v6040_v50 = vmul.f32 -1.442695, %v4127_v19 }
0x2303   :  { %7601 = vpow2.f32 %v6040_v50 }
0x2309   :  { %v7600_v16 = vpop.eup %7599 }
0x230a   :  { %v4031_v52 = vadd.f32 1.0, %v7600_v16 }
0x230c   :  { %7603 = vrcp.f32 %v4031_v52 }
0x230d   :  { %v7602_v46 = vpop.eup %7601 }
0x230e   :  { %v4131_v12 = vadd.f32 1.0, %v7602_v46 }
0x2310   :  { %7605 = vrcp.f32 %v4131_v12 }
0x2316   :  { %v7604_v53 = vpop.eup %7603 }
0x2317   :  { %v4045_v2 = vsub.f32 1.0, %v7604_v53  ;;  %v4051_v28 = vmul.f32 %v7604_v53, %v8718_v7 }
0x231a   :  { %v7606_v59 = vpop.eup %7605 }
0x231b   :  { %v4145_v14 = vsub.f32 1.0, %v7606_v59 }
0x236d   :  { %v4036_v54 = vpop.permute.xlu0 %4035 }
0x236e   :  { %v4038_v58 = vmul.f32 %v7604_v53, %v4036_v54 }
0x2370   :  { %4040 = vrot.lane.b32.xlu0 %v4038_v58, %s7688_s25 }
0x2371   :  { %v4136_v60 = vpop.permute.xlu1 %4135 }
0x2372   :  { %v4138_v40 = vmul.f32 %v7606_v59, %v4136_v60 }
0x2374   :  { %4140 = vrot.lane.b32.xlu1 %v4138_v40, %s7688_s25  ;;  %4151 = vrot.lane.b32.xlu0 %v8723_v10, %s7691_s6  ;;  %v3464_v40 = vadd.f32 %v8629_v36, %v8586_v62 }
0x23e2   :  { %v4041_v61 = vpop.permute.xlu0 %4040 }
0x23e3   :  { %v4043_v15 = vadd.f32 %v4041_v61, %v3949_v43 }
0x23e6   :  { %v4141_v8 = vpop.permute.xlu1 %4140  ;;  %v4152_v37 = vpop.permute.xlu0 %4151 }
0x23e7   :  { %v4143_v27 = vadd.f32 %v4141_v8, %v3459_v45  ;;  %v4154_v25 = vmul.f32 %v7606_v59, %v4152_v37 }
0x23e9   :  { %7607 = vtanh.f32 %v4143_v27 }
0x23ea   :  { %7609 = vtanh.f32 %v4043_v15 }
0x23f3   :  { %v7608_v9 = vpop.eup %7607 }
0x23f4   :  { %4147 = vrot.lane.b32.xlu1 %v7608_v9, %s7689_s27  ;;  %v7610_v35 = vpop.eup %7609 }
0x23f8   :  { %4047 = vrot.lane.b32.xlu1 %v7610_v35, %s7689_s27 }
0x2466   :  { %v4148_v31 = vpop.permute.xlu1 %4147 }
0x2467   :  { %v4150_v26 = vmul.f32 %v4148_v31, %v4145_v14 }
0x2469   :  { %v4155_v13 = vadd.f32 %v4154_v25, %v4150_v26 }
0x246a   :  { %v4048_v32 = vpop.permute.xlu1 %4047 }
0x246b   :  { %v4156_v18 = vsub.f32 %v4155_v13, %v4152_v37  ;;  %v4050_v22 = vmul.f32 %v4048_v32, %v4045_v2 }
0x246d   :  { %v4052_v38 = vadd.f32 %v4051_v28, %v4050_v22  ;;  %v4157_v1 = vmul.f32 %v4156_v18, %v8026_v11 }
0x246f   :  { %v4053_v43 = vsub.f32 %v4052_v38, %v8718_v7  ;;  %4159 = vrot.lane.b32.xlu0 %v4157_v1, %s7689_s27 }
0x2471   :  { %v4054_v0 = vmul.f32 %v4053_v43, %v7966_v55 }
0x2473   :  { %v8767_v45 = vadd.f32 %v4054_v0, %v8718_v7 }
0x2475   :  { %4237 = vrot.lane.b32.xlu1 %v8767_v45, %s7689_s27 }
0x24e1   :  { %v4160_v48 = vpop.permute.xlu0 %4159 }
0x24e2   :  { %v8772_v19 = vadd.f32 %v4160_v48, %v8723_v10 }
0x24e4   :  { %6879 = vmatmul.mubr.msk.f32.vlgmr.msra.gmra.mrb[48].mxu0 %vm95_vm0, %v8772_v19 }
0x24e5   :  { %7341 = vmatpush3.bf16.msra.mxu0 %v8529_v57  ;;  %6900 = vmatprep.mubr.msk.f32.mxu0 %vm7685_vm1, %v7686_v4 }
0x24e6   :  { %7342 = vmatprep.subr.bf16.mxu0 %v7684_v3 }
0x24e7   :  { %v4238_v50 = vpop.permute.xlu1 %4237 }
0x24e8   :  { %6890 = vmatmul.mubr.msk.f32.vlgmr.msra.gmra.mrb[48].mxu1 %vm95_vm0, %v4238_v50 }
0x24e9   :  { %7344 = vmatpush3.bf16.msra.mxu0 %v8539_v44  ;;  %7347 = vmatpush3.bf16.msra.mxu1 %v8653_v47 }
0x24ea   :  { %7351 = vmatprep.subr.bf16.mxu0 %v7684_v3  ;;  %7348 = vmatprep.subr.bf16.mxu1 %v7684_v3 }
0x24eb   :  { %6911 = vmatprep.mubr.msk.f32.mxu1 %vm7685_vm1, %v7686_v4 }
0x24ec   :  { %6901 = vmatmul.mubr.msk.f32.vlgmr.msra.gmra.mrb[50].mxu0 %vm95_vm0, %v8772_v19 }
0x24ed   :  { %7353 = vmatpush3.bf16.msra.mxu0 %v8598_v63  ;;  %6922 = vmatprep.mubr.msk.f32.mxu0 %vm7685_vm1, %v7686_v4 }
0x24ee   :  { %7354 = vmatprep.subr.bf16.mxu0 %v7684_v3  ;;  %7350 = vmatpush3.bf16.msra.mxu1 %v8659_v49 }
0x24ef   :  { %7357 = vmatprep.subr.bf16.mxu1 %v7684_v3 }
0x24f1   :  { %7356 = vmatpush3.bf16.msra.mxu0 %v8616_v39 }
0x24f2   :  { %7363 = vmatprep.subr.bf16.mxu0 %v7684_v3 }
0x25b7   :  { %v4232_v10 = vpop.f32.mrb[48].mxu0 }
0x25b8   :  { %v6880_v16 = vpop.f32.mrb[49].mxu0  ;;  %v4233_v59 = vadd.f32 %v8699_v6, %v4232_v10 }
0x25bb   :  { %v4307_v52 = vpop.f32.mrb[48].mxu1 }
0x25bc   :  { %v4308_v46 = vadd.f32 %v8673_v56, %v4307_v52  ;;  %v6891_v12 = vpop.f32.mrb[49].mxu1 }
0x25be   :  { %4319 = vrot.lane.b32.xlu0 %v4308_v46, %s7688_s25  ;;  %v4311_v60 = vadd.f32 %v4308_v46, %v4233_v59 }
0x25bf   :  { %v4407_v53 = vpop.f32.mrb[50].mxu0 }
0x25c0   :  { %v4408_v54 = vadd.f32 %v8563_v51, %v4407_v53  ;;  %v6902_v58 = vpop.f32.mrb[51].mxu0  ;;  %v6043_v61 = vmul.f32 -1.442695, %v4311_v60 }
0x25c2   :  { %4419 = vrot.lane.b32.xlu1 %v4408_v54, %s7688_s25  ;;  %v4411_v8 = vadd.f32 %v4408_v54, %v3464_v40  ;;  %7611 = vpow2.f32 %v6043_v61 }
0x25c4   :  { %v6045_v27 = vmul.f32 -1.442695, %v4411_v8 }
0x25c6   :  { %7613 = vpow2.f32 %v6045_v27 }
0x25cc   :  { %v7612_v15 = vpop.eup %7611 }
0x25cd   :  { %v4315_v9 = vadd.f32 1.0, %v7612_v15 }
0x25cf   :  { %7615 = vrcp.f32 %v4315_v9 }
0x25d0   :  { %v7614_v35 = vpop.eup %7613 }
0x25d1   :  { %v4415_v37 = vadd.f32 1.0, %v7614_v35 }
0x25d3   :  { %7617 = vrcp.f32 %v4415_v37 }
0x25d9   :  { %v7616_v14 = vpop.eup %7615 }
0x25da   :  { %v4329_v1 = vsub.f32 1.0, %v7616_v14  ;;  %v4335_v0 = vmul.f32 %v7616_v14, %v8767_v45 }
0x25dd   :  { %v7618_v26 = vpop.eup %7617 }
0x25de   :  { %v4429_v10 = vsub.f32 1.0, %v7618_v26 }
0x2630   :  { %v4320_v31 = vpop.permute.xlu0 %4319 }
0x2631   :  { %v4322_v25 = vmul.f32 %v7616_v14, %v4320_v31 }
0x2633   :  { %4324 = vrot.lane.b32.xlu0 %v4322_v25, %s7688_s25 }
0x2634   :  { %v4420_v13 = vpop.permute.xlu1 %4419 }
0x2635   :  { %v4422_v2 = vmul.f32 %v7618_v26, %v4420_v13 }
0x2637   :  { %4424 = vrot.lane.b32.xlu1 %v4422_v2, %s7688_s25 }
0x26a5   :  { %v4325_v36 = vpop.permute.xlu0 %4324 }
0x26a6   :  { %v4327_v32 = vadd.f32 %v4325_v36, %v4233_v59  ;;  %v3469_v36 = vadd.f32 %v8586_v62, %v8638_v33 }
0x26a8   :  { %7619 = vtanh.f32 %v4327_v32 }
0x26a9   :  { %v4425_v18 = vpop.permute.xlu1 %4424 }
0x26aa   :  { %v4427_v28 = vadd.f32 %v4425_v18, %v3464_v40 }
0x26ac   :  { %7621 = vtanh.f32 %v4427_v28 }
0x26b2   :  { %v7620_v22 = vpop.eup %7619 }
0x26b3   :  { %4331 = vrot.lane.b32.xlu0 %v7620_v22, %s7689_s27 }
0x26b6   :  { %v7622_v38 = vpop.eup %7621 }
0x26b7   :  { %4431 = vrot.lane.b32.xlu1 %v7622_v38, %s7689_s27  ;;  %4435 = vrot.lane.b32.xlu0 %v8772_v19, %s7691_s6 }
0x2725   :  { %v4332_v43 = vpop.permute.xlu0 %4331 }
0x2726   :  { %v4334_v48 = vmul.f32 %v4332_v43, %v4329_v1 }
0x2728   :  { %v4336_v50 = vadd.f32 %v4335_v0, %v4334_v48 }
0x2729   :  { %v4432_v16 = vpop.permute.xlu1 %4431  ;;  %v4436_v52 = vpop.permute.xlu0 %4435 }
0x272a   :  { %v4337_v46 = vsub.f32 %v4336_v50, %v8767_v45  ;;  %v4434_v12 = vmul.f32 %v4432_v16, %v4429_v10  ;;  %v4438_v53 = vmul.f32 %v7618_v26, %v4436_v52 }
0x272c   :  { %v4338_v54 = vmul.f32 %v4337_v46, %v8026_v11  ;;  %v4439_v58 = vadd.f32 %v4438_v53, %v4434_v12 }
0x272e   :  { %v8814_v59 = vadd.f32 %v4338_v54, %v8767_v45  ;;  %v4440_v60 = vsub.f32 %v4439_v58, %v4436_v52 }
0x2730   :  { %v4441_v40 = vmul.f32 %v4440_v60, %v8078_v21  ;;  %4521 = vrot.lane.b32.xlu0 %v8814_v59, %s7689_s27 }
0x2732   :  { %4443 = vrot.lane.b32.xlu1 %v4441_v40, %s7689_s27 }
0x27a2   :  { %v4522_v61 = vpop.permute.xlu0 %4521 }
0x27a3   :  { %6923 = vmatmul.mubr.msk.f32.vlgmr.msra.gmra.mrb[52].mxu0 %vm95_vm0, %v4522_v61 }
0x27a4   :  { %v4444_v8 = vpop.permute.xlu1 %4443  ;;  %7365 = vmatpush3.bf16.msra.mxu0 %v8653_v47  ;;  %6944 = vmatprep.mubr.msk.f32.mxu0 %vm7685_vm1, %v7686_v4 }
0x27a5   :  { %v8825_v27 = vadd.f32 %v4444_v8, %v8772_v19  ;;  %7366 = vmatprep.subr.bf16.mxu0 %v7684_v3 }
0x27a7   :  { %6912 = vmatmul.mubr.msk.f32.vlgmr.msra.gmra.mrb[50].mxu1 %vm95_vm0, %v8825_v27 }
0x27a8   :  { %7359 = vmatpush3.bf16.msra.mxu1 %v8529_v57  ;;  %6933 = vmatprep.mubr.msk.f32.mxu1 %vm7685_vm1, %v7686_v4 }
0x27a9   :  { %7360 = vmatprep.subr.bf16.mxu1 %v7684_v3  ;;  %7368 = vmatpush3.bf16.msra.mxu0 %v8659_v49 }
0x27aa   :  { %7375 = vmatprep.subr.bf16.mxu0 %v7684_v3 }
0x27ac   :  { %7362 = vmatpush3.bf16.msra.mxu1 %v8539_v44 }
0x27ad   :  { %7369 = vmatprep.subr.bf16.mxu1 %v7684_v3 }
0x27af   :  { %6934 = vmatmul.mubr.msk.f32.vlgmr.msra.gmra.mrb[52].mxu1 %vm95_vm0, %v8825_v27 }
0x27b0   :  { %7371 = vmatpush3.bf16.msra.mxu1 %v8598_v63  ;;  %6955 = vmatprep.mubr.msk.f32.mxu1 %vm7685_vm1, %v7686_v4 }
0x27b1   :  { %7372 = vmatprep.subr.bf16.mxu1 %v7684_v3 }
0x27b4   :  { %7374 = vmatpush3.bf16.msra.mxu1 %v8616_v39 }
0x27b5   :  { %7381 = vmatprep.subr.bf16.mxu1 %v7684_v3 }
0x2876   :  { %v4591_v19 = vpop.f32.mrb[52].mxu0 }
0x2877   :  { %v4592_v15 = vadd.f32 %v8673_v56, %v4591_v19  ;;  %v6924_v9 = vpop.f32.mrb[53].mxu0 }
0x2879   :  { %4603 = vrot.lane.b32.xlu1 %v4592_v15, %s7688_s25 }
0x287a   :  { %v4516_v35 = vpop.f32.mrb[50].mxu1 }
0x287b   :  { %v6913_v37 = vpop.f32.mrb[51].mxu1  ;;  %v4517_v26 = vadd.f32 %v8699_v6, %v4516_v35 }
0x287d   :  { %v4595_v13 = vadd.f32 %v4592_v15, %v4517_v26 }
0x287f   :  { %v6048_v2 = vmul.f32 -1.442695, %v4595_v13 }
0x2881   :  { %7623 = vpow2.f32 %v6048_v2 }
0x2882   :  { %v4691_v14 = vpop.f32.mrb[52].mxu1 }
0x2883   :  { %v4692_v31 = vadd.f32 %v8563_v51, %v4691_v14  ;;  %v6935_v25 = vpop.f32.mrb[53].mxu1 }
0x2885   :  { %4703 = vrot.lane.b32.xlu0 %v4692_v31, %s7688_s25  ;;  %v4695_v32 = vadd.f32 %v4692_v31, %v3469_v36 }
0x2887   :  { %v6050_v18 = vmul.f32 -1.442695, %v4695_v32 }
0x2889   :  { %7625 = vpow2.f32 %v6050_v18 }
0x288b   :  { %v7624_v28 = vpop.eup %7623 }
0x288c   :  { %v4599_v22 = vadd.f32 1.0, %v7624_v28 }
0x288e   :  { %7627 = vrcp.f32 %v4599_v22 }
0x2893   :  { %v7626_v38 = vpop.eup %7625 }
0x2894   :  { %v4699_v1 = vadd.f32 1.0, %v7626_v38 }
0x2896   :  { %7629 = vrcp.f32 %v4699_v1 }
0x2898   :  { %v7628_v43 = vpop.eup %7627 }
0x2899   :  { %v4613_v58 = vsub.f32 1.0, %v7628_v43  ;;  %v4619_v40 = vmul.f32 %v7628_v43, %v8814_v59 }
0x28a0   :  { %v7630_v50 = vpop.eup %7629 }
0x28a1   :  { %v4713_v37 = vsub.f32 1.0, %v7630_v50 }
0x28eb   :  { %v4604_v0 = vpop.permute.xlu1 %4603 }
0x28ec   :  { %v4606_v48 = vmul.f32 %v7628_v43, %v4604_v0 }
0x28ee   :  { %4608 = vrot.lane.b32.xlu1 %v4606_v48, %s7688_s25 }
0x28f7   :  { %v4704_v10 = vpop.permute.xlu0 %4703 }
0x28f8   :  { %v4706_v16 = vmul.f32 %v7630_v50, %v4704_v10 }
0x28fa   :  { %4708 = vrot.lane.b32.xlu0 %v4706_v16, %s7688_s25 }
0x2960   :  { %v4609_v33 = vpop.permute.xlu1 %4608 }
0x2961   :  { %v4611_v52 = vadd.f32 %v4609_v33, %v4517_v26 }
0x2963   :  { %7631 = vtanh.f32 %v4611_v52  ;;  %v3474_v52 = vadd.f32 %v8636_v17, %v8586_v62 }
0x296c   :  { %v4709_v46 = vpop.permute.xlu0 %4708 }
0x296d   :  { %v7632_v12 = vpop.eup %7631  ;;  %v4711_v53 = vadd.f32 %v4709_v46, %v3469_v36 }
0x296e   :  { %4615 = vrot.lane.b32.xlu1 %v7632_v12, %s7689_s27 }
0x296f   :  { %7633 = vtanh.f32 %v4711_v53 }
0x2972   :  { %4719 = vrot.lane.b32.xlu1 %v8825_v27, %s7691_s6 }
0x2979   :  { %v7634_v54 = vpop.eup %7633 }
0x297a   :  { %4715 = vrot.lane.b32.xlu0 %v7634_v54, %s7689_s27 }
0x29e0   :  { %v4616_v60 = vpop.permute.xlu1 %4615 }
0x29e1   :  { %v4618_v61 = vmul.f32 %v4616_v60, %v4613_v58 }
0x29e3   :  { %v4620_v8 = vadd.f32 %v4619_v40, %v4618_v61 }
0x29e4   :  { %v4720_v35 = vpop.permute.xlu1 %4719 }
0x29e5   :  { %v4621_v19 = vsub.f32 %v4620_v8, %v8814_v59  ;;  %v4722_v31 = vmul.f32 %v7630_v50, %v4720_v35 }
0x29e7   :  { %v4622_v15 = vmul.f32 %v4621_v19, %v8078_v21 }
0x29e9   :  { %v8863_v9 = vadd.f32 %v4622_v15, %v8814_v59 }
0x29eb   :  { %4805 = vrot.lane.b32.xlu0 %v8863_v9, %s7689_s27 }
0x29ec   :  { %v4716_v14 = vpop.permute.xlu0 %4715 }
0x29ed   :  { %v4718_v25 = vmul.f32 %v4716_v14, %v4713_v37 }
0x29ef   :  { %v4723_v26 = vadd.f32 %v4722_v31, %v4718_v25 }
0x29f1   :  { %v4724_v13 = vsub.f32 %v4723_v26, %v4720_v35 }
0x29f3   :  { %v4725_v2 = vmul.f32 %v4724_v13, %v8132_v20 }
0x29f5   :  { %4727 = vrot.lane.b32.xlu1 %v4725_v2, %s7689_s27 }
0x2a5d   :  { %v4806_v36 = vpop.permute.xlu0 %4805 }
0x2a5e   :  { %6956 = vmatmul.mubr.msk.f32.vlgmr.msra.gmra.mrb[54].mxu1 %vm95_vm0, %v4806_v36 }
0x2a5f   :  { %7383 = vmatpush3.bf16.msra.mxu1 %v8653_v47  ;;  %6977 = vmatprep.mubr.msk.f32.mxu1 %vm7685_vm1, %v7686_v4 }
0x2a60   :  { %7384 = vmatprep.subr.bf16.mxu1 %v7684_v3 }
0x2a63   :  { %7386 = vmatpush3.bf16.msra.mxu1 %v8659_v49 }
0x2a64   :  { %7393 = vmatprep.subr.bf16.mxu1 %v7684_v3 }
0x2a67   :  { %v4728_v32 = vpop.permute.xlu1 %4727 }
0x2a68   :  { %v8877_v18 = vadd.f32 %v4728_v32, %v8825_v27 }
0x2a6a   :  { %6945 = vmatmul.mubr.msk.f32.vlgmr.msra.gmra.mrb[54].mxu0 %vm95_vm0, %v8877_v18 }
0x2a6b   :  { %7377 = vmatpush3.bf16.msra.mxu0 %v8529_v57  ;;  %6966 = vmatprep.mubr.msk.f32.mxu0 %vm7685_vm1, %v7686_v4 }
0x2a6c   :  { %7378 = vmatprep.subr.bf16.mxu0 %v7684_v3 }
0x2a6f   :  { %7380 = vmatpush3.bf16.msra.mxu0 %v8539_v44 }
0x2a70   :  { %7387 = vmatprep.subr.bf16.mxu0 %v7684_v3 }
0x2a72   :  { %6967 = vmatmul.mubr.msk.f32.vlgmr.msra.gmra.mrb[56].mxu0 %vm95_vm0, %v8877_v18 }
0x2a73   :  { %7389 = vmatpush3.bf16.msra.mxu0 %v8598_v63  ;;  %6988 = vmatprep.mubr.msk.f32.mxu0 %vm7685_vm1, %v7686_v4 }
0x2a74   :  { %7390 = vmatprep.subr.bf16.mxu0 %v7684_v3 }
0x2a77   :  { %7392 = vmatpush3.bf16.msra.mxu0 %v8616_v39 }
0x2a78   :  { %7399 = vmatprep.subr.bf16.mxu0 %v7684_v3 }
0x2b31   :  { %v4875_v27 = vpop.f32.mrb[54].mxu1 }
0x2b32   :  { %v4876_v28 = vadd.f32 %v8673_v56, %v4875_v27  ;;  %v6957_v22 = vpop.f32.mrb[55].mxu1 }
0x2b34   :  { %4887 = vrot.lane.b32.xlu0 %v4876_v28, %s7688_s25 }
0x2b3d   :  { %v4800_v38 = vpop.f32.mrb[54].mxu0 }
0x2b3e   :  { %v6946_v1 = vpop.f32.mrb[55].mxu0  ;;  %v4801_v50 = vadd.f32 %v8699_v6, %v4800_v38 }
0x2b40   :  { %v4879_v10 = vadd.f32 %v4876_v28, %v4801_v50 }
0x2b42   :  { %v6053_v16 = vmul.f32 -1.442695, %v4879_v10 }
0x2b44   :  { %7635 = vpow2.f32 %v6053_v16 }
0x2b45   :  { %v4975_v43 = vpop.f32.mrb[56].mxu0 }
0x2b46   :  { %v4976_v0 = vadd.f32 %v8563_v51, %v4975_v43  ;;  %v6968_v48 = vpop.f32.mrb[57].mxu0 }
0x2b48   :  { %4987 = vrot.lane.b32.xlu1 %v4976_v0, %s7688_s25  ;;  %v4979_v46 = vadd.f32 %v4976_v0, %v3474_v52 }
0x2b4a   :  { %v6055_v53 = vmul.f32 -1.442695, %v4979_v46 }
0x2b4e   :  { %v7636_v33 = vpop.eup %7635 }
0x2b4f   :  { %v4883_v12 = vadd.f32 1.0, %v7636_v33 }
0x2b51   :  { %7637 = vrcp.f32 %v4883_v12 }
0x2b52   :  { %7639 = vpow2.f32 %v6055_v53 }
0x2b5b   :  { %v7638_v54 = vpop.eup %7637 }
0x2b5c   :  { %v7640_v60 = vpop.eup %7639  ;;  %v4897_v31 = vsub.f32 1.0, %v7638_v54  ;;  %v4903_v26 = vmul.f32 %v7638_v54, %v8863_v9 }
0x2b5d   :  { %v4983_v40 = vadd.f32 1.0, %v7640_v60 }
0x2b5f   :  { %7641 = vrcp.f32 %v4983_v40 }
0x2b69   :  { %v7642_v61 = vpop.eup %7641 }
0x2b6a   :  { %v4997_v22 = vsub.f32 1.0, %v7642_v61 }
0x2ba6   :  { %v4888_v58 = vpop.permute.xlu0 %4887 }
0x2ba7   :  { %v4890_v51 = vmul.f32 %v7638_v54, %v4888_v58  ;;  %v8949_v58 = vld [vmem:[%s9128_s7 + $0x6] ss:$0 sm:$0xff] }
0x2ba9   :  { %4892 = vrot.lane.b32.xlu0 %v4890_v51, %s7688_s25 }
0x2bba   :  { %v4988_v8 = vpop.permute.xlu1 %4987 }
0x2bbb   :  { %v4990_v19 = vmul.f32 %v7642_v61, %v4988_v8 }
0x2bbd   :  { %4992 = vrot.lane.b32.xlu1 %v4990_v19, %s7688_s25 }
0x2c1b   :  { %v4893_v15 = vpop.permute.xlu0 %4892 }
0x2c1c   :  { %v4895_v62 = vadd.f32 %v4893_v15, %v4801_v50 }
0x2c1e   :  { %7643 = vtanh.f32 %v4895_v62  ;;  %v8957_v62 = vld [vmem:[%s9128_s7 + $0x2] ss:$0 sm:$0xff] }
0x2c28   :  { %v7644_v17 = vpop.eup %7643 }
0x2c29   :  { %4899 = vrot.lane.b32.xlu0 %v7644_v17, %s7689_s27  ;;  %v3479_v17 = vadd.f32 %v8957_v62, %v8642_v42 }
0x2c2d   :  { %5003 = vrot.lane.b32.xlu0 %v8877_v18, %s7691_s6 }
0x2c2f   :  { %v4993_v35 = vpop.permute.xlu1 %4992 }
0x2c30   :  { %v4995_v37 = vadd.f32 %v4993_v35, %v3474_v52 }
0x2c32   :  { %7645 = vtanh.f32 %v4995_v37 }
0x2c3c   :  { %v7646_v14 = vpop.eup %7645 }
0x2c3d   :  { %4999 = vrot.lane.b32.xlu1 %v7646_v14, %s7689_s27 }
0x2c9b   :  { %v4900_v25 = vpop.permute.xlu0 %4899 }
0x2c9c   :  { %v4902_v13 = vmul.f32 %v4900_v25, %v4897_v31 }
0x2c9e   :  { %v4904_v2 = vadd.f32 %v4903_v26, %v4902_v13 }
0x2c9f   :  { %v5004_v28 = vpop.permute.xlu0 %5003 }
0x2ca0   :  { %v4905_v36 = vsub.f32 %v4904_v2, %v8863_v9  ;;  %v5006_v1 = vmul.f32 %v7642_v61, %v5004_v28 }
0x2ca2   :  { %v4906_v32 = vmul.f32 %v4905_v36, %v8132_v20 }
0x2ca4   :  { %v8912_v27 = vadd.f32 %v4906_v32, %v8863_v9 }
0x2ca6   :  { %5089 = vrot.lane.b32.xlu1 %v8912_v27, %s7689_s27 }
0x2caf   :  { %v5000_v38 = vpop.permute.xlu1 %4999 }
0x2cb0   :  { %v5002_v43 = vmul.f32 %v5000_v38, %v4997_v22 }
0x2cb2   :  { %v5007_v0 = vadd.f32 %v5006_v1, %v5002_v43 }
0x2cb4   :  { %v5008_v48 = vsub.f32 %v5007_v0, %v5004_v28 }
0x2cb6   :  { %v5009_v50 = vmul.f32 %v5008_v48, %v8185_v23 }
0x2cb8   :  { %5011 = vrot.lane.b32.xlu0 %v5009_v50, %s7689_s27 }
0x2d18   :  { %v5090_v10 = vpop.permute.xlu1 %5089 }
0x2d19   :  { %6989 = vmatmul.mubr.msk.f32.vlgmr.msra.gmra.mrb[58].mxu0 %vm95_vm0, %v5090_v10 }
0x2d1a   :  { %7401 = vmatpush3.bf16.msra.mxu0 %v8653_v47  ;;  %7010 = vmatprep.mubr.msk.f32.mxu0 %vm7685_vm1, %v7686_v4 }
0x2d1b   :  { %7402 = vmatprep.subr.bf16.mxu0 %v7684_v3 }
0x2d1e   :  { %7404 = vmatpush3.bf16.msra.mxu0 %v8659_v49 }
0x2d1f   :  { %7411 = vmatprep.subr.bf16.mxu0 %v7684_v3 }
0x2d2a   :  { %v5012_v16 = vpop.permute.xlu0 %5011 }
0x2d2b   :  { %v8926_v33 = vadd.f32 %v5012_v16, %v8877_v18 }
0x2d2d   :  { %6978 = vmatmul.mubr.msk.f32.vlgmr.msra.gmra.mrb[56].mxu1 %vm95_vm0, %v8926_v33 }
0x2d2e   :  { %7395 = vmatpush3.bf16.msra.mxu1 %v8529_v57  ;;  %6999 = vmatprep.mubr.msk.f32.mxu1 %vm7685_vm1, %v7686_v4 }
0x2d2f   :  { %7396 = vmatprep.subr.bf16.mxu1 %v7684_v3 }
0x2d32   :  { %7398 = vmatpush3.bf16.msra.mxu1 %v8539_v44 }
0x2d33   :  { %7405 = vmatprep.subr.bf16.mxu1 %v7684_v3 }
0x2d35   :  { %7000 = vmatmul.mubr.msk.f32.vlgmr.msra.gmra.mrb[58].mxu1 %vm95_vm0, %v8926_v33 }
0x2d36   :  { %7407 = vmatpush3.bf16.msra.mxu1 %v8598_v63  ;;  %7021 = vmatprep.mubr.msk.f32.mxu1 %vm7685_vm1, %v7686_v4 }
0x2d37   :  { %7408 = vmatprep.subr.bf16.mxu1 %v7684_v3 }
0x2d3a   :  { %7410 = vmatpush3.bf16.msra.mxu1 %v8616_v39 }
0x2d3b   :  { %7417 = vmatprep.subr.bf16.mxu1 %v7684_v3 }
0x2dec   :  { %v5159_v18 = vpop.f32.mrb[58].mxu0 }
0x2ded   :  { %v5160_v52 = vadd.f32 %v8673_v56, %v5159_v18  ;;  %v6990_v46 = vpop.f32.mrb[59].mxu0 }
0x2def   :  { %5171 = vrot.lane.b32.xlu1 %v5160_v52, %s7688_s25 }
0x2e00   :  { %v5084_v12 = vpop.f32.mrb[56].mxu1 }
0x2e01   :  { %v6979_v53 = vpop.f32.mrb[57].mxu1  ;;  %v5085_v40 = vadd.f32 %v8699_v6, %v5084_v12 }
0x2e03   :  { %v5163_v61 = vadd.f32 %v5160_v52, %v5085_v40 }
0x2e05   :  { %v6058_v8 = vmul.f32 -1.442695, %v5163_v61 }
0x2e07   :  { %7647 = vpow2.f32 %v6058_v8 }
0x2e08   :  { %v5259_v54 = vpop.f32.mrb[58].mxu1 }
0x2e09   :  { %v5260_v51 = vadd.f32 %v8949_v58, %v5259_v54  ;;  %v7001_v60 = vpop.f32.mrb[59].mxu1 }
0x2e0b   :  { %5271 = vrot.lane.b32.xlu0 %v5260_v51, %s7688_s25  ;;  %v5263_v35 = vadd.f32 %v5260_v51, %v3479_v17 }
0x2e0d   :  { %v6060_v37 = vmul.f32 -1.442695, %v5263_v35 }
0x2e11   :  { %v7648_v19 = vpop.eup %7647 }
0x2e12   :  { %v5167_v15 = vadd.f32 1.0, %v7648_v19 }
0x2e14   :  { %7649 = vrcp.f32 %v5167_v15 }
0x2e15   :  { %7651 = vpow2.f32 %v6060_v37 }
0x2e1e   :  { %v7650_v14 = vpop.eup %7649 }
0x2e1f   :  { %v7652_v26 = vpop.eup %7651  ;;  %v5181_v0 = vsub.f32 1.0, %v7650_v14  ;;  %v5187_v50 = vmul.f32 %v7650_v14, %v8912_v27 }
0x2e20   :  { %v5267_v13 = vadd.f32 1.0, %v7652_v26 }
0x2e22   :  { %7653 = vrcp.f32 %v5267_v13 }
0x2e2c   :  { %v7654_v2 = vpop.eup %7653 }
0x2e2d   :  { %v5281_v53 = vsub.f32 1.0, %v7654_v2 }
0x2e61   :  { %v5172_v31 = vpop.permute.xlu1 %5171 }
0x2e62   :  { %v5174_v25 = vmul.f32 %v7650_v14, %v5172_v31 }
0x2e64   :  { %5176 = vrot.lane.b32.xlu1 %v5174_v25, %s7688_s25 }
0x2e7d   :  { %v5272_v36 = vpop.permute.xlu0 %5271 }
0x2e7e   :  { %v5274_v32 = vmul.f32 %v7654_v2, %v5272_v36 }
0x2e80   :  { %5276 = vrot.lane.b32.xlu0 %v5274_v32, %s7688_s25 }
0x2ed6   :  { %v5177_v28 = vpop.permute.xlu1 %5176 }
0x2ed7   :  { %v5179_v22 = vadd.f32 %v5177_v28, %v5085_v40 }
0x2ed9   :  { %7655 = vtanh.f32 %v5179_v22 }
0x2ee3   :  { %v7656_v42 = vpop.eup %7655 }
0x2ee4   :  { %5183 = vrot.lane.b32.xlu1 %v7656_v42, %s7689_s27 }
0x2ee8   :  { %5287 = vrot.lane.b32.xlu1 %v8926_v33, %s7691_s6 }
0x2ef2   :  { %v5277_v38 = vpop.permute.xlu0 %5276 }
0x2ef3   :  { %v5279_v1 = vadd.f32 %v5277_v38, %v3479_v17 }
0x2ef5   :  { %7657 = vtanh.f32 %v5279_v1 }
0x2eff   :  { %v7658_v43 = vpop.eup %7657 }
0x2f00   :  { %5283 = vrot.lane.b32.xlu0 %v7658_v43, %s7689_s27 }
0x2f56   :  { %v5184_v48 = vpop.permute.xlu1 %5183 }
0x2f57   :  { %v5186_v10 = vmul.f32 %v5184_v48, %v5181_v0 }
0x2f59   :  { %v5188_v16 = vadd.f32 %v5187_v50, %v5186_v10 }
0x2f5a   :  { %v5288_v12 = vpop.permute.xlu1 %5287 }
0x2f5b   :  { %v5189_v18 = vsub.f32 %v5188_v16, %v8912_v27  ;;  %v5290_v51 = vmul.f32 %v7654_v2, %v5288_v12 }
0x2f5d   :  { %v5190_v52 = vmul.f32 %v5189_v18, %v8185_v23 }
0x2f5f   :  { %v8971_v46 = vadd.f32 %v5190_v52, %v8912_v27 }
0x2f61   :  { %5373 = vrot.lane.b32.xlu0 %v8971_v46, %s7689_s27 }
0x2f72   :  { %v5284_v54 = vpop.permute.xlu0 %5283 }
0x2f73   :  { %v5286_v60 = vmul.f32 %v5284_v54, %v5281_v53 }
0x2f75   :  { %v5291_v40 = vadd.f32 %v5290_v51, %v5286_v60 }
0x2f77   :  { %v5292_v61 = vsub.f32 %v5291_v40, %v5288_v12 }
0x2f79   :  { %v5293_v8 = vmul.f32 %v5292_v61, %v8238_v34 }
0x2f7b   :  { %5295 = vrot.lane.b32.xlu1 %v5293_v8, %s7689_s27 }
0x2fd3   :  { %v5374_v19 = vpop.permute.xlu0 %5373 }
0x2fd4   :  { %7022 = vmatmul.mubr.msk.f32.vlgmr.msra.gmra.mrb[60].mxu1 %vm95_vm0, %v5374_v19 }
0x2fd5   :  { %7419 = vmatpush3.bf16.msra.mxu1 %v8653_v47  ;;  %7043 = vmatprep.mubr.msk.f32.mxu1 %vm7685_vm1, %v7686_v4 }
0x2fd6   :  { %7420 = vmatprep.subr.bf16.mxu1 %v7684_v3 }
0x2fd9   :  { %7422 = vmatpush3.bf16.msra.mxu1 %v8659_v49 }
0x2fed   :  { %v5296_v15 = vpop.permute.xlu1 %5295 }
0x2fee   :  { %v8984_v17 = vadd.f32 %v5296_v15, %v8926_v33 }
0x2ff0   :  { %7011 = vmatmul.mubr.msk.f32.vlgmr.msra.gmra.mrb[60].mxu0 %vm95_vm0, %v8984_v17 }
0x2ff1   :  { %7413 = vmatpush3.bf16.msra.mxu0 %v8529_v57  ;;  %7032 = vmatprep.mubr.msk.f32.mxu0 %vm7685_vm1, %v7686_v4 }
0x2ff2   :  { %7414 = vmatprep.subr.bf16.mxu0 %v7684_v3 }
0x2ff5   :  { %7416 = vmatpush3.bf16.msra.mxu0 %v8539_v44 }
0x2ff6   :  { %7423 = vmatprep.subr.bf16.mxu0 %v7684_v3 }
0x2ff8   :  { %7033 = vmatmul.mubr.msk.f32.vlgmr.msra.gmra.mrb[62].mxu0 %vm95_vm0, %v8984_v17 }
0x2ff9   :  { %7425 = vmatpush3.bf16.msra.mxu0 %v8598_v63  ;;  %7054 = vmatprep.mubr.msk.f32.mxu0 %vm7685_vm1, %v7686_v4 }
0x2ffa   :  { %7426 = vmatprep.subr.bf16.mxu0 %v7684_v3 }
0x2ffd   :  { %7428 = vmatpush3.bf16.msra.mxu0 %v8616_v39 }
0x30a7   :  { %v5443_v57 = vpop.f32.mrb[60].mxu1 }
0x30a8   :  { %v5444_v47 = vadd.f32 %v8673_v56, %v5443_v57  ;;  %v7023_v49 = vpop.f32.mrb[61].mxu1  ;;  %v3484_v56 = vadd.f32 %v8957_v62, %v8640_v41 }
0x30aa   :  { %5455 = vrot.lane.b32.xlu0 %v5444_v47, %s7688_s25 }
0x30c3   :  { %v5368_v44 = vpop.f32.mrb[60].mxu0 }
0x30c4   :  { %v7012_v33 = vpop.f32.mrb[61].mxu0  ;;  %v5369_v4 = vadd.f32 %v8699_v6, %v5368_v44  ;;  %v7682_v44 = vld [vmem:[%s9128_s7 + $0x7] ss:$0 sm:$0xff] }
0x30c6   :  { %v5447_v63 = vadd.f32 %v5444_v47, %v5369_v4 }
0x30c8   :  { %v6063_v3 = vmul.f32 -1.442695, %v5447_v63 }
0x30ca   :  { %7659 = vpow2.f32 %v6063_v3 }
0x30cb   :  { %v5543_v35 = vpop.f32.mrb[62].mxu0 }
0x30cc   :  { %v5544_v37 = vadd.f32 %v8949_v58, %v5543_v35  ;;  %v7034_v14 = vpop.f32.mrb[63].mxu0 }
0x30ce   :  { %5555 = vrot.lane.b32.xlu1 %v5544_v37, %s7688_s25  ;;  %v5547_v13 = vadd.f32 %v5544_v37, %v3484_v56 }
0x30d0   :  { %v6065_v58 = vmul.f32 -1.442695, %v5547_v13  ;;  %v3772_v13 = vmul.f32 %v8718_v7, %v7921_v5  ;;  %v5762_v5 = vld [vmem:[%s9130_s8 + $0x100] sm:$0xff] }
0x30d4   :  { %v7660_v39 = vpop.eup %7659 }
0x30d5   :  { %v5451_v31 = vadd.f32 1.0, %v7660_v39 }
0x30d7   :  { %7661 = vrcp.f32 %v5451_v31 }
0x30d8   :  { %7663 = vpow2.f32 %v6065_v58  ;;  %v4908_v58 = vmul.f32 %v8912_v27, %v8132_v20  ;;  %v5764_v27 = vld [vmem:[%s9130_s8 + $0x110] sm:$0xff] }
0x30e1   :  { %v7662_v25 = vpop.eup %7661 }
0x30e2   :  { %v7664_v36 = vpop.eup %7663  ;;  %v5465_v0 = vsub.f32 1.0, %v7662_v25  ;;  %v5471_v50 = vmul.f32 %v7662_v25, %v8971_v46 }
0x30e3   :  { %v5551_v32 = vadd.f32 1.0, %v7664_v36  ;;  %v5761_v36 = vld [vmem:[%s9130_s8 + $0xf8] sm:$0xff] }
0x30e4   :  { %v7429_v7 = vpack.c.bf16 %v5762_v5, %v5761_v36 }
0x30e5   :  { %7665 = vrcp.f32 %v5551_v32 }
0x30e6   :  { %7430 = vmatprep.subr.bf16.mxu1 %v7429_v7 }
0x30ef   :  { %v7666_v6 = vpop.eup %7665 }
0x30f0   :  { %v5565_v54 = vsub.f32 1.0, %v7666_v6 }
0x311c   :  { %v5456_v26 = vpop.permute.xlu0 %5455 }
0x311d   :  { %v5458_v2 = vmul.f32 %v7662_v25, %v5456_v26 }
0x311f   :  { %5460 = vrot.lane.b32.xlu0 %v5458_v2, %s7688_s25  ;;  %v4340_v2 = vmul.f32 %v8814_v59, %v8026_v11  ;;  %v5763_v59 = vld [vmem:[%s9130_s8 + $0x108] sm:$0xff] }
0x3140   :  { %v5556_v28 = vpop.permute.xlu1 %5555 }
0x3141   :  { %v5558_v22 = vmul.f32 %v7666_v6, %v5556_v28 }
0x3143   :  { %5560 = vrot.lane.b32.xlu1 %v5558_v22, %s7688_s25 }
0x3191   :  { %v5461_v42 = vpop.permute.xlu0 %5460 }
0x3192   :  { %v5463_v38 = vadd.f32 %v5461_v42, %v5369_v4  ;;  %v7683_v4 = vld [vmem:[%s9128_s7 + $0x3] ss:$0 sm:$0xff]  ;;  %v4056_v42 = vmul.f32 %v8767_v45, %v7966_v55 }
0x3194   :  { %7667 = vtanh.f32 %v5463_v38 }
0x319e   :  { %v7668_v41 = vpop.eup %7667 }
0x319f   :  { %5467 = vrot.lane.b32.xlu0 %v7668_v41, %s7689_s27  ;;  %v4624_v41 = vmul.f32 %v8863_v9, %v8078_v21 }
0x31a3   :  { %5571 = vrot.lane.b32.xlu0 %v8984_v17, %s7691_s6 }
0x31b5   :  { %v5561_v62 = vpop.permute.xlu1 %5560 }
0x31b6   :  { %v5563_v1 = vadd.f32 %v5561_v62, %v3484_v56  ;;  %v5192_v62 = vmul.f32 %v8971_v46, %v8185_v23 }
0x31b8   :  { %7669 = vtanh.f32 %v5563_v1 }
0x31c2   :  { %v7670_v43 = vpop.eup %7669 }
0x31c3   :  { %5567 = vrot.lane.b32.xlu1 %v7670_v43, %s7689_s27 }
0x3211   :  { %v5468_v48 = vpop.permute.xlu0 %5467 }
0x3212   :  { %v5470_v10 = vmul.f32 %v5468_v48, %v5465_v0 }
0x3214   :  { %v5472_v16 = vadd.f32 %v5471_v50, %v5470_v10 }
0x3215   :  { %v5572_v53 = vpop.permute.xlu0 %5571 }
0x3216   :  { %v5473_v18 = vsub.f32 %v5472_v16, %v8971_v46  ;;  %v5574_v60 = vmul.f32 %v7666_v6, %v5572_v53 }
0x3218   :  { %v5474_v52 = vmul.f32 %v5473_v18, %v8238_v34  ;;  %v6069_v18 = vld [vmem:[%s9132_s9 + $0x9] ss:$0 sm:$0xff] }
0x321a   :  { %v9018_v12 = vadd.f32 %v5474_v52, %v8971_v46 }
0x321c   :  { %5657 = vrot.lane.b32.xlu1 %v9018_v12, %s7689_s27  ;;  %v5476_v32 = vmul.f32 %v9018_v12, %v8238_v34  ;;  %v7433_v34 = vpack.c.bf16 %v5764_v27, %v5763_v59 }
0x3235   :  { %v5568_v51 = vpop.permute.xlu1 %5567 }
0x3236   :  { %v5570_v40 = vmul.f32 %v5568_v51, %v5565_v54 }
0x3238   :  { %v5575_v61 = vadd.f32 %v5574_v60, %v5570_v40 }
0x323a   :  { %v5576_v8 = vsub.f32 %v5575_v61, %v5572_v53 }
0x323c   :  { %v5577_v19 = vmul.f32 %v5576_v8, %v8306_v30 }
0x323e   :  { %5579 = vrot.lane.b32.xlu0 %v5577_v19, %s7689_s27 }
0x328e   :  { %v5658_v15 = vpop.permute.xlu1 %5657 }
0x328f   :  { %7055 = vmatmul.mubr.msk.f32.vlgmr.msra.gmra.mrb[64].mxu0 %vm95_vm0, %v5658_v15 }
0x32b0   :  { %v5580_v57 = vpop.permute.xlu0 %5579 }
0x32b1   :  { %v5582_v47 = vadd.f32 %v5580_v57, %v8984_v17 }
0x32b3   :  { %7044 = vmatmul.mubr.msk.f32.vlgmr.msra.gmra.mrb[62].mxu1 %vm95_vm0, %v5582_v47 }
0x32b4   :  { %7432 = vmatpush3.bf16.msra.mxu1 %v7429_v7 }
0x32b5   :  { %7434 = vmatprep.subr.bf16.mxu1 %v7433_v34 }
0x32b8   :  { %7436 = vmatpush3.bf16.msra.mxu1 %v7433_v34 }
0x3362   :  { %v5727_v49 = vpop.f32.mrb[64].mxu0 }
0x3363   :  { %v5728_v33 = vadd.f32 %v7682_v44, %v5727_v49  ;;  %v7056_v35 = vpop.f32.mrb[65].mxu0 }
0x3365   :  { %5739 = vrot.lane.b32.xlu1 %v5728_v33, %s7688_s25 }
0x3386   :  { %v5652_v37 = vpop.f32.mrb[62].mxu1 }
0x3387   :  { %v7045_v14 = vpop.f32.mrb[63].mxu1  ;;  %v5653_v63 = vadd.f32 %v7683_v4, %v5652_v37 }
0x3389   :  { %v5731_v3 = vadd.f32 %v5728_v33, %v5653_v63 }
0x338b   :  { %v6068_v17 = vmul.f32 -1.442695, %v5731_v3 }
0x338d   :  { %7671 = vpow2.f32 %v6068_v17 }
0x3397   :  { %v7672_v39 = vpop.eup %7671 }
0x3398   :  { %v5735_v31 = vadd.f32 1.0, %v7672_v39 }
0x339a   :  { %7673 = vrcp.f32 %v5735_v31 }
0x33a4   :  { %v7674_v56 = vpop.eup %7673 }
0x33a5   :  { %v5749_v1 = vsub.f32 1.0, %v7674_v56  ;;  %v5755_v45 = vmul.f32 %v7674_v56, %v9018_v12 }
0x33d7   :  { %v5740_v25 = vpop.permute.xlu1 %5739 }
0x33d8   :  { %v5742_v26 = vmul.f32 %v7674_v56, %v5740_v25 }
0x33da   :  { %5744 = vrot.lane.b32.xlu0 %v5742_v26, %s7688_s25 }
0x33de   :  { %5778 = vrot.lane.b32.xlu0 %v3772_v13, %s7689_s27 }
0x33e2   :  { %5782 = vrot.lane.b32.xlu0 %v4340_v2, %s7689_s27 }
0x33e6   :  { %5786 = vrot.lane.b32.xlu0 %v4908_v58, %s7689_s27 }
0x33ea   :  { %5790 = vrot.lane.b32.xlu0 %v5476_v32, %s7689_s27 }
0x33ee   :  { %2868 = vrot.lane.b32.xlu0 %v2864_v29, %s7690_s2 }
0x344c   :  { %v5745_v11 = vpop.permute.xlu0 %5744 }
0x344d   :  { %v5747_v20 = vadd.f32 %v5745_v11, %v5653_v63 }
0x344f   :  { %7675 = vtanh.f32 %v5747_v20 }
0x3450   :  { %v5779_v6 = vpop.permute.xlu0 %5778 }
0x3451   :  { %7065 = vmatprep.mubr.msk.f32.mxu1 %vm95_vm0, %v5779_v6 }
0x3454   :  { %v5783_v28 = vpop.permute.xlu0 %5782 }
0x3458   :  { %v5787_v24 = vpop.permute.xlu0 %5786 }
0x3459   :  { %v7676_v29 = vpop.eup %7675 }
0x345a   :  { %5751 = vrot.lane.b32.xlu1 %v7676_v29, %s7689_s27 }
0x345c   :  { %v5791_v22 = vpop.permute.xlu0 %5790 }
0x345e   :  { %5780 = vrot.lane.b32.xlu1 %v4056_v42, %s7689_s27 }
0x3460   :  { %v2869_v38 = vpop.permute.xlu0 %2868 }
0x3461   :  { %2871 = vst.msk [vmem:[%s9139_s15] sm:$0xff] %vm2865_vm4, %v2869_v38 }
0x3462   :  { %5784 = vrot.lane.b32.xlu1 %v4624_v41, %s7689_s27 }
0x3466   :  { %5788 = vrot.lane.b32.xlu1 %v5192_v62, %s7689_s27 }
0x34cc   :  { %v5752_v55 = vpop.permute.xlu1 %5751 }
0x34cd   :  { %v5754_v43 = vmul.f32 %v5752_v55, %v5749_v1 }
0x34cf   :  { %v5756_v0 = vadd.f32 %v5755_v45, %v5754_v43 }
0x34d0   :  { %v5781_v48 = vpop.permute.xlu1 %5780 }
0x34d1   :  { %v5757_v21 = vsub.f32 %v5756_v0, %v9018_v12  ;;  %7066 = vmatmul.mubr.msk.f32.vlgmr.msra.gmra.mrb[64].mxu1 %vm95_vm0, %v5781_v48 }
0x34d2   :  { %7068 = vmatprep.mubr.msk.f32.mxu1 %vm95_vm0, %v5783_v28 }
0x34d3   :  { %v5758_v9 = vmul.f32 %v5757_v21, %v8306_v30 }
0x34d4   :  { %v5785_v50 = vpop.permute.xlu1 %5784 }
0x34d5   :  { %v5759_v23 = vadd.f32 %v5758_v9, %v9018_v12  ;;  %7069 = vmatmul.mubr.msk.f32.gmra.mrb[66].mxu1 %vm95_vm0, %v5785_v50 }
0x34d6   :  { %7071 = vmatprep.mubr.msk.f32.mxu1 %vm95_vm0, %v5787_v24 }
0x34d7   :  { %v5760_v46 = vmul.f32 %v5759_v23, %v8306_v30 }
0x34d8   :  { %v5789_v10 = vpop.permute.xlu1 %5788 }
0x34d9   :  { %5792 = vrot.lane.b32.xlu1 %v5760_v46, %s7689_s27  ;;  %7072 = vmatmul.mubr.msk.f32.gmra.mrb[68].mxu1 %vm95_vm0, %v5789_v10 }
0x34da   :  { %7074 = vmatprep.mubr.msk.f32.mxu1 %vm95_vm0, %v5791_v22 }
0x354b   :  { %v5793_v16 = vpop.permute.xlu1 %5792 }
0x354c   :  { %7075 = vmatmul.mubr.msk.f32.gmra.mrb[70].mxu1 %vm95_vm0, %v5793_v16 }
0x35a4   :  { %v7067_v52 = vpop.f32.mrb[64].mxu1 }
0x35a5   :  { %v5882_v12 = vadd.f32 %v7067_v52, %v6069_v18  ;;  %v5876_v53 = vpop.f32.mrb[65].mxu1 }
0x35a6   :  { %v5877_v54 = vadd.f32 %v6069_v18, %v5876_v53 }
0x35a7   :  { %5916 = vst.msk [vmem:[%s9140_s11 + $0x8] sm:$0xff] %vm95_vm0, %v5882_v12 }
0x35a8   :  { %5915 = vst.msk [vmem:[%s9140_s11] sm:$0xff] %vm95_vm0, %v5877_v54  ;;  %v7070_v30 = vpop.f32.mrb[66].mxu1 }
0x35a9   :  { %v5892_v51 = vadd.f32 %v7070_v30, %v6069_v18  ;;  %v5886_v60 = vpop.f32.mrb[67].mxu1 }
0x35aa   :  { %v5887_v40 = vadd.f32 %v6069_v18, %v5886_v60 }
0x35ab   :  { %5918 = vst.msk [vmem:[%s9140_s11 + $0x18] sm:$0xff] %vm95_vm0, %v5892_v51 }
0x35ac   :  { %5917 = vst.msk [vmem:[%s9140_s11 + $0x10] sm:$0xff] %vm95_vm0, %v5887_v40  ;;  %v7073_v61 = vpop.f32.mrb[68].mxu1 }
0x35ad   :  { %v5902_v8 = vadd.f32 %v7073_v61, %v6069_v18  ;;  %v5896_v19 = vpop.f32.mrb[69].mxu1 }
0x35ae   :  { %v5897_v15 = vadd.f32 %v6069_v18, %v5896_v19 }
0x35af   :  { %5920 = vst.msk [vmem:[%s9140_s11 + $0x28] sm:$0xff] %vm95_vm0, %v5902_v8 }
0x35b0   :  { %5919 = vst.msk [vmem:[%s9140_s11 + $0x20] sm:$0xff] %vm95_vm0, %v5897_v15 }
0x361f   :  { %v7076_v57 = vpop.f32.mrb[70].mxu1 }
0x3620   :  { %v5912_v47 = vadd.f32 %v7076_v57, %v6069_v18  ;;  %v5906_v49 = vpop.f32.mrb[71].mxu1 }
0x3621   :  { %v5907_v44 = vadd.f32 %v6069_v18, %v5906_v49 }
0x3622   :  { %5922 = vst.msk [vmem:[%s9140_s11 + $0x38] sm:$0xff] %vm95_vm0, %v5912_v47 }
0x3623   :  { %5921 = vst.msk [vmem:[%s9140_s11 + $0x30] sm:$0xff] %vm95_vm0, %v5907_v44 }

</bundles_post_ra>
